<compile_context>
chip_gen: v7x
topology: tpu7x:2x2x1
jax: 0.10.0
libtpu: 0.0.40
codegen_flags: <defaults>
</compile_context>

<pallas_src>
import functools

import jax
import jax.numpy as jnp
from jax.experimental import pallas as pl
from jax.experimental.pallas import tpu as pltpu


CONFIG = dict(
    vocab_size=100,
    embedding_dim=32,
    hidden_dim=32,
    num_layers=2,
    bidirectional=True,   # required by the module: classifier in_features = (2H)//2 = H
    num_classes=5,
    dropout=0.1,          # identity at inference (eval mode)
)

_LANE = 128  # lane-dense padding for the classifier output


# ------------------------------------------------------------------
# Fused Pallas kernel: stacked bi-LSTM + classifier
# ------------------------------------------------------------------

def _k_model_kernel(*args, B, S, H, layers):
    """args layout:
         inputs : x2d (S*B, E), then per layer [w_ih (E_l,8H), b (1,8H),
                  w_hh_fw (H,4H), w_hh_bw (H,4H)], then cls_w (H,128), cls_b (1,128)
         outputs: logits (B, 128)
         scratch: out_fw (S*B, H), out_bw (S*B, H)
       Activations are time-major: row index = t*B + b.
    """
    n_in = 1 + 4 * layers + 2
    x_ref = args[0]
    layer_refs = args[1:1 + 4 * layers]
    cls_w_ref = args[1 + 4 * layers]
    cls_b_ref = args[1 + 4 * layers + 1]
    o_ref = args[n_in]
    out_fw_ref = args[n_in + 1]
    out_bw_ref = args[n_in + 2]

    G = 4 * H  # gates per direction (i, f, g, o), PyTorch gate order

    def lstm_cell(pre, h, c, w_hh):
        # pre already contains x@W_ih + b_ih + b_hh for this timestep/direction
        gates = pre + jnp.dot(h, w_hh, preferred_element_type=jnp.float32)
        i = jax.nn.sigmoid(gates[:, 0:H])
        f = jax.nn.sigmoid(gates[:, H:2 * H])
        g = jnp.tanh(gates[:, 2 * H:3 * H])
        o = jax.nn.sigmoid(gates[:, 3 * H:4 * H])
        c_new = f * c + i * g
        h_new = o * jnp.tanh(c_new)
        return h_new, c_new

    layer_in = x_ref[...].astype(jnp.float32)           # (S*B, E_l)
    h_bw_final = None

    for l in range(layers):
        w_ih = layer_refs[4 * l][...].astype(jnp.float32)        # (E_l, 8H)
        b_all = layer_refs[4 * l + 1][...].astype(jnp.float32)   # (1, 8H)
        w_hh_fw = layer_refs[4 * l + 2][...].astype(jnp.float32)  # (H, 4H)
        w_hh_bw = layer_refs[4 * l + 3][...].astype(jnp.float32)  # (H, 4H)

        # One fused input projection for all gates & both directions (one MXU pass)
        xproj = jnp.dot(layer_in, w_ih,
                        preferred_element_type=jnp.float32) + b_all   # (S*B, 8H)

        last_layer = (l == layers - 1)

        # ---- forward direction ----
        # Its per-step outputs are only needed as the next layer's input; the
        # forward final hidden / lstm_out are unused by this forward pass.
        if not last_layer:
            h = jnp.zeros((B, H), jnp.float32)
            c = jnp.zeros((B, H), jnp.float32)
            for t in range(S):                      # short, static: trace-time unroll
                pre = xproj[t * B:(t + 1) * B, 0:G]
                h, c = lstm_cell(pre, h, c, w_hh_fw)
                out_fw_ref[t * B:(t + 1) * B, :] = h

        # ---- backward direction (produces hidden[-1] for the last layer) ----
        h = jnp.zeros((B, H), jnp.float32)
        c = jnp.zeros((B, H), jnp.float32)
        for t in range(S - 1, -1, -1):
            pre = xproj[t * B:(t + 1) * B, G:2 * G]
            h, c = lstm_cell(pre, h, c, w_hh_bw)
            if not last_layer:
                out_bw_ref[t * B:(t + 1) * B, :] = h
        h_bw_final = h

        if not last_layer:
            # next layer consumes [fw ; bw] concatenated along features
            layer_in = jnp.concatenate([out_fw_ref[...], out_bw_ref[...]], axis=-1)

    # ---- classifier on hidden[-1]; dropouts are identity at inference ----
    logits = jnp.dot(h_bw_final, cls_w_ref[...],
                     preferred_element_type=jnp.float32) + cls_b_ref[...]
    o_ref[...] = logits.astype(o_ref.dtype)
    # TODO(synk): for long sequences switch the unrolled timestep loops to
    #             lax.fori_loop with pl.ds dynamic slices to bound code size.


def k_model_forward(params, seq, cfg):
    """seq: (B, S) int32 token ids -> logits (B, num_classes)."""
    B, S = seq.shape
    H = cfg["hidden_dim"]
    E = cfg["embedding_dim"]
    layers = cfg["num_layers"]
    C = cfg["num_classes"]

    # Embedding gather (padding_idx=0 row is zero) — plain-JAX glue.
    # Time-major layout (row = t*B + b) so per-timestep slices are contiguous.
    x2d = params["emb"][seq.T].reshape(S * B, E).astype(jnp.float32)
    # TODO(synk): word_dropout / lstm_dropout are identity at inference (eval mode).

    inputs = [x2d]
    in_specs = [pl.BlockSpec(x2d.shape, lambda i: (0, 0))]
    for lp in params["layers"]:
        for name in ("w_ih", "b", "w_hh_fw", "w_hh_bw"):
            a = lp[name]
            inputs.append(a)
            in_specs.append(pl.BlockSpec(a.shape, lambda i: (0, 0)))
    for a in (params["cls_w"], params["cls_b"]):
        inputs.append(a)
        in_specs.append(pl.BlockSpec(a.shape, lambda i: (0, 0)))

    out = pl.pallas_call(
        functools.partial(_k_model_kernel, B=B, S=S, H=H, layers=layers),
        out_shape=jax.ShapeDtypeStruct((B, _LANE), jnp.float32),
        grid=(1,),
        in_specs=in_specs,
        out_specs=pl.BlockSpec((B, _LANE), lambda i: (0, 0)),
        scratch_shapes=[
            pltpu.VMEM((S * B, H), jnp.float32),   # forward-direction outputs
            pltpu.VMEM((S * B, H), jnp.float32),   # backward-direction outputs
        ],
    )(*inputs)
    return out[:, :C]   # drop the lane padding of the classifier output


# ------------------------------------------------------------------
# Parameter construction (PyTorch-equivalent packing)
# ------------------------------------------------------------------

def init_params(key, cfg):
    V, E, H = cfg["vocab_size"], cfg["embedding_dim"], cfg["hidden_dim"]
    L, C = cfg["num_layers"], cfg["num_classes"]
    G = 4 * H

    def nrm(k, shape, scale=0.1):
        return scale * jax.random.normal(k, shape, dtype=jnp.float32)

    keys = iter(jax.random.split(key, 2 + 6 * L))

    emb = nrm(next(keys), (V, E))
    emb = emb.at[0].set(0.0)          # nn.Embedding(padding_idx=0)

    p = {"emb": emb, "layers": []}
    in_dim = E
    for _ in range(L):
        # per direction: W_ih^T (E_l, 4H) with PyTorch gate order (i, f, g, o);
        # biases b_ih + b_hh folded into a single (1, 4H) row per direction.
        w_ih_fw = nrm(next(keys), (in_dim, G))
        w_ih_bw = nrm(next(keys), (in_dim, G))
        b_fw = nrm(next(keys), (1, G), 0.01)
        b_bw = nrm(next(keys), (1, G), 0.01)
        p["layers"].append({
            "w_ih": jnp.concatenate([w_ih_fw, w_ih_bw], axis=1),   # (E_l, 8H)
            "b": jnp.concatenate([b_fw, b_bw], axis=1),            # (1, 8H)
            "w_hh_fw": nrm(next(keys), (H, G)),                    # (H, 4H)
            "w_hh_bw": nrm(next(keys), (H, G)),                    # (H, 4H)
        })
        in_dim = 2 * H   # bidirectional outputs feed the next layer

    cls_w = jnp.zeros((H, _LANE), jnp.float32).at[:, :C].set(nrm(next(keys), (H, C)))
    cls_b = jnp.zeros((1, _LANE), jnp.float32)
    p["cls_w"] = cls_w
    p["cls_b"] = cls_b
    return p


# ------------------------------------------------------------------
# Driver
# ------------------------------------------------------------------

if __name__ == "__main__":
    cfg = CONFIG
    B, S = 2, 8

    key = jax.random.PRNGKey(0)
    k_params, k_ids = jax.random.split(key)

    params = init_params(k_params, cfg)

    seq = jax.random.randint(k_ids, (B, S), 1, cfg["vocab_size"], dtype=jnp.int32)
    seq = seq.at[:, -2:].set(0)   # last two tokens are padding (id 0)

    logits = k_model_forward(params, seq, cfg)
    logits = jax.block_until_ready(logits)

    assert logits.shape == (B, cfg["num_classes"])
    assert bool(jnp.all(jnp.isfinite(logits)))
    print("KERNEL_OK")
</pallas_src>

<mosaic_0001>
module attributes {stable_mosaic.version = 11 : i64} {
  func.func @_k_model_kernel(%arg0: i32, %arg1: memref<16x32xf32, #tpu.memory_space<vmem>>, %arg2: memref<32x256xf32, #tpu.memory_space<vmem>>, %arg3: memref<1x256xf32, #tpu.memory_space<vmem>>, %arg4: memref<32x128xf32, #tpu.memory_space<vmem>>, %arg5: memref<32x128xf32, #tpu.memory_space<vmem>>, %arg6: memref<64x256xf32, #tpu.memory_space<vmem>>, %arg7: memref<1x256xf32, #tpu.memory_space<vmem>>, %arg8: memref<32x128xf32, #tpu.memory_space<vmem>>, %arg9: memref<32x128xf32, #tpu.memory_space<vmem>>, %arg10: memref<32x128xf32, #tpu.memory_space<vmem>>, %arg11: memref<1x128xf32, #tpu.memory_space<vmem>>, %arg12: memref<2x128xf32, #tpu.memory_space<vmem>>, %arg13: memref<16x32xf32, #tpu.memory_space<vmem>>, %arg14: memref<16x32xf32, #tpu.memory_space<vmem>>) attributes {dimension_semantics = [#tpu.dimension_semantics<arbitrary>], iteration_bounds = array<i64: 1>, scalar_prefetch = 0 : i64, scratch_operands = 2 : i64, tpu.core_type = #tpu.core_type<tc>, window_params = [{pipeline_mode = #tpu.pipeline_mode<synchronous>, transform_indices = @transform_0, window_bounds = array<i64: 16, 32>}, {pipeline_mode = #tpu.pipeline_mode<synchronous>, transform_indices = @transform_1, window_bounds = array<i64: 32, 256>}, {pipeline_mode = #tpu.pipeline_mode<synchronous>, transform_indices = @transform_2, window_bounds = array<i64: 1, 256>}, {pipeline_mode = #tpu.pipeline_mode<synchronous>, transform_indices = @transform_3, window_bounds = array<i64: 32, 128>}, {pipeline_mode = #tpu.pipeline_mode<synchronous>, transform_indices = @transform_4, window_bounds = array<i64: 32, 128>}, {pipeline_mode = #tpu.pipeline_mode<synchronous>, transform_indices = @transform_5, window_bounds = array<i64: 64, 256>}, {pipeline_mode = #tpu.pipeline_mode<synchronous>, transform_indices = @transform_6, window_bounds = array<i64: 1, 256>}, {pipeline_mode = #tpu.pipeline_mode<synchronous>, transform_indices = @transform_7, window_bounds = array<i64: 32, 128>}, {pipeline_mode = #tpu.pipeline_mode<synchronous>, transform_indices = @transform_8, window_bounds = array<i64: 32, 128>}, {pipeline_mode = #tpu.pipeline_mode<synchronous>, transform_indices = @transform_9, window_bounds = array<i64: 32, 128>}, {pipeline_mode = #tpu.pipeline_mode<synchronous>, transform_indices = @transform_10, window_bounds = array<i64: 1, 128>}, {pipeline_mode = #tpu.pipeline_mode<synchronous>, transform_indices = @transform_11, window_bounds = array<i64: 2, 128>}]} {
    %c0 = arith.constant 0 : index
    %c0_0 = arith.constant 0 : index
    %0 = vector.load %arg1[%c0, %c0_0] : memref<16x32xf32, #tpu.memory_space<vmem>>, vector<16x32xf32>
    %c0_1 = arith.constant 0 : index
    %c0_2 = arith.constant 0 : index
    %1 = vector.load %arg2[%c0_1, %c0_2] : memref<32x256xf32, #tpu.memory_space<vmem>>, vector<32x256xf32>
    %c0_3 = arith.constant 0 : index
    %c0_4 = arith.constant 0 : index
    %2 = vector.load %arg3[%c0_3, %c0_4] : memref<1x256xf32, #tpu.memory_space<vmem>>, vector<1x256xf32>
    %c0_5 = arith.constant 0 : index
    %c0_6 = arith.constant 0 : index
    %3 = vector.load %arg4[%c0_5, %c0_6] : memref<32x128xf32, #tpu.memory_space<vmem>>, vector<32x128xf32>
    %c0_7 = arith.constant 0 : index
    %c0_8 = arith.constant 0 : index
    %4 = vector.load %arg5[%c0_7, %c0_8] : memref<32x128xf32, #tpu.memory_space<vmem>>, vector<32x128xf32>
    %cst = arith.constant dense<0.000000e+00> : vector<16x256xf32>
    %5 = tpu.matmul %0, %1, %cst {dimension_numbers = #tpu.dot_dimension_numbers<[1], [0], [0], [1], [0, 0, 1, 1], [], []>} : vector<16x32xf32>, vector<32x256xf32>, vector<16x256xf32> -> vector<16x256xf32>
    %6 = vector.broadcast %2 : vector<1x256xf32> to vector<16x256xf32>
    %7 = arith.addf %5, %6 : vector<16x256xf32>
    %cst_9 = arith.constant 0.000000e+00 : f32
    %8 = vector.broadcast %cst_9 : f32 to vector<2x32xf32>
    %cst_10 = arith.constant 0.000000e+00 : f32
    %9 = vector.broadcast %cst_10 : f32 to vector<2x32xf32>
    %10 = vector.extract_strided_slice %7 {offsets = [0, 0], sizes = [2, 128], strides = [1, 1]} : vector<16x256xf32> to vector<2x128xf32>
    %cst_11 = arith.constant dense<0.000000e+00> : vector<2x128xf32>
    %11 = tpu.matmul %8, %3, %cst_11 {dimension_numbers = #tpu.dot_dimension_numbers<[1], [0], [0], [1], [0, 0, 1, 1], [], []>} : vector<2x32xf32>, vector<32x128xf32>, vector<2x128xf32> -> vector<2x128xf32>
    %12 = arith.addf %10, %11 : vector<2x128xf32>
    %13 = vector.extract_strided_slice %12 {offsets = [0, 0], sizes = [2, 32], strides = [1, 1]} : vector<2x128xf32> to vector<2x32xf32>
    %14 = arith.negf %13 : vector<2x32xf32>
    %15 = math.exp %14 : vector<2x32xf32>
    %cst_12 = arith.constant 1.000000e+00 : f32
    %16 = vector.broadcast %cst_12 : f32 to vector<2x32xf32>
    %17 = arith.addf %16, %15 : vector<2x32xf32>
    %18 = arith.divf %16, %17 : vector<2x32xf32>
    %19 = vector.extract_strided_slice %12 {offsets = [0, 32], sizes = [2, 32], strides = [1, 1]} : vector<2x128xf32> to vector<2x32xf32>
    %20 = arith.negf %19 : vector<2x32xf32>
    %21 = math.exp %20 : vector<2x32xf32>
    %cst_13 = arith.constant 1.000000e+00 : f32
    %22 = vector.broadcast %cst_13 : f32 to vector<2x32xf32>
    %23 = arith.addf %22, %21 : vector<2x32xf32>
    %24 = arith.divf %22, %23 : vector<2x32xf32>
    %25 = vector.extract_strided_slice %12 {offsets = [0, 64], sizes = [2, 32], strides = [1, 1]} : vector<2x128xf32> to vector<2x32xf32>
    %26 = math.tanh %25 : vector<2x32xf32>
    %27 = vector.extract_strided_slice %12 {offsets = [0, 96], sizes = [2, 32], strides = [1, 1]} : vector<2x128xf32> to vector<2x32xf32>
    %28 = arith.negf %27 : vector<2x32xf32>
    %29 = math.exp %28 : vector<2x32xf32>
    %cst_14 = arith.constant 1.000000e+00 : f32
    %30 = vector.broadcast %cst_14 : f32 to vector<2x32xf32>
    %31 = arith.addf %30, %29 : vector<2x32xf32>
    %32 = arith.divf %30, %31 : vector<2x32xf32>
    %33 = arith.mulf %24, %9 : vector<2x32xf32>
    %34 = arith.mulf %18, %26 : vector<2x32xf32>
    %35 = arith.addf %33, %34 : vector<2x32xf32>
    %36 = math.tanh %35 : vector<2x32xf32>
    %37 = arith.mulf %32, %36 : vector<2x32xf32>
    %c0_15 = arith.constant 0 : index
    %c0_16 = arith.constant 0 : index
    %38 = vector.load %arg13[%c0_15, %c0_16] : memref<16x32xf32, #tpu.memory_space<vmem>>, vector<2x32xf32>
    tpu.vector_store %arg13[%c0_15, %c0_16], %37 {strides = array<i32>} : memref<16x32xf32, #tpu.memory_space<vmem>>, vector<2x32xf32>,
    %39 = vector.extract_strided_slice %7 {offsets = [2, 0], sizes = [2, 128], strides = [1, 1]} : vector<16x256xf32> to vector<2x128xf32>
    %cst_17 = arith.constant dense<0.000000e+00> : vector<2x128xf32>
    %40 = tpu.matmul %37, %3, %cst_17 {dimension_numbers = #tpu.dot_dimension_numbers<[1], [0], [0], [1], [0, 0, 1, 1], [], []>} : vector<2x32xf32>, vector<32x128xf32>, vector<2x128xf32> -> vector<2x128xf32>
    %41 = arith.addf %39, %40 : vector<2x128xf32>
    %42 = vector.extract_strided_slice %41 {offsets = [0, 0], sizes = [2, 32], strides = [1, 1]} : vector<2x128xf32> to vector<2x32xf32>
    %43 = arith.negf %42 : vector<2x32xf32>
    %44 = math.exp %43 : vector<2x32xf32>
    %cst_18 = arith.constant 1.000000e+00 : f32
    %45 = vector.broadcast %cst_18 : f32 to vector<2x32xf32>
    %46 = arith.addf %45, %44 : vector<2x32xf32>
    %47 = arith.divf %45, %46 : vector<2x32xf32>
    %48 = vector.extract_strided_slice %41 {offsets = [0, 32], sizes = [2, 32], strides = [1, 1]} : vector<2x128xf32> to vector<2x32xf32>
    %49 = arith.negf %48 : vector<2x32xf32>
    %50 = math.exp %49 : vector<2x32xf32>
    %cst_19 = arith.constant 1.000000e+00 : f32
    %51 = vector.broadcast %cst_19 : f32 to vector<2x32xf32>
    %52 = arith.addf %51, %50 : vector<2x32xf32>
    %53 = arith.divf %51, %52 : vector<2x32xf32>
    %54 = vector.extract_strided_slice %41 {offsets = [0, 64], sizes = [2, 32], strides = [1, 1]} : vector<2x128xf32> to vector<2x32xf32>
    %55 = math.tanh %54 : vector<2x32xf32>
    %56 = vector.extract_strided_slice %41 {offsets = [0, 96], sizes = [2, 32], strides = [1, 1]} : vector<2x128xf32> to vector<2x32xf32>
    %57 = arith.negf %56 : vector<2x32xf32>
    %58 = math.exp %57 : vector<2x32xf32>
    %cst_20 = arith.constant 1.000000e+00 : f32
    %59 = vector.broadcast %cst_20 : f32 to vector<2x32xf32>
    %60 = arith.addf %59, %58 : vector<2x32xf32>
    %61 = arith.divf %59, %60 : vector<2x32xf32>
    %62 = arith.mulf %53, %35 : vector<2x32xf32>
    %63 = arith.mulf %47, %55 : vector<2x32xf32>
    %64 = arith.addf %62, %63 : vector<2x32xf32>
    %65 = math.tanh %64 : vector<2x32xf32>
    %66 = arith.mulf %61, %65 : vector<2x32xf32>
    %c2 = arith.constant 2 : index
    %c0_21 = arith.constant 0 : index
    %67 = vector.load %arg13[%c2, %c0_21] : memref<16x32xf32, #tpu.memory_space<vmem>>, vector<2x32xf32>
    tpu.vector_store %arg13[%c2, %c0_21], %66 {strides = array<i32>} : memref<16x32xf32, #tpu.memory_space<vmem>>, vector<2x32xf32>,
    %68 = vector.extract_strided_slice %7 {offsets = [4, 0], sizes = [2, 128], strides = [1, 1]} : vector<16x256xf32> to vector<2x128xf32>
    %cst_22 = arith.constant dense<0.000000e+00> : vector<2x128xf32>
    %69 = tpu.matmul %66, %3, %cst_22 {dimension_numbers = #tpu.dot_dimension_numbers<[1], [0], [0], [1], [0, 0, 1, 1], [], []>} : vector<2x32xf32>, vector<32x128xf32>, vector<2x128xf32> -> vector<2x128xf32>
    %70 = arith.addf %68, %69 : vector<2x128xf32>
    %71 = vector.extract_strided_slice %70 {offsets = [0, 0], sizes = [2, 32], strides = [1, 1]} : vector<2x128xf32> to vector<2x32xf32>
    %72 = arith.negf %71 : vector<2x32xf32>
    %73 = math.exp %72 : vector<2x32xf32>
    %cst_23 = arith.constant 1.000000e+00 : f32
    %74 = vector.broadcast %cst_23 : f32 to vector<2x32xf32>
    %75 = arith.addf %74, %73 : vector<2x32xf32>
    %76 = arith.divf %74, %75 : vector<2x32xf32>
    %77 = vector.extract_strided_slice %70 {offsets = [0, 32], sizes = [2, 32], strides = [1, 1]} : vector<2x128xf32> to vector<2x32xf32>
    %78 = arith.negf %77 : vector<2x32xf32>
    %79 = math.exp %78 : vector<2x32xf32>
    %cst_24 = arith.constant 1.000000e+00 : f32
    %80 = vector.broadcast %cst_24 : f32 to vector<2x32xf32>
    %81 = arith.addf %80, %79 : vector<2x32xf32>
    %82 = arith.divf %80, %81 : vector<2x32xf32>
    %83 = vector.extract_strided_slice %70 {offsets = [0, 64], sizes = [2, 32], strides = [1, 1]} : vector<2x128xf32> to vector<2x32xf32>
    %84 = math.tanh %83 : vector<2x32xf32>
    %85 = vector.extract_strided_slice %70 {offsets = [0, 96], sizes = [2, 32], strides = [1, 1]} : vector<2x128xf32> to vector<2x32xf32>
    %86 = arith.negf %85 : vector<2x32xf32>
    %87 = math.exp %86 : vector<2x32xf32>
    %cst_25 = arith.constant 1.000000e+00 : f32
    %88 = vector.broadcast %cst_25 : f32 to vector<2x32xf32>
    %89 = arith.addf %88, %87 : vector<2x32xf32>
    %90 = arith.divf %88, %89 : vector<2x32xf32>
    %91 = arith.mulf %82, %64 : vector<2x32xf32>
    %92 = arith.mulf %76, %84 : vector<2x32xf32>
    %93 = arith.addf %91, %92 : vector<2x32xf32>
    %94 = math.tanh %93 : vector<2x32xf32>
    %95 = arith.mulf %90, %94 : vector<2x32xf32>
    %c4 = arith.constant 4 : index
    %c0_26 = arith.constant 0 : index
    %96 = vector.load %arg13[%c4, %c0_26] : memref<16x32xf32, #tpu.memory_space<vmem>>, vector<2x32xf32>
    tpu.vector_store %arg13[%c4, %c0_26], %95 {strides = array<i32>} : memref<16x32xf32, #tpu.memory_space<vmem>>, vector<2x32xf32>,
    %97 = vector.extract_strided_slice %7 {offsets = [6, 0], sizes = [2, 128], strides = [1, 1]} : vector<16x256xf32> to vector<2x128xf32>
    %cst_27 = arith.constant dense<0.000000e+00> : vector<2x128xf32>
    %98 = tpu.matmul %95, %3, %cst_27 {dimension_numbers = #tpu.dot_dimension_numbers<[1], [0], [0], [1], [0, 0, 1, 1], [], []>} : vector<2x32xf32>, vector<32x128xf32>, vector<2x128xf32> -> vector<2x128xf32>
    %99 = arith.addf %97, %98 : vector<2x128xf32>
    %100 = vector.extract_strided_slice %99 {offsets = [0, 0], sizes = [2, 32], strides = [1, 1]} : vector<2x128xf32> to vector<2x32xf32>
    %101 = arith.negf %100 : vector<2x32xf32>
    %102 = math.exp %101 : vector<2x32xf32>
    %cst_28 = arith.constant 1.000000e+00 : f32
    %103 = vector.broadcast %cst_28 : f32 to vector<2x32xf32>
    %104 = arith.addf %103, %102 : vector<2x32xf32>
    %105 = arith.divf %103, %104 : vector<2x32xf32>
    %106 = vector.extract_strided_slice %99 {offsets = [0, 32], sizes = [2, 32], strides = [1, 1]} : vector<2x128xf32> to vector<2x32xf32>
    %107 = arith.negf %106 : vector<2x32xf32>
    %108 = math.exp %107 : vector<2x32xf32>
    %cst_29 = arith.constant 1.000000e+00 : f32
    %109 = vector.broadcast %cst_29 : f32 to vector<2x32xf32>
    %110 = arith.addf %109, %108 : vector<2x32xf32>
    %111 = arith.divf %109, %110 : vector<2x32xf32>
    %112 = vector.extract_strided_slice %99 {offsets = [0, 64], sizes = [2, 32], strides = [1, 1]} : vector<2x128xf32> to vector<2x32xf32>
    %113 = math.tanh %112 : vector<2x32xf32>
    %114 = vector.extract_strided_slice %99 {offsets = [0, 96], sizes = [2, 32], strides = [1, 1]} : vector<2x128xf32> to vector<2x32xf32>
    %115 = arith.negf %114 : vector<2x32xf32>
    %116 = math.exp %115 : vector<2x32xf32>
    %cst_30 = arith.constant 1.000000e+00 : f32
    %117 = vector.broadcast %cst_30 : f32 to vector<2x32xf32>
    %118 = arith.addf %117, %116 : vector<2x32xf32>
    %119 = arith.divf %117, %118 : vector<2x32xf32>
    %120 = arith.mulf %111, %93 : vector<2x32xf32>
    %121 = arith.mulf %105, %113 : vector<2x32xf32>
    %122 = arith.addf %120, %121 : vector<2x32xf32>
    %123 = math.tanh %122 : vector<2x32xf32>
    %124 = arith.mulf %119, %123 : vector<2x32xf32>
    %c6 = arith.constant 6 : index
    %c0_31 = arith.constant 0 : index
    %125 = vector.load %arg13[%c6, %c0_31] : memref<16x32xf32, #tpu.memory_space<vmem>>, vector<2x32xf32>
    tpu.vector_store %arg13[%c6, %c0_31], %124 {strides = array<i32>} : memref<16x32xf32, #tpu.memory_space<vmem>>, vector<2x32xf32>,
    %126 = vector.extract_strided_slice %7 {offsets = [8, 0], sizes = [2, 128], strides = [1, 1]} : vector<16x256xf32> to vector<2x128xf32>
    %cst_32 = arith.constant dense<0.000000e+00> : vector<2x128xf32>
    %127 = tpu.matmul %124, %3, %cst_32 {dimension_numbers = #tpu.dot_dimension_numbers<[1], [0], [0], [1], [0, 0, 1, 1], [], []>} : vector<2x32xf32>, vector<32x128xf32>, vector<2x128xf32> -> vector<2x128xf32>
    %128 = arith.addf %126, %127 : vector<2x128xf32>
    %129 = vector.extract_strided_slice %128 {offsets = [0, 0], sizes = [2, 32], strides = [1, 1]} : vector<2x128xf32> to vector<2x32xf32>
    %130 = arith.negf %129 : vector<2x32xf32>
    %131 = math.exp %130 : vector<2x32xf32>
    %cst_33 = arith.constant 1.000000e+00 : f32
    %132 = vector.broadcast %cst_33 : f32 to vector<2x32xf32>
    %133 = arith.addf %132, %131 : vector<2x32xf32>
    %134 = arith.divf %132, %133 : vector<2x32xf32>
    %135 = vector.extract_strided_slice %128 {offsets = [0, 32], sizes = [2, 32], strides = [1, 1]} : vector<2x128xf32> to vector<2x32xf32>
    %136 = arith.negf %135 : vector<2x32xf32>
    %137 = math.exp %136 : vector<2x32xf32>
    %cst_34 = arith.constant 1.000000e+00 : f32
    %138 = vector.broadcast %cst_34 : f32 to vector<2x32xf32>
    %139 = arith.addf %138, %137 : vector<2x32xf32>
    %140 = arith.divf %138, %139 : vector<2x32xf32>
    %141 = vector.extract_strided_slice %128 {offsets = [0, 64], sizes = [2, 32], strides = [1, 1]} : vector<2x128xf32> to vector<2x32xf32>
    %142 = math.tanh %141 : vector<2x32xf32>
    %143 = vector.extract_strided_slice %128 {offsets = [0, 96], sizes = [2, 32], strides = [1, 1]} : vector<2x128xf32> to vector<2x32xf32>
    %144 = arith.negf %143 : vector<2x32xf32>
    %145 = math.exp %144 : vector<2x32xf32>
    %cst_35 = arith.constant 1.000000e+00 : f32
    %146 = vector.broadcast %cst_35 : f32 to vector<2x32xf32>
    %147 = arith.addf %146, %145 : vector<2x32xf32>
    %148 = arith.divf %146, %147 : vector<2x32xf32>
    %149 = arith.mulf %140, %122 : vector<2x32xf32>
    %150 = arith.mulf %134, %142 : vector<2x32xf32>
    %151 = arith.addf %149, %150 : vector<2x32xf32>
    %152 = math.tanh %151 : vector<2x32xf32>
    %153 = arith.mulf %148, %152 : vector<2x32xf32>
    %c8 = arith.constant 8 : index
    %c0_36 = arith.constant 0 : index
    %154 = vector.load %arg13[%c8, %c0_36] : memref<16x32xf32, #tpu.memory_space<vmem>>, vector<2x32xf32>
    tpu.vector_store %arg13[%c8, %c0_36], %153 {strides = array<i32>} : memref<16x32xf32, #tpu.memory_space<vmem>>, vector<2x32xf32>,
    %155 = vector.extract_strided_slice %7 {offsets = [10, 0], sizes = [2, 128], strides = [1, 1]} : vector<16x256xf32> to vector<2x128xf32>
    %cst_37 = arith.constant dense<0.000000e+00> : vector<2x128xf32>
    %156 = tpu.matmul %153, %3, %cst_37 {dimension_numbers = #tpu.dot_dimension_numbers<[1], [0], [0], [1], [0, 0, 1, 1], [], []>} : vector<2x32xf32>, vector<32x128xf32>, vector<2x128xf32> -> vector<2x128xf32>
    %157 = arith.addf %155, %156 : vector<2x128xf32>
    %158 = vector.extract_strided_slice %157 {offsets = [0, 0], sizes = [2, 32], strides = [1, 1]} : vector<2x128xf32> to vector<2x32xf32>
    %159 = arith.negf %158 : vector<2x32xf32>
    %160 = math.exp %159 : vector<2x32xf32>
    %cst_38 = arith.constant 1.000000e+00 : f32
    %161 = vector.broadcast %cst_38 : f32 to vector<2x32xf32>
    %162 = arith.addf %161, %160 : vector<2x32xf32>
    %163 = arith.divf %161, %162 : vector<2x32xf32>
    %164 = vector.extract_strided_slice %157 {offsets = [0, 32], sizes = [2, 32], strides = [1, 1]} : vector<2x128xf32> to vector<2x32xf32>
    %165 = arith.negf %164 : vector<2x32xf32>
    %166 = math.exp %165 : vector<2x32xf32>
    %cst_39 = arith.constant 1.000000e+00 : f32
    %167 = vector.broadcast %cst_39 : f32 to vector<2x32xf32>
    %168 = arith.addf %167, %166 : vector<2x32xf32>
    %169 = arith.divf %167, %168 : vector<2x32xf32>
    %170 = vector.extract_strided_slice %157 {offsets = [0, 64], sizes = [2, 32], strides = [1, 1]} : vector<2x128xf32> to vector<2x32xf32>
    %171 = math.tanh %170 : vector<2x32xf32>
    %172 = vector.extract_strided_slice %157 {offsets = [0, 96], sizes = [2, 32], strides = [1, 1]} : vector<2x128xf32> to vector<2x32xf32>
    %173 = arith.negf %172 : vector<2x32xf32>
    %174 = math.exp %173 : vector<2x32xf32>
    %cst_40 = arith.constant 1.000000e+00 : f32
    %175 = vector.broadcast %cst_40 : f32 to vector<2x32xf32>
    %176 = arith.addf %175, %174 : vector<2x32xf32>
    %177 = arith.divf %175, %176 : vector<2x32xf32>
    %178 = arith.mulf %169, %151 : vector<2x32xf32>
    %179 = arith.mulf %163, %171 : vector<2x32xf32>
    %180 = arith.addf %178, %179 : vector<2x32xf32>
    %181 = math.tanh %180 : vector<2x32xf32>
    %182 = arith.mulf %177, %181 : vector<2x32xf32>
    %c10 = arith.constant 10 : index
    %c0_41 = arith.constant 0 : index
    %183 = vector.load %arg13[%c10, %c0_41] : memref<16x32xf32, #tpu.memory_space<vmem>>, vector<2x32xf32>
    tpu.vector_store %arg13[%c10, %c0_41], %182 {strides = array<i32>} : memref<16x32xf32, #tpu.memory_space<vmem>>, vector<2x32xf32>,
    %184 = vector.extract_strided_slice %7 {offsets = [12, 0], sizes = [2, 128], strides = [1, 1]} : vector<16x256xf32> to vector<2x128xf32>
    %cst_42 = arith.constant dense<0.000000e+00> : vector<2x128xf32>
    %185 = tpu.matmul %182, %3, %cst_42 {dimension_numbers = #tpu.dot_dimension_numbers<[1], [0], [0], [1], [0, 0, 1, 1], [], []>} : vector<2x32xf32>, vector<32x128xf32>, vector<2x128xf32> -> vector<2x128xf32>
    %186 = arith.addf %184, %185 : vector<2x128xf32>
    %187 = vector.extract_strided_slice %186 {offsets = [0, 0], sizes = [2, 32], strides = [1, 1]} : vector<2x128xf32> to vector<2x32xf32>
    %188 = arith.negf %187 : vector<2x32xf32>
    %189 = math.exp %188 : vector<2x32xf32>
    %cst_43 = arith.constant 1.000000e+00 : f32
    %190 = vector.broadcast %cst_43 : f32 to vector<2x32xf32>
    %191 = arith.addf %190, %189 : vector<2x32xf32>
    %192 = arith.divf %190, %191 : vector<2x32xf32>
    %193 = vector.extract_strided_slice %186 {offsets = [0, 32], sizes = [2, 32], strides = [1, 1]} : vector<2x128xf32> to vector<2x32xf32>
    %194 = arith.negf %193 : vector<2x32xf32>
    %195 = math.exp %194 : vector<2x32xf32>
    %cst_44 = arith.constant 1.000000e+00 : f32
    %196 = vector.broadcast %cst_44 : f32 to vector<2x32xf32>
    %197 = arith.addf %196, %195 : vector<2x32xf32>
    %198 = arith.divf %196, %197 : vector<2x32xf32>
    %199 = vector.extract_strided_slice %186 {offsets = [0, 64], sizes = [2, 32], strides = [1, 1]} : vector<2x128xf32> to vector<2x32xf32>
    %200 = math.tanh %199 : vector<2x32xf32>
    %201 = vector.extract_strided_slice %186 {offsets = [0, 96], sizes = [2, 32], strides = [1, 1]} : vector<2x128xf32> to vector<2x32xf32>
    %202 = arith.negf %201 : vector<2x32xf32>
    %203 = math.exp %202 : vector<2x32xf32>
    %cst_45 = arith.constant 1.000000e+00 : f32
    %204 = vector.broadcast %cst_45 : f32 to vector<2x32xf32>
    %205 = arith.addf %204, %203 : vector<2x32xf32>
    %206 = arith.divf %204, %205 : vector<2x32xf32>
    %207 = arith.mulf %198, %180 : vector<2x32xf32>
    %208 = arith.mulf %192, %200 : vector<2x32xf32>
    %209 = arith.addf %207, %208 : vector<2x32xf32>
    %210 = math.tanh %209 : vector<2x32xf32>
    %211 = arith.mulf %206, %210 : vector<2x32xf32>
    %c12 = arith.constant 12 : index
    %c0_46 = arith.constant 0 : index
    %212 = vector.load %arg13[%c12, %c0_46] : memref<16x32xf32, #tpu.memory_space<vmem>>, vector<2x32xf32>
    tpu.vector_store %arg13[%c12, %c0_46], %211 {strides = array<i32>} : memref<16x32xf32, #tpu.memory_space<vmem>>, vector<2x32xf32>,
    %213 = vector.extract_strided_slice %7 {offsets = [14, 0], sizes = [2, 128], strides = [1, 1]} : vector<16x256xf32> to vector<2x128xf32>
    %cst_47 = arith.constant dense<0.000000e+00> : vector<2x128xf32>
    %214 = tpu.matmul %211, %3, %cst_47 {dimension_numbers = #tpu.dot_dimension_numbers<[1], [0], [0], [1], [0, 0, 1, 1], [], []>} : vector<2x32xf32>, vector<32x128xf32>, vector<2x128xf32> -> vector<2x128xf32>
    %215 = arith.addf %213, %214 : vector<2x128xf32>
    %216 = vector.extract_strided_slice %215 {offsets = [0, 0], sizes = [2, 32], strides = [1, 1]} : vector<2x128xf32> to vector<2x32xf32>
    %217 = arith.negf %216 : vector<2x32xf32>
    %218 = math.exp %217 : vector<2x32xf32>
    %cst_48 = arith.constant 1.000000e+00 : f32
    %219 = vector.broadcast %cst_48 : f32 to vector<2x32xf32>
    %220 = arith.addf %219, %218 : vector<2x32xf32>
    %221 = arith.divf %219, %220 : vector<2x32xf32>
    %222 = vector.extract_strided_slice %215 {offsets = [0, 32], sizes = [2, 32], strides = [1, 1]} : vector<2x128xf32> to vector<2x32xf32>
    %223 = arith.negf %222 : vector<2x32xf32>
    %224 = math.exp %223 : vector<2x32xf32>
    %cst_49 = arith.constant 1.000000e+00 : f32
    %225 = vector.broadcast %cst_49 : f32 to vector<2x32xf32>
    %226 = arith.addf %225, %224 : vector<2x32xf32>
    %227 = arith.divf %225, %226 : vector<2x32xf32>
    %228 = vector.extract_strided_slice %215 {offsets = [0, 64], sizes = [2, 32], strides = [1, 1]} : vector<2x128xf32> to vector<2x32xf32>
    %229 = math.tanh %228 : vector<2x32xf32>
    %230 = vector.extract_strided_slice %215 {offsets = [0, 96], sizes = [2, 32], strides = [1, 1]} : vector<2x128xf32> to vector<2x32xf32>
    %231 = arith.negf %230 : vector<2x32xf32>
    %232 = math.exp %231 : vector<2x32xf32>
    %cst_50 = arith.constant 1.000000e+00 : f32
    %233 = vector.broadcast %cst_50 : f32 to vector<2x32xf32>
    %234 = arith.addf %233, %232 : vector<2x32xf32>
    %235 = arith.divf %233, %234 : vector<2x32xf32>
    %236 = arith.mulf %227, %209 : vector<2x32xf32>
    %237 = arith.mulf %221, %229 : vector<2x32xf32>
    %238 = arith.addf %236, %237 : vector<2x32xf32>
    %239 = math.tanh %238 : vector<2x32xf32>
    %240 = arith.mulf %235, %239 : vector<2x32xf32>
    %c14 = arith.constant 14 : index
    %c0_51 = arith.constant 0 : index
    %241 = vector.load %arg13[%c14, %c0_51] : memref<16x32xf32, #tpu.memory_space<vmem>>, vector<2x32xf32>
    tpu.vector_store %arg13[%c14, %c0_51], %240 {strides = array<i32>} : memref<16x32xf32, #tpu.memory_space<vmem>>, vector<2x32xf32>,
    %cst_52 = arith.constant 0.000000e+00 : f32
    %242 = vector.broadcast %cst_52 : f32 to vector<2x32xf32>
    %cst_53 = arith.constant 0.000000e+00 : f32
    %243 = vector.broadcast %cst_53 : f32 to vector<2x32xf32>
    %244 = vector.extract_strided_slice %7 {offsets = [14, 128], sizes = [2, 128], strides = [1, 1]} : vector<16x256xf32> to vector<2x128xf32>
    %cst_54 = arith.constant dense<0.000000e+00> : vector<2x128xf32>
    %245 = tpu.matmul %242, %4, %cst_54 {dimension_numbers = #tpu.dot_dimension_numbers<[1], [0], [0], [1], [0, 0, 1, 1], [], []>} : vector<2x32xf32>, vector<32x128xf32>, vector<2x128xf32> -> vector<2x128xf32>
    %246 = arith.addf %244, %245 : vector<2x128xf32>
    %247 = vector.extract_strided_slice %246 {offsets = [0, 0], sizes = [2, 32], strides = [1, 1]} : vector<2x128xf32> to vector<2x32xf32>
    %248 = arith.negf %247 : vector<2x32xf32>
    %249 = math.exp %248 : vector<2x32xf32>
    %cst_55 = arith.constant 1.000000e+00 : f32
    %250 = vector.broadcast %cst_55 : f32 to vector<2x32xf32>
    %251 = arith.addf %250, %249 : vector<2x32xf32>
    %252 = arith.divf %250, %251 : vector<2x32xf32>
    %253 = vector.extract_strided_slice %246 {offsets = [0, 32], sizes = [2, 32], strides = [1, 1]} : vector<2x128xf32> to vector<2x32xf32>
    %254 = arith.negf %253 : vector<2x32xf32>
    %255 = math.exp %254 : vector<2x32xf32>
    %cst_56 = arith.constant 1.000000e+00 : f32
    %256 = vector.broadcast %cst_56 : f32 to vector<2x32xf32>
    %257 = arith.addf %256, %255 : vector<2x32xf32>
    %258 = arith.divf %256, %257 : vector<2x32xf32>
    %259 = vector.extract_strided_slice %246 {offsets = [0, 64], sizes = [2, 32], strides = [1, 1]} : vector<2x128xf32> to vector<2x32xf32>
    %260 = math.tanh %259 : vector<2x32xf32>
    %261 = vector.extract_strided_slice %246 {offsets = [0, 96], sizes = [2, 32], strides = [1, 1]} : vector<2x128xf32> to vector<2x32xf32>
    %262 = arith.negf %261 : vector<2x32xf32>
    %263 = math.exp %262 : vector<2x32xf32>
    %cst_57 = arith.constant 1.000000e+00 : f32
    %264 = vector.broadcast %cst_57 : f32 to vector<2x32xf32>
    %265 = arith.addf %264, %263 : vector<2x32xf32>
    %266 = arith.divf %264, %265 : vector<2x32xf32>
    %267 = arith.mulf %258, %243 : vector<2x32xf32>
    %268 = arith.mulf %252, %260 : vector<2x32xf32>
    %269 = arith.addf %267, %268 : vector<2x32xf32>
    %270 = math.tanh %269 : vector<2x32xf32>
    %271 = arith.mulf %266, %270 : vector<2x32xf32>
    %c14_58 = arith.constant 14 : index
    %c0_59 = arith.constant 0 : index
    %272 = vector.load %arg14[%c14_58, %c0_59] : memref<16x32xf32, #tpu.memory_space<vmem>>, vector<2x32xf32>
    tpu.vector_store %arg14[%c14_58, %c0_59], %271 {strides = array<i32>} : memref<16x32xf32, #tpu.memory_space<vmem>>, vector<2x32xf32>,
    %273 = vector.extract_strided_slice %7 {offsets = [12, 128], sizes = [2, 128], strides = [1, 1]} : vector<16x256xf32> to vector<2x128xf32>
    %cst_60 = arith.constant dense<0.000000e+00> : vector<2x128xf32>
    %274 = tpu.matmul %271, %4, %cst_60 {dimension_numbers = #tpu.dot_dimension_numbers<[1], [0], [0], [1], [0, 0, 1, 1], [], []>} : vector<2x32xf32>, vector<32x128xf32>, vector<2x128xf32> -> vector<2x128xf32>
    %275 = arith.addf %273, %274 : vector<2x128xf32>
    %276 = vector.extract_strided_slice %275 {offsets = [0, 0], sizes = [2, 32], strides = [1, 1]} : vector<2x128xf32> to vector<2x32xf32>
    %277 = arith.negf %276 : vector<2x32xf32>
    %278 = math.exp %277 : vector<2x32xf32>
    %cst_61 = arith.constant 1.000000e+00 : f32
    %279 = vector.broadcast %cst_61 : f32 to vector<2x32xf32>
    %280 = arith.addf %279, %278 : vector<2x32xf32>
    %281 = arith.divf %279, %280 : vector<2x32xf32>
    %282 = vector.extract_strided_slice %275 {offsets = [0, 32], sizes = [2, 32], strides = [1, 1]} : vector<2x128xf32> to vector<2x32xf32>
    %283 = arith.negf %282 : vector<2x32xf32>
    %284 = math.exp %283 : vector<2x32xf32>
    %cst_62 = arith.constant 1.000000e+00 : f32
    %285 = vector.broadcast %cst_62 : f32 to vector<2x32xf32>
    %286 = arith.addf %285, %284 : vector<2x32xf32>
    %287 = arith.divf %285, %286 : vector<2x32xf32>
    %288 = vector.extract_strided_slice %275 {offsets = [0, 64], sizes = [2, 32], strides = [1, 1]} : vector<2x128xf32> to vector<2x32xf32>
    %289 = math.tanh %288 : vector<2x32xf32>
    %290 = vector.extract_strided_slice %275 {offsets = [0, 96], sizes = [2, 32], strides = [1, 1]} : vector<2x128xf32> to vector<2x32xf32>
    %291 = arith.negf %290 : vector<2x32xf32>
    %292 = math.exp %291 : vector<2x32xf32>
    %cst_63 = arith.constant 1.000000e+00 : f32
    %293 = vector.broadcast %cst_63 : f32 to vector<2x32xf32>
    %294 = arith.addf %293, %292 : vector<2x32xf32>
    %295 = arith.divf %293, %294 : vector<2x32xf32>
    %296 = arith.mulf %287, %269 : vector<2x32xf32>
    %297 = arith.mulf %281, %289 : vector<2x32xf32>
    %298 = arith.addf %296, %297 : vector<2x32xf32>
    %299 = math.tanh %298 : vector<2x32xf32>
    %300 = arith.mulf %295, %299 : vector<2x32xf32>
    %c12_64 = arith.constant 12 : index
    %c0_65 = arith.constant 0 : index
    %301 = vector.load %arg14[%c12_64, %c0_65] : memref<16x32xf32, #tpu.memory_space<vmem>>, vector<2x32xf32>
    tpu.vector_store %arg14[%c12_64, %c0_65], %300 {strides = array<i32>} : memref<16x32xf32, #tpu.memory_space<vmem>>, vector<2x32xf32>,
    %302 = vector.extract_strided_slice %7 {offsets = [10, 128], sizes = [2, 128], strides = [1, 1]} : vector<16x256xf32> to vector<2x128xf32>
    %cst_66 = arith.constant dense<0.000000e+00> : vector<2x128xf32>
    %303 = tpu.matmul %300, %4, %cst_66 {dimension_numbers = #tpu.dot_dimension_numbers<[1], [0], [0], [1], [0, 0, 1, 1], [], []>} : vector<2x32xf32>, vector<32x128xf32>, vector<2x128xf32> -> vector<2x128xf32>
    %304 = arith.addf %302, %303 : vector<2x128xf32>
    %305 = vector.extract_strided_slice %304 {offsets = [0, 0], sizes = [2, 32], strides = [1, 1]} : vector<2x128xf32> to vector<2x32xf32>
    %306 = arith.negf %305 : vector<2x32xf32>
    %307 = math.exp %306 : vector<2x32xf32>
    %cst_67 = arith.constant 1.000000e+00 : f32
    %308 = vector.broadcast %cst_67 : f32 to vector<2x32xf32>
    %309 = arith.addf %308, %307 : vector<2x32xf32>
    %310 = arith.divf %308, %309 : vector<2x32xf32>
    %311 = vector.extract_strided_slice %304 {offsets = [0, 32], sizes = [2, 32], strides = [1, 1]} : vector<2x128xf32> to vector<2x32xf32>
    %312 = arith.negf %311 : vector<2x32xf32>
    %313 = math.exp %312 : vector<2x32xf32>
    %cst_68 = arith.constant 1.000000e+00 : f32
    %314 = vector.broadcast %cst_68 : f32 to vector<2x32xf32>
    %315 = arith.addf %314, %313 : vector<2x32xf32>
    %316 = arith.divf %314, %315 : vector<2x32xf32>
    %317 = vector.extract_strided_slice %304 {offsets = [0, 64], sizes = [2, 32], strides = [1, 1]} : vector<2x128xf32> to vector<2x32xf32>
    %318 = math.tanh %317 : vector<2x32xf32>
    %319 = vector.extract_strided_slice %304 {offsets = [0, 96], sizes = [2, 32], strides = [1, 1]} : vector<2x128xf32> to vector<2x32xf32>
    %320 = arith.negf %319 : vector<2x32xf32>
    %321 = math.exp %320 : vector<2x32xf32>
    %cst_69 = arith.constant 1.000000e+00 : f32
    %322 = vector.broadcast %cst_69 : f32 to vector<2x32xf32>
    %323 = arith.addf %322, %321 : vector<2x32xf32>
    %324 = arith.divf %322, %323 : vector<2x32xf32>
    %325 = arith.mulf %316, %298 : vector<2x32xf32>
    %326 = arith.mulf %310, %318 : vector<2x32xf32>
    %327 = arith.addf %325, %326 : vector<2x32xf32>
    %328 = math.tanh %327 : vector<2x32xf32>
    %329 = arith.mulf %324, %328 : vector<2x32xf32>
    %c10_70 = arith.constant 10 : index
    %c0_71 = arith.constant 0 : index
    %330 = vector.load %arg14[%c10_70, %c0_71] : memref<16x32xf32, #tpu.memory_space<vmem>>, vector<2x32xf32>
    tpu.vector_store %arg14[%c10_70, %c0_71], %329 {strides = array<i32>} : memref<16x32xf32, #tpu.memory_space<vmem>>, vector<2x32xf32>,
    %331 = vector.extract_strided_slice %7 {offsets = [8, 128], sizes = [2, 128], strides = [1, 1]} : vector<16x256xf32> to vector<2x128xf32>
    %cst_72 = arith.constant dense<0.000000e+00> : vector<2x128xf32>
    %332 = tpu.matmul %329, %4, %cst_72 {dimension_numbers = #tpu.dot_dimension_numbers<[1], [0], [0], [1], [0, 0, 1, 1], [], []>} : vector<2x32xf32>, vector<32x128xf32>, vector<2x128xf32> -> vector<2x128xf32>
    %333 = arith.addf %331, %332 : vector<2x128xf32>
    %334 = vector.extract_strided_slice %333 {offsets = [0, 0], sizes = [2, 32], strides = [1, 1]} : vector<2x128xf32> to vector<2x32xf32>
    %335 = arith.negf %334 : vector<2x32xf32>
    %336 = math.exp %335 : vector<2x32xf32>
    %cst_73 = arith.constant 1.000000e+00 : f32
    %337 = vector.broadcast %cst_73 : f32 to vector<2x32xf32>
    %338 = arith.addf %337, %336 : vector<2x32xf32>
    %339 = arith.divf %337, %338 : vector<2x32xf32>
    %340 = vector.extract_strided_slice %333 {offsets = [0, 32], sizes = [2, 32], strides = [1, 1]} : vector<2x128xf32> to vector<2x32xf32>
    %341 = arith.negf %340 : vector<2x32xf32>
    %342 = math.exp %341 : vector<2x32xf32>
    %cst_74 = arith.constant 1.000000e+00 : f32
    %343 = vector.broadcast %cst_74 : f32 to vector<2x32xf32>
    %344 = arith.addf %343, %342 : vector<2x32xf32>
    %345 = arith.divf %343, %344 : vector<2x32xf32>
    %346 = vector.extract_strided_slice %333 {offsets = [0, 64], sizes = [2, 32], strides = [1, 1]} : vector<2x128xf32> to vector<2x32xf32>
    %347 = math.tanh %346 : vector<2x32xf32>
    %348 = vector.extract_strided_slice %333 {offsets = [0, 96], sizes = [2, 32], strides = [1, 1]} : vector<2x128xf32> to vector<2x32xf32>
    %349 = arith.negf %348 : vector<2x32xf32>
    %350 = math.exp %349 : vector<2x32xf32>
    %cst_75 = arith.constant 1.000000e+00 : f32
    %351 = vector.broadcast %cst_75 : f32 to vector<2x32xf32>
    %352 = arith.addf %351, %350 : vector<2x32xf32>
    %353 = arith.divf %351, %352 : vector<2x32xf32>
    %354 = arith.mulf %345, %327 : vector<2x32xf32>
    %355 = arith.mulf %339, %347 : vector<2x32xf32>
    %356 = arith.addf %354, %355 : vector<2x32xf32>
    %357 = math.tanh %356 : vector<2x32xf32>
    %358 = arith.mulf %353, %357 : vector<2x32xf32>
    %c8_76 = arith.constant 8 : index
    %c0_77 = arith.constant 0 : index
    %359 = vector.load %arg14[%c8_76, %c0_77] : memref<16x32xf32, #tpu.memory_space<vmem>>, vector<2x32xf32>
    tpu.vector_store %arg14[%c8_76, %c0_77], %358 {strides = array<i32>} : memref<16x32xf32, #tpu.memory_space<vmem>>, vector<2x32xf32>,
    %360 = vector.extract_strided_slice %7 {offsets = [6, 128], sizes = [2, 128], strides = [1, 1]} : vector<16x256xf32> to vector<2x128xf32>
    %cst_78 = arith.constant dense<0.000000e+00> : vector<2x128xf32>
    %361 = tpu.matmul %358, %4, %cst_78 {dimension_numbers = #tpu.dot_dimension_numbers<[1], [0], [0], [1], [0, 0, 1, 1], [], []>} : vector<2x32xf32>, vector<32x128xf32>, vector<2x128xf32> -> vector<2x128xf32>
    %362 = arith.addf %360, %361 : vector<2x128xf32>
    %363 = vector.extract_strided_slice %362 {offsets = [0, 0], sizes = [2, 32], strides = [1, 1]} : vector<2x128xf32> to vector<2x32xf32>
    %364 = arith.negf %363 : vector<2x32xf32>
    %365 = math.exp %364 : vector<2x32xf32>
    %cst_79 = arith.constant 1.000000e+00 : f32
    %366 = vector.broadcast %cst_79 : f32 to vector<2x32xf32>
    %367 = arith.addf %366, %365 : vector<2x32xf32>
    %368 = arith.divf %366, %367 : vector<2x32xf32>
    %369 = vector.extract_strided_slice %362 {offsets = [0, 32], sizes = [2, 32], strides = [1, 1]} : vector<2x128xf32> to vector<2x32xf32>
    %370 = arith.negf %369 : vector<2x32xf32>
    %371 = math.exp %370 : vector<2x32xf32>
    %cst_80 = arith.constant 1.000000e+00 : f32
    %372 = vector.broadcast %cst_80 : f32 to vector<2x32xf32>
    %373 = arith.addf %372, %371 : vector<2x32xf32>
    %374 = arith.divf %372, %373 : vector<2x32xf32>
    %375 = vector.extract_strided_slice %362 {offsets = [0, 64], sizes = [2, 32], strides = [1, 1]} : vector<2x128xf32> to vector<2x32xf32>
    %376 = math.tanh %375 : vector<2x32xf32>
    %377 = vector.extract_strided_slice %362 {offsets = [0, 96], sizes = [2, 32], strides = [1, 1]} : vector<2x128xf32> to vector<2x32xf32>
    %378 = arith.negf %377 : vector<2x32xf32>
    %379 = math.exp %378 : vector<2x32xf32>
    %cst_81 = arith.constant 1.000000e+00 : f32
    %380 = vector.broadcast %cst_81 : f32 to vector<2x32xf32>
    %381 = arith.addf %380, %379 : vector<2x32xf32>
    %382 = arith.divf %380, %381 : vector<2x32xf32>
    %383 = arith.mulf %374, %356 : vector<2x32xf32>
    %384 = arith.mulf %368, %376 : vector<2x32xf32>
    %385 = arith.addf %383, %384 : vector<2x32xf32>
    %386 = math.tanh %385 : vector<2x32xf32>
    %387 = arith.mulf %382, %386 : vector<2x32xf32>
    %c6_82 = arith.constant 6 : index
    %c0_83 = arith.constant 0 : index
    %388 = vector.load %arg14[%c6_82, %c0_83] : memref<16x32xf32, #tpu.memory_space<vmem>>, vector<2x32xf32>
    tpu.vector_store %arg14[%c6_82, %c0_83], %387 {strides = array<i32>} : memref<16x32xf32, #tpu.memory_space<vmem>>, vector<2x32xf32>,
    %389 = vector.extract_strided_slice %7 {offsets = [4, 128], sizes = [2, 128], strides = [1, 1]} : vector<16x256xf32> to vector<2x128xf32>
    %cst_84 = arith.constant dense<0.000000e+00> : vector<2x128xf32>
    %390 = tpu.matmul %387, %4, %cst_84 {dimension_numbers = #tpu.dot_dimension_numbers<[1], [0], [0], [1], [0, 0, 1, 1], [], []>} : vector<2x32xf32>, vector<32x128xf32>, vector<2x128xf32> -> vector<2x128xf32>
    %391 = arith.addf %389, %390 : vector<2x128xf32>
    %392 = vector.extract_strided_slice %391 {offsets = [0, 0], sizes = [2, 32], strides = [1, 1]} : vector<2x128xf32> to vector<2x32xf32>
    %393 = arith.negf %392 : vector<2x32xf32>
    %394 = math.exp %393 : vector<2x32xf32>
    %cst_85 = arith.constant 1.000000e+00 : f32
    %395 = vector.broadcast %cst_85 : f32 to vector<2x32xf32>
    %396 = arith.addf %395, %394 : vector<2x32xf32>
    %397 = arith.divf %395, %396 : vector<2x32xf32>
    %398 = vector.extract_strided_slice %391 {offsets = [0, 32], sizes = [2, 32], strides = [1, 1]} : vector<2x128xf32> to vector<2x32xf32>
    %399 = arith.negf %398 : vector<2x32xf32>
    %400 = math.exp %399 : vector<2x32xf32>
    %cst_86 = arith.constant 1.000000e+00 : f32
    %401 = vector.broadcast %cst_86 : f32 to vector<2x32xf32>
    %402 = arith.addf %401, %400 : vector<2x32xf32>
    %403 = arith.divf %401, %402 : vector<2x32xf32>
    %404 = vector.extract_strided_slice %391 {offsets = [0, 64], sizes = [2, 32], strides = [1, 1]} : vector<2x128xf32> to vector<2x32xf32>
    %405 = math.tanh %404 : vector<2x32xf32>
    %406 = vector.extract_strided_slice %391 {offsets = [0, 96], sizes = [2, 32], strides = [1, 1]} : vector<2x128xf32> to vector<2x32xf32>
    %407 = arith.negf %406 : vector<2x32xf32>
    %408 = math.exp %407 : vector<2x32xf32>
    %cst_87 = arith.constant 1.000000e+00 : f32
    %409 = vector.broadcast %cst_87 : f32 to vector<2x32xf32>
    %410 = arith.addf %409, %408 : vector<2x32xf32>
    %411 = arith.divf %409, %410 : vector<2x32xf32>
    %412 = arith.mulf %403, %385 : vector<2x32xf32>
    %413 = arith.mulf %397, %405 : vector<2x32xf32>
    %414 = arith.addf %412, %413 : vector<2x32xf32>
    %415 = math.tanh %414 : vector<2x32xf32>
    %416 = arith.mulf %411, %415 : vector<2x32xf32>
    %c4_88 = arith.constant 4 : index
    %c0_89 = arith.constant 0 : index
    %417 = vector.load %arg14[%c4_88, %c0_89] : memref<16x32xf32, #tpu.memory_space<vmem>>, vector<2x32xf32>
    tpu.vector_store %arg14[%c4_88, %c0_89], %416 {strides = array<i32>} : memref<16x32xf32, #tpu.memory_space<vmem>>, vector<2x32xf32>,
    %418 = vector.extract_strided_slice %7 {offsets = [2, 128], sizes = [2, 128], strides = [1, 1]} : vector<16x256xf32> to vector<2x128xf32>
    %cst_90 = arith.constant dense<0.000000e+00> : vector<2x128xf32>
    %419 = tpu.matmul %416, %4, %cst_90 {dimension_numbers = #tpu.dot_dimension_numbers<[1], [0], [0], [1], [0, 0, 1, 1], [], []>} : vector<2x32xf32>, vector<32x128xf32>, vector<2x128xf32> -> vector<2x128xf32>
    %420 = arith.addf %418, %419 : vector<2x128xf32>
    %421 = vector.extract_strided_slice %420 {offsets = [0, 0], sizes = [2, 32], strides = [1, 1]} : vector<2x128xf32> to vector<2x32xf32>
    %422 = arith.negf %421 : vector<2x32xf32>
    %423 = math.exp %422 : vector<2x32xf32>
    %cst_91 = arith.constant 1.000000e+00 : f32
    %424 = vector.broadcast %cst_91 : f32 to vector<2x32xf32>
    %425 = arith.addf %424, %423 : vector<2x32xf32>
    %426 = arith.divf %424, %425 : vector<2x32xf32>
    %427 = vector.extract_strided_slice %420 {offsets = [0, 32], sizes = [2, 32], strides = [1, 1]} : vector<2x128xf32> to vector<2x32xf32>
    %428 = arith.negf %427 : vector<2x32xf32>
    %429 = math.exp %428 : vector<2x32xf32>
    %cst_92 = arith.constant 1.000000e+00 : f32
    %430 = vector.broadcast %cst_92 : f32 to vector<2x32xf32>
    %431 = arith.addf %430, %429 : vector<2x32xf32>
    %432 = arith.divf %430, %431 : vector<2x32xf32>
    %433 = vector.extract_strided_slice %420 {offsets = [0, 64], sizes = [2, 32], strides = [1, 1]} : vector<2x128xf32> to vector<2x32xf32>
    %434 = math.tanh %433 : vector<2x32xf32>
    %435 = vector.extract_strided_slice %420 {offsets = [0, 96], sizes = [2, 32], strides = [1, 1]} : vector<2x128xf32> to vector<2x32xf32>
    %436 = arith.negf %435 : vector<2x32xf32>
    %437 = math.exp %436 : vector<2x32xf32>
    %cst_93 = arith.constant 1.000000e+00 : f32
    %438 = vector.broadcast %cst_93 : f32 to vector<2x32xf32>
    %439 = arith.addf %438, %437 : vector<2x32xf32>
    %440 = arith.divf %438, %439 : vector<2x32xf32>
    %441 = arith.mulf %432, %414 : vector<2x32xf32>
    %442 = arith.mulf %426, %434 : vector<2x32xf32>
    %443 = arith.addf %441, %442 : vector<2x32xf32>
    %444 = math.tanh %443 : vector<2x32xf32>
    %445 = arith.mulf %440, %444 : vector<2x32xf32>
    %c2_94 = arith.constant 2 : index
    %c0_95 = arith.constant 0 : index
    %446 = vector.load %arg14[%c2_94, %c0_95] : memref<16x32xf32, #tpu.memory_space<vmem>>, vector<2x32xf32>
    tpu.vector_store %arg14[%c2_94, %c0_95], %445 {strides = array<i32>} : memref<16x32xf32, #tpu.memory_space<vmem>>, vector<2x32xf32>,
    %447 = vector.extract_strided_slice %7 {offsets = [0, 128], sizes = [2, 128], strides = [1, 1]} : vector<16x256xf32> to vector<2x128xf32>
    %cst_96 = arith.constant dense<0.000000e+00> : vector<2x128xf32>
    %448 = tpu.matmul %445, %4, %cst_96 {dimension_numbers = #tpu.dot_dimension_numbers<[1], [0], [0], [1], [0, 0, 1, 1], [], []>} : vector<2x32xf32>, vector<32x128xf32>, vector<2x128xf32> -> vector<2x128xf32>
    %449 = arith.addf %447, %448 : vector<2x128xf32>
    %450 = vector.extract_strided_slice %449 {offsets = [0, 0], sizes = [2, 32], strides = [1, 1]} : vector<2x128xf32> to vector<2x32xf32>
    %451 = arith.negf %450 : vector<2x32xf32>
    %452 = math.exp %451 : vector<2x32xf32>
    %cst_97 = arith.constant 1.000000e+00 : f32
    %453 = vector.broadcast %cst_97 : f32 to vector<2x32xf32>
    %454 = arith.addf %453, %452 : vector<2x32xf32>
    %455 = arith.divf %453, %454 : vector<2x32xf32>
    %456 = vector.extract_strided_slice %449 {offsets = [0, 32], sizes = [2, 32], strides = [1, 1]} : vector<2x128xf32> to vector<2x32xf32>
    %457 = arith.negf %456 : vector<2x32xf32>
    %458 = math.exp %457 : vector<2x32xf32>
    %cst_98 = arith.constant 1.000000e+00 : f32
    %459 = vector.broadcast %cst_98 : f32 to vector<2x32xf32>
    %460 = arith.addf %459, %458 : vector<2x32xf32>
    %461 = arith.divf %459, %460 : vector<2x32xf32>
    %462 = vector.extract_strided_slice %449 {offsets = [0, 64], sizes = [2, 32], strides = [1, 1]} : vector<2x128xf32> to vector<2x32xf32>
    %463 = math.tanh %462 : vector<2x32xf32>
    %464 = vector.extract_strided_slice %449 {offsets = [0, 96], sizes = [2, 32], strides = [1, 1]} : vector<2x128xf32> to vector<2x32xf32>
    %465 = arith.negf %464 : vector<2x32xf32>
    %466 = math.exp %465 : vector<2x32xf32>
    %cst_99 = arith.constant 1.000000e+00 : f32
    %467 = vector.broadcast %cst_99 : f32 to vector<2x32xf32>
    %468 = arith.addf %467, %466 : vector<2x32xf32>
    %469 = arith.divf %467, %468 : vector<2x32xf32>
    %470 = arith.mulf %461, %443 : vector<2x32xf32>
    %471 = arith.mulf %455, %463 : vector<2x32xf32>
    %472 = arith.addf %470, %471 : vector<2x32xf32>
    %473 = math.tanh %472 : vector<2x32xf32>
    %474 = arith.mulf %469, %473 : vector<2x32xf32>
    %c0_100 = arith.constant 0 : index
    %c0_101 = arith.constant 0 : index
    %475 = vector.load %arg14[%c0_100, %c0_101] : memref<16x32xf32, #tpu.memory_space<vmem>>, vector<2x32xf32>
    tpu.vector_store %arg14[%c0_100, %c0_101], %474 {strides = array<i32>} : memref<16x32xf32, #tpu.memory_space<vmem>>, vector<2x32xf32>,
    %c0_102 = arith.constant 0 : index
    %c0_103 = arith.constant 0 : index
    %476 = vector.load %arg13[%c0_102, %c0_103] : memref<16x32xf32, #tpu.memory_space<vmem>>, vector<16x32xf32>
    %c0_104 = arith.constant 0 : index
    %c0_105 = arith.constant 0 : index
    %477 = vector.load %arg14[%c0_104, %c0_105] : memref<16x32xf32, #tpu.memory_space<vmem>>, vector<16x32xf32>
    %478 = tpu.concatenate %476, %477 in 1 : vector<16x32xf32>, vector<16x32xf32> -> vector<16x64xf32>
    %c0_106 = arith.constant 0 : index
    %c0_107 = arith.constant 0 : index
    %479 = vector.load %arg6[%c0_106, %c0_107] : memref<64x256xf32, #tpu.memory_space<vmem>>, vector<64x256xf32>
    %c0_108 = arith.constant 0 : index
    %c0_109 = arith.constant 0 : index
    %480 = vector.load %arg7[%c0_108, %c0_109] : memref<1x256xf32, #tpu.memory_space<vmem>>, vector<1x256xf32>
    %c0_110 = arith.constant 0 : index
    %c0_111 = arith.constant 0 : index
    %481 = vector.load %arg9[%c0_110, %c0_111] : memref<32x128xf32, #tpu.memory_space<vmem>>, vector<32x128xf32>
    %cst_112 = arith.constant dense<0.000000e+00> : vector<16x256xf32>
    %482 = tpu.matmul %478, %479, %cst_112 {dimension_numbers = #tpu.dot_dimension_numbers<[1], [0], [0], [1], [0, 0, 1, 1], [], []>} : vector<16x64xf32>, vector<64x256xf32>, vector<16x256xf32> -> vector<16x256xf32>
    %483 = vector.broadcast %480 : vector<1x256xf32> to vector<16x256xf32>
    %484 = arith.addf %482, %483 : vector<16x256xf32>
    %cst_113 = arith.constant 0.000000e+00 : f32
    %485 = vector.broadcast %cst_113 : f32 to vector<2x32xf32>
    %cst_114 = arith.constant 0.000000e+00 : f32
    %486 = vector.broadcast %cst_114 : f32 to vector<2x32xf32>
    %487 = vector.extract_strided_slice %484 {offsets = [14, 128], sizes = [2, 128], strides = [1, 1]} : vector<16x256xf32> to vector<2x128xf32>
    %cst_115 = arith.constant dense<0.000000e+00> : vector<2x128xf32>
    %488 = tpu.matmul %485, %481, %cst_115 {dimension_numbers = #tpu.dot_dimension_numbers<[1], [0], [0], [1], [0, 0, 1, 1], [], []>} : vector<2x32xf32>, vector<32x128xf32>, vector<2x128xf32> -> vector<2x128xf32>
    %489 = arith.addf %487, %488 : vector<2x128xf32>
    %490 = vector.extract_strided_slice %489 {offsets = [0, 0], sizes = [2, 32], strides = [1, 1]} : vector<2x128xf32> to vector<2x32xf32>
    %491 = arith.negf %490 : vector<2x32xf32>
    %492 = math.exp %491 : vector<2x32xf32>
    %cst_116 = arith.constant 1.000000e+00 : f32
    %493 = vector.broadcast %cst_116 : f32 to vector<2x32xf32>
    %494 = arith.addf %493, %492 : vector<2x32xf32>
    %495 = arith.divf %493, %494 : vector<2x32xf32>
    %496 = vector.extract_strided_slice %489 {offsets = [0, 32], sizes = [2, 32], strides = [1, 1]} : vector<2x128xf32> to vector<2x32xf32>
    %497 = arith.negf %496 : vector<2x32xf32>
    %498 = math.exp %497 : vector<2x32xf32>
    %cst_117 = arith.constant 1.000000e+00 : f32
    %499 = vector.broadcast %cst_117 : f32 to vector<2x32xf32>
    %500 = arith.addf %499, %498 : vector<2x32xf32>
    %501 = arith.divf %499, %500 : vector<2x32xf32>
    %502 = vector.extract_strided_slice %489 {offsets = [0, 64], sizes = [2, 32], strides = [1, 1]} : vector<2x128xf32> to vector<2x32xf32>
    %503 = math.tanh %502 : vector<2x32xf32>
    %504 = vector.extract_strided_slice %489 {offsets = [0, 96], sizes = [2, 32], strides = [1, 1]} : vector<2x128xf32> to vector<2x32xf32>
    %505 = arith.negf %504 : vector<2x32xf32>
    %506 = math.exp %505 : vector<2x32xf32>
    %cst_118 = arith.constant 1.000000e+00 : f32
    %507 = vector.broadcast %cst_118 : f32 to vector<2x32xf32>
    %508 = arith.addf %507, %506 : vector<2x32xf32>
    %509 = arith.divf %507, %508 : vector<2x32xf32>
    %510 = arith.mulf %501, %486 : vector<2x32xf32>
    %511 = arith.mulf %495, %503 : vector<2x32xf32>
    %512 = arith.addf %510, %511 : vector<2x32xf32>
    %513 = math.tanh %512 : vector<2x32xf32>
    %514 = arith.mulf %509, %513 : vector<2x32xf32>
    %515 = vector.extract_strided_slice %484 {offsets = [12, 128], sizes = [2, 128], strides = [1, 1]} : vector<16x256xf32> to vector<2x128xf32>
    %cst_119 = arith.constant dense<0.000000e+00> : vector<2x128xf32>
    %516 = tpu.matmul %514, %481, %cst_119 {dimension_numbers = #tpu.dot_dimension_numbers<[1], [0], [0], [1], [0, 0, 1, 1], [], []>} : vector<2x32xf32>, vector<32x128xf32>, vector<2x128xf32> -> vector<2x128xf32>
    %517 = arith.addf %515, %516 : vector<2x128xf32>
    %518 = vector.extract_strided_slice %517 {offsets = [0, 0], sizes = [2, 32], strides = [1, 1]} : vector<2x128xf32> to vector<2x32xf32>
    %519 = arith.negf %518 : vector<2x32xf32>
    %520 = math.exp %519 : vector<2x32xf32>
    %cst_120 = arith.constant 1.000000e+00 : f32
    %521 = vector.broadcast %cst_120 : f32 to vector<2x32xf32>
    %522 = arith.addf %521, %520 : vector<2x32xf32>
    %523 = arith.divf %521, %522 : vector<2x32xf32>
    %524 = vector.extract_strided_slice %517 {offsets = [0, 32], sizes = [2, 32], strides = [1, 1]} : vector<2x128xf32> to vector<2x32xf32>
    %525 = arith.negf %524 : vector<2x32xf32>
    %526 = math.exp %525 : vector<2x32xf32>
    %cst_121 = arith.constant 1.000000e+00 : f32
    %527 = vector.broadcast %cst_121 : f32 to vector<2x32xf32>
    %528 = arith.addf %527, %526 : vector<2x32xf32>
    %529 = arith.divf %527, %528 : vector<2x32xf32>
    %530 = vector.extract_strided_slice %517 {offsets = [0, 64], sizes = [2, 32], strides = [1, 1]} : vector<2x128xf32> to vector<2x32xf32>
    %531 = math.tanh %530 : vector<2x32xf32>
    %532 = vector.extract_strided_slice %517 {offsets = [0, 96], sizes = [2, 32], strides = [1, 1]} : vector<2x128xf32> to vector<2x32xf32>
    %533 = arith.negf %532 : vector<2x32xf32>
    %534 = math.exp %533 : vector<2x32xf32>
    %cst_122 = arith.constant 1.000000e+00 : f32
    %535 = vector.broadcast %cst_122 : f32 to vector<2x32xf32>
    %536 = arith.addf %535, %534 : vector<2x32xf32>
    %537 = arith.divf %535, %536 : vector<2x32xf32>
    %538 = arith.mulf %529, %512 : vector<2x32xf32>
    %539 = arith.mulf %523, %531 : vector<2x32xf32>
    %540 = arith.addf %538, %539 : vector<2x32xf32>
    %541 = math.tanh %540 : vector<2x32xf32>
    %542 = arith.mulf %537, %541 : vector<2x32xf32>
    %543 = vector.extract_strided_slice %484 {offsets = [10, 128], sizes = [2, 128], strides = [1, 1]} : vector<16x256xf32> to vector<2x128xf32>
    %cst_123 = arith.constant dense<0.000000e+00> : vector<2x128xf32>
    %544 = tpu.matmul %542, %481, %cst_123 {dimension_numbers = #tpu.dot_dimension_numbers<[1], [0], [0], [1], [0, 0, 1, 1], [], []>} : vector<2x32xf32>, vector<32x128xf32>, vector<2x128xf32> -> vector<2x128xf32>
    %545 = arith.addf %543, %544 : vector<2x128xf32>
    %546 = vector.extract_strided_slice %545 {offsets = [0, 0], sizes = [2, 32], strides = [1, 1]} : vector<2x128xf32> to vector<2x32xf32>
    %547 = arith.negf %546 : vector<2x32xf32>
    %548 = math.exp %547 : vector<2x32xf32>
    %cst_124 = arith.constant 1.000000e+00 : f32
    %549 = vector.broadcast %cst_124 : f32 to vector<2x32xf32>
    %550 = arith.addf %549, %548 : vector<2x32xf32>
    %551 = arith.divf %549, %550 : vector<2x32xf32>
    %552 = vector.extract_strided_slice %545 {offsets = [0, 32], sizes = [2, 32], strides = [1, 1]} : vector<2x128xf32> to vector<2x32xf32>
    %553 = arith.negf %552 : vector<2x32xf32>
    %554 = math.exp %553 : vector<2x32xf32>
    %cst_125 = arith.constant 1.000000e+00 : f32
    %555 = vector.broadcast %cst_125 : f32 to vector<2x32xf32>
    %556 = arith.addf %555, %554 : vector<2x32xf32>
    %557 = arith.divf %555, %556 : vector<2x32xf32>
    %558 = vector.extract_strided_slice %545 {offsets = [0, 64], sizes = [2, 32], strides = [1, 1]} : vector<2x128xf32> to vector<2x32xf32>
    %559 = math.tanh %558 : vector<2x32xf32>
    %560 = vector.extract_strided_slice %545 {offsets = [0, 96], sizes = [2, 32], strides = [1, 1]} : vector<2x128xf32> to vector<2x32xf32>
    %561 = arith.negf %560 : vector<2x32xf32>
    %562 = math.exp %561 : vector<2x32xf32>
    %cst_126 = arith.constant 1.000000e+00 : f32
    %563 = vector.broadcast %cst_126 : f32 to vector<2x32xf32>
    %564 = arith.addf %563, %562 : vector<2x32xf32>
    %565 = arith.divf %563, %564 : vector<2x32xf32>
    %566 = arith.mulf %557, %540 : vector<2x32xf32>
    %567 = arith.mulf %551, %559 : vector<2x32xf32>
    %568 = arith.addf %566, %567 : vector<2x32xf32>
    %569 = math.tanh %568 : vector<2x32xf32>
    %570 = arith.mulf %565, %569 : vector<2x32xf32>
    %571 = vector.extract_strided_slice %484 {offsets = [8, 128], sizes = [2, 128], strides = [1, 1]} : vector<16x256xf32> to vector<2x128xf32>
    %cst_127 = arith.constant dense<0.000000e+00> : vector<2x128xf32>
    %572 = tpu.matmul %570, %481, %cst_127 {dimension_numbers = #tpu.dot_dimension_numbers<[1], [0], [0], [1], [0, 0, 1, 1], [], []>} : vector<2x32xf32>, vector<32x128xf32>, vector<2x128xf32> -> vector<2x128xf32>
    %573 = arith.addf %571, %572 : vector<2x128xf32>
    %574 = vector.extract_strided_slice %573 {offsets = [0, 0], sizes = [2, 32], strides = [1, 1]} : vector<2x128xf32> to vector<2x32xf32>
    %575 = arith.negf %574 : vector<2x32xf32>
    %576 = math.exp %575 : vector<2x32xf32>
    %cst_128 = arith.constant 1.000000e+00 : f32
    %577 = vector.broadcast %cst_128 : f32 to vector<2x32xf32>
    %578 = arith.addf %577, %576 : vector<2x32xf32>
    %579 = arith.divf %577, %578 : vector<2x32xf32>
    %580 = vector.extract_strided_slice %573 {offsets = [0, 32], sizes = [2, 32], strides = [1, 1]} : vector<2x128xf32> to vector<2x32xf32>
    %581 = arith.negf %580 : vector<2x32xf32>
    %582 = math.exp %581 : vector<2x32xf32>
    %cst_129 = arith.constant 1.000000e+00 : f32
    %583 = vector.broadcast %cst_129 : f32 to vector<2x32xf32>
    %584 = arith.addf %583, %582 : vector<2x32xf32>
    %585 = arith.divf %583, %584 : vector<2x32xf32>
    %586 = vector.extract_strided_slice %573 {offsets = [0, 64], sizes = [2, 32], strides = [1, 1]} : vector<2x128xf32> to vector<2x32xf32>
    %587 = math.tanh %586 : vector<2x32xf32>
    %588 = vector.extract_strided_slice %573 {offsets = [0, 96], sizes = [2, 32], strides = [1, 1]} : vector<2x128xf32> to vector<2x32xf32>
    %589 = arith.negf %588 : vector<2x32xf32>
    %590 = math.exp %589 : vector<2x32xf32>
    %cst_130 = arith.constant 1.000000e+00 : f32
    %591 = vector.broadcast %cst_130 : f32 to vector<2x32xf32>
    %592 = arith.addf %591, %590 : vector<2x32xf32>
    %593 = arith.divf %591, %592 : vector<2x32xf32>
    %594 = arith.mulf %585, %568 : vector<2x32xf32>
    %595 = arith.mulf %579, %587 : vector<2x32xf32>
    %596 = arith.addf %594, %595 : vector<2x32xf32>
    %597 = math.tanh %596 : vector<2x32xf32>
    %598 = arith.mulf %593, %597 : vector<2x32xf32>
    %599 = vector.extract_strided_slice %484 {offsets = [6, 128], sizes = [2, 128], strides = [1, 1]} : vector<16x256xf32> to vector<2x128xf32>
    %cst_131 = arith.constant dense<0.000000e+00> : vector<2x128xf32>
    %600 = tpu.matmul %598, %481, %cst_131 {dimension_numbers = #tpu.dot_dimension_numbers<[1], [0], [0], [1], [0, 0, 1, 1], [], []>} : vector<2x32xf32>, vector<32x128xf32>, vector<2x128xf32> -> vector<2x128xf32>
    %601 = arith.addf %599, %600 : vector<2x128xf32>
    %602 = vector.extract_strided_slice %601 {offsets = [0, 0], sizes = [2, 32], strides = [1, 1]} : vector<2x128xf32> to vector<2x32xf32>
    %603 = arith.negf %602 : vector<2x32xf32>
    %604 = math.exp %603 : vector<2x32xf32>
    %cst_132 = arith.constant 1.000000e+00 : f32
    %605 = vector.broadcast %cst_132 : f32 to vector<2x32xf32>
    %606 = arith.addf %605, %604 : vector<2x32xf32>
    %607 = arith.divf %605, %606 : vector<2x32xf32>
    %608 = vector.extract_strided_slice %601 {offsets = [0, 32], sizes = [2, 32], strides = [1, 1]} : vector<2x128xf32> to vector<2x32xf32>
    %609 = arith.negf %608 : vector<2x32xf32>
    %610 = math.exp %609 : vector<2x32xf32>
    %cst_133 = arith.constant 1.000000e+00 : f32
    %611 = vector.broadcast %cst_133 : f32 to vector<2x32xf32>
    %612 = arith.addf %611, %610 : vector<2x32xf32>
    %613 = arith.divf %611, %612 : vector<2x32xf32>
    %614 = vector.extract_strided_slice %601 {offsets = [0, 64], sizes = [2, 32], strides = [1, 1]} : vector<2x128xf32> to vector<2x32xf32>
    %615 = math.tanh %614 : vector<2x32xf32>
    %616 = vector.extract_strided_slice %601 {offsets = [0, 96], sizes = [2, 32], strides = [1, 1]} : vector<2x128xf32> to vector<2x32xf32>
    %617 = arith.negf %616 : vector<2x32xf32>
    %618 = math.exp %617 : vector<2x32xf32>
    %cst_134 = arith.constant 1.000000e+00 : f32
    %619 = vector.broadcast %cst_134 : f32 to vector<2x32xf32>
    %620 = arith.addf %619, %618 : vector<2x32xf32>
    %621 = arith.divf %619, %620 : vector<2x32xf32>
    %622 = arith.mulf %613, %596 : vector<2x32xf32>
    %623 = arith.mulf %607, %615 : vector<2x32xf32>
    %624 = arith.addf %622, %623 : vector<2x32xf32>
    %625 = math.tanh %624 : vector<2x32xf32>
    %626 = arith.mulf %621, %625 : vector<2x32xf32>
    %627 = vector.extract_strided_slice %484 {offsets = [4, 128], sizes = [2, 128], strides = [1, 1]} : vector<16x256xf32> to vector<2x128xf32>
    %cst_135 = arith.constant dense<0.000000e+00> : vector<2x128xf32>
    %628 = tpu.matmul %626, %481, %cst_135 {dimension_numbers = #tpu.dot_dimension_numbers<[1], [0], [0], [1], [0, 0, 1, 1], [], []>} : vector<2x32xf32>, vector<32x128xf32>, vector<2x128xf32> -> vector<2x128xf32>
    %629 = arith.addf %627, %628 : vector<2x128xf32>
    %630 = vector.extract_strided_slice %629 {offsets = [0, 0], sizes = [2, 32], strides = [1, 1]} : vector<2x128xf32> to vector<2x32xf32>
    %631 = arith.negf %630 : vector<2x32xf32>
    %632 = math.exp %631 : vector<2x32xf32>
    %cst_136 = arith.constant 1.000000e+00 : f32
    %633 = vector.broadcast %cst_136 : f32 to vector<2x32xf32>
    %634 = arith.addf %633, %632 : vector<2x32xf32>
    %635 = arith.divf %633, %634 : vector<2x32xf32>
    %636 = vector.extract_strided_slice %629 {offsets = [0, 32], sizes = [2, 32], strides = [1, 1]} : vector<2x128xf32> to vector<2x32xf32>
    %637 = arith.negf %636 : vector<2x32xf32>
    %638 = math.exp %637 : vector<2x32xf32>
    %cst_137 = arith.constant 1.000000e+00 : f32
    %639 = vector.broadcast %cst_137 : f32 to vector<2x32xf32>
    %640 = arith.addf %639, %638 : vector<2x32xf32>
    %641 = arith.divf %639, %640 : vector<2x32xf32>
    %642 = vector.extract_strided_slice %629 {offsets = [0, 64], sizes = [2, 32], strides = [1, 1]} : vector<2x128xf32> to vector<2x32xf32>
    %643 = math.tanh %642 : vector<2x32xf32>
    %644 = vector.extract_strided_slice %629 {offsets = [0, 96], sizes = [2, 32], strides = [1, 1]} : vector<2x128xf32> to vector<2x32xf32>
    %645 = arith.negf %644 : vector<2x32xf32>
    %646 = math.exp %645 : vector<2x32xf32>
    %cst_138 = arith.constant 1.000000e+00 : f32
    %647 = vector.broadcast %cst_138 : f32 to vector<2x32xf32>
    %648 = arith.addf %647, %646 : vector<2x32xf32>
    %649 = arith.divf %647, %648 : vector<2x32xf32>
    %650 = arith.mulf %641, %624 : vector<2x32xf32>
    %651 = arith.mulf %635, %643 : vector<2x32xf32>
    %652 = arith.addf %650, %651 : vector<2x32xf32>
    %653 = math.tanh %652 : vector<2x32xf32>
    %654 = arith.mulf %649, %653 : vector<2x32xf32>
    %655 = vector.extract_strided_slice %484 {offsets = [2, 128], sizes = [2, 128], strides = [1, 1]} : vector<16x256xf32> to vector<2x128xf32>
    %cst_139 = arith.constant dense<0.000000e+00> : vector<2x128xf32>
    %656 = tpu.matmul %654, %481, %cst_139 {dimension_numbers = #tpu.dot_dimension_numbers<[1], [0], [0], [1], [0, 0, 1, 1], [], []>} : vector<2x32xf32>, vector<32x128xf32>, vector<2x128xf32> -> vector<2x128xf32>
    %657 = arith.addf %655, %656 : vector<2x128xf32>
    %658 = vector.extract_strided_slice %657 {offsets = [0, 0], sizes = [2, 32], strides = [1, 1]} : vector<2x128xf32> to vector<2x32xf32>
    %659 = arith.negf %658 : vector<2x32xf32>
    %660 = math.exp %659 : vector<2x32xf32>
    %cst_140 = arith.constant 1.000000e+00 : f32
    %661 = vector.broadcast %cst_140 : f32 to vector<2x32xf32>
    %662 = arith.addf %661, %660 : vector<2x32xf32>
    %663 = arith.divf %661, %662 : vector<2x32xf32>
    %664 = vector.extract_strided_slice %657 {offsets = [0, 32], sizes = [2, 32], strides = [1, 1]} : vector<2x128xf32> to vector<2x32xf32>
    %665 = arith.negf %664 : vector<2x32xf32>
    %666 = math.exp %665 : vector<2x32xf32>
    %cst_141 = arith.constant 1.000000e+00 : f32
    %667 = vector.broadcast %cst_141 : f32 to vector<2x32xf32>
    %668 = arith.addf %667, %666 : vector<2x32xf32>
    %669 = arith.divf %667, %668 : vector<2x32xf32>
    %670 = vector.extract_strided_slice %657 {offsets = [0, 64], sizes = [2, 32], strides = [1, 1]} : vector<2x128xf32> to vector<2x32xf32>
    %671 = math.tanh %670 : vector<2x32xf32>
    %672 = vector.extract_strided_slice %657 {offsets = [0, 96], sizes = [2, 32], strides = [1, 1]} : vector<2x128xf32> to vector<2x32xf32>
    %673 = arith.negf %672 : vector<2x32xf32>
    %674 = math.exp %673 : vector<2x32xf32>
    %cst_142 = arith.constant 1.000000e+00 : f32
    %675 = vector.broadcast %cst_142 : f32 to vector<2x32xf32>
    %676 = arith.addf %675, %674 : vector<2x32xf32>
    %677 = arith.divf %675, %676 : vector<2x32xf32>
    %678 = arith.mulf %669, %652 : vector<2x32xf32>
    %679 = arith.mulf %663, %671 : vector<2x32xf32>
    %680 = arith.addf %678, %679 : vector<2x32xf32>
    %681 = math.tanh %680 : vector<2x32xf32>
    %682 = arith.mulf %677, %681 : vector<2x32xf32>
    %683 = vector.extract_strided_slice %484 {offsets = [0, 128], sizes = [2, 128], strides = [1, 1]} : vector<16x256xf32> to vector<2x128xf32>
    %cst_143 = arith.constant dense<0.000000e+00> : vector<2x128xf32>
    %684 = tpu.matmul %682, %481, %cst_143 {dimension_numbers = #tpu.dot_dimension_numbers<[1], [0], [0], [1], [0, 0, 1, 1], [], []>} : vector<2x32xf32>, vector<32x128xf32>, vector<2x128xf32> -> vector<2x128xf32>
    %685 = arith.addf %683, %684 : vector<2x128xf32>
    %686 = vector.extract_strided_slice %685 {offsets = [0, 0], sizes = [2, 32], strides = [1, 1]} : vector<2x128xf32> to vector<2x32xf32>
    %687 = arith.negf %686 : vector<2x32xf32>
    %688 = math.exp %687 : vector<2x32xf32>
    %cst_144 = arith.constant 1.000000e+00 : f32
    %689 = vector.broadcast %cst_144 : f32 to vector<2x32xf32>
    %690 = arith.addf %689, %688 : vector<2x32xf32>
    %691 = arith.divf %689, %690 : vector<2x32xf32>
    %692 = vector.extract_strided_slice %685 {offsets = [0, 32], sizes = [2, 32], strides = [1, 1]} : vector<2x128xf32> to vector<2x32xf32>
    %693 = arith.negf %692 : vector<2x32xf32>
    %694 = math.exp %693 : vector<2x32xf32>
    %cst_145 = arith.constant 1.000000e+00 : f32
    %695 = vector.broadcast %cst_145 : f32 to vector<2x32xf32>
    %696 = arith.addf %695, %694 : vector<2x32xf32>
    %697 = arith.divf %695, %696 : vector<2x32xf32>
    %698 = vector.extract_strided_slice %685 {offsets = [0, 64], sizes = [2, 32], strides = [1, 1]} : vector<2x128xf32> to vector<2x32xf32>
    %699 = math.tanh %698 : vector<2x32xf32>
    %700 = vector.extract_strided_slice %685 {offsets = [0, 96], sizes = [2, 32], strides = [1, 1]} : vector<2x128xf32> to vector<2x32xf32>
    %701 = arith.negf %700 : vector<2x32xf32>
    %702 = math.exp %701 : vector<2x32xf32>
    %cst_146 = arith.constant 1.000000e+00 : f32
    %703 = vector.broadcast %cst_146 : f32 to vector<2x32xf32>
    %704 = arith.addf %703, %702 : vector<2x32xf32>
    %705 = arith.divf %703, %704 : vector<2x32xf32>
    %706 = arith.mulf %697, %680 : vector<2x32xf32>
    %707 = arith.mulf %691, %699 : vector<2x32xf32>
    %708 = arith.addf %706, %707 : vector<2x32xf32>
    %709 = math.tanh %708 : vector<2x32xf32>
    %710 = arith.mulf %705, %709 : vector<2x32xf32>
    %c0_147 = arith.constant 0 : index
    %c0_148 = arith.constant 0 : index
    %711 = vector.load %arg10[%c0_147, %c0_148] : memref<32x128xf32, #tpu.memory_space<vmem>>, vector<32x128xf32>
    %cst_149 = arith.constant dense<0.000000e+00> : vector<2x128xf32>
    %712 = tpu.matmul %710, %711, %cst_149 {dimension_numbers = #tpu.dot_dimension_numbers<[1], [0], [0], [1], [0, 0, 1, 1], [], []>} : vector<2x32xf32>, vector<32x128xf32>, vector<2x128xf32> -> vector<2x128xf32>
    %c0_150 = arith.constant 0 : index
    %c0_151 = arith.constant 0 : index
    %713 = vector.load %arg11[%c0_150, %c0_151] : memref<1x128xf32, #tpu.memory_space<vmem>>, vector<1x128xf32>
    %714 = vector.broadcast %713 : vector<1x128xf32> to vector<2x128xf32>
    %715 = arith.addf %712, %714 : vector<2x128xf32>
    %c0_152 = arith.constant 0 : index
    %c0_153 = arith.constant 0 : index
    %716 = vector.load %arg12[%c0_152, %c0_153] : memref<2x128xf32, #tpu.memory_space<vmem>>, vector<2x128xf32>
    tpu.vector_store %arg12[%c0_152, %c0_153], %715 {strides = array<i32>} : memref<2x128xf32, #tpu.memory_space<vmem>>, vector<2x128xf32>,
    return
  }
  func.func @transform_0(%arg0: i32) -> (i32, i32) {
    %c0_i32 = arith.constant 0 : i32
    %c0_i32_0 = arith.constant 0 : i32
    %c0_i32_1 = arith.constant 0 : i32
    return %c0_i32, %c0_i32_0 : i32, i32
  }
  func.func @transform_1(%arg0: i32) -> (i32, i32) {
    %c0_i32 = arith.constant 0 : i32
    %c0_i32_0 = arith.constant 0 : i32
    %c0_i32_1 = arith.constant 0 : i32
    return %c0_i32, %c0_i32_0 : i32, i32
  }
  func.func @transform_2(%arg0: i32) -> (i32, i32) {
    %c0_i32 = arith.constant 0 : i32
    %c0_i32_0 = arith.constant 0 : i32
    %c0_i32_1 = arith.constant 0 : i32
    return %c0_i32, %c0_i32_0 : i32, i32
  }
  func.func @transform_3(%arg0: i32) -> (i32, i32) {
    %c0_i32 = arith.constant 0 : i32
    %c0_i32_0 = arith.constant 0 : i32
    %c0_i32_1 = arith.constant 0 : i32
    return %c0_i32, %c0_i32_0 : i32, i32
  }
  func.func @transform_4(%arg0: i32) -> (i32, i32) {
    %c0_i32 = arith.constant 0 : i32
    %c0_i32_0 = arith.constant 0 : i32
    %c0_i32_1 = arith.constant 0 : i32
    return %c0_i32, %c0_i32_0 : i32, i32
  }
  func.func @transform_5(%arg0: i32) -> (i32, i32) {
    %c0_i32 = arith.constant 0 : i32
    %c0_i32_0 = arith.constant 0 : i32
    %c0_i32_1 = arith.constant 0 : i32
    return %c0_i32, %c0_i32_0 : i32, i32
  }
  func.func @transform_6(%arg0: i32) -> (i32, i32) {
    %c0_i32 = arith.constant 0 : i32
    %c0_i32_0 = arith.constant 0 : i32
    %c0_i32_1 = arith.constant 0 : i32
    return %c0_i32, %c0_i32_0 : i32, i32
  }
  func.func @transform_7(%arg0: i32) -> (i32, i32) {
    %c0_i32 = arith.constant 0 : i32
    %c0_i32_0 = arith.constant 0 : i32
    %c0_i32_1 = arith.constant 0 : i32
    return %c0_i32, %c0_i32_0 : i32, i32
  }
  func.func @transform_8(%arg0: i32) -> (i32, i32) {
    %c0_i32 = arith.constant 0 : i32
    %c0_i32_0 = arith.constant 0 : i32
    %c0_i32_1 = arith.constant 0 : i32
    return %c0_i32, %c0_i32_0 : i32, i32
  }
  func.func @transform_9(%arg0: i32) -> (i32, i32) {
    %c0_i32 = arith.constant 0 : i32
    %c0_i32_0 = arith.constant 0 : i32
    %c0_i32_1 = arith.constant 0 : i32
    return %c0_i32, %c0_i32_0 : i32, i32
  }
  func.func @transform_10(%arg0: i32) -> (i32, i32) {
    %c0_i32 = arith.constant 0 : i32
    %c0_i32_0 = arith.constant 0 : i32
    %c0_i32_1 = arith.constant 0 : i32
    return %c0_i32, %c0_i32_0 : i32, i32
  }
  func.func @transform_11(%arg0: i32) -> (i32, i32) {
    %c0_i32 = arith.constant 0 : i32
    %c0_i32_0 = arith.constant 0 : i32
    %c0_i32_1 = arith.constant 0 : i32
    return %c0_i32, %c0_i32_0 : i32, i32
  }
}

</mosaic_0001>

<bundles_post_ra>
// kernel: tpu_custom_call.1
= control target key start
LH: loop header
LB: loop body
LE: loop exit
PB: predicated region body
PF: predicated region fallthrough
CT: control target
= control target key end

     0   :  { %16 = vsyncpa [#allocation5], 0  ;;  %s4784_s0 = inlined_call_operand.hbm [shape: f32[16,32], index: 0, kind: input, shape index: {}]   ;;  %s4785_s1 = inlined_call_operand.hbm [shape: f32[32,256], index: 1, kind: input, shape index: {}]   ;;  %s4786_s2 = inlined_call_operand.vmem [shape: f32[1,256], index: 2, kind: input, shape index: {}]   ;;  %s4787_s3 = inlined_call_operand.hbm [shape: f32[32,128], index: 3, kind: input, shape index: {}]   ;;  %s4788_s4 = inlined_call_operand.hbm [shape: f32[32,128], index: 4, kind: input, shape index: {}]   ;;  %s4789_s5 = inlined_call_operand.hbm [shape: f32[64,256], index: 5, kind: input, shape index: {}]   ;;  %s4790_s6 = inlined_call_operand.hbm [shape: f32[1,256], index: 6, kind: input, shape index: {}]   ;;  %s4791_s7 = inlined_call_operand.hbm [shape: f32[32,128], index: 7, kind: input, shape index: {}]   ;;  %s4792_s8 = inlined_call_operand.hbm [shape: f32[32,128], index: 8, kind: input, shape index: {}]   ;;  %s4793_s9 = inlined_call_operand.vmem [shape: f32[32,128], index: 9, kind: input, shape index: {}]   ;;  %s4794_s10 = inlined_call_operand.vmem [shape: f32[1,128], index: 10, kind: input, shape index: {}]   ;;  %s4795_s11 = inlined_call_operand.hbm [shape: f32[2,128], index: 11, kind: output, shape index: {}]  }
   0x1   :  { %17 = vsyncpa [#allocation8], 0 }
   0x2   :  { %18 = vsyncpa [#allocation11], 0 }
   0x3   :  { %19 = vsyncpa [#allocation14], 0 }
   0x4   :  { %20 = vsyncpa [#allocation17], 0 }
   0x5   :  { %21 = vsyncpa [#allocation6], 0  ;;  %s4120_s17 = smov [#allocation7]   ;;  %s3910_s21 = scalar_lea.hbm %s4785_s1, 1024 }
   0x6   :  { %s39_s18 = sshll.u32 %s4120_s17, 4  ;;  %p3911_p0 = scmp.ne.s32.totalorder %s4785_s1, %s3910_s21  ;;  %s40_s18 = int_to_ptr.vmem [resolvable:$true] %s39_s18 }
   0x7   :  { %p3914_p1 = scmp.lt.u32.totalorder %s3910_s21, %s4785_s1 }
   0x9   :  { %p3916_p2 = pnand %p3914_p1, %p3911_p0 }
   0xb   :  { %3919 = shalt.err (!%p3916_p2)
}
   0xc   :  { %s3920_s26 = scalar_lea.vmem %s40_s18, 1024  ;;  %p3925_p4 = scmp.lt.s32.totalorder %s40_s18, %s40_s18 }
   0xd   :  { %p3921_p3 = scmp.ne.s32.totalorder %s40_s18, %s3920_s26  ;;  %p3926_p5 = scmp.lt.s32.totalorder %s3920_s26, %s3920_s26 }
   0xf   :  { %p3927_p6 = por %p3926_p5, %p3925_p4 }
  0x11   :  { %p3928_p7 = pnand %p3927_p6, %p3921_p3 }
  0x13   :  { %3931 = shalt.err (!%p3928_p7)
}
  0x14   :  { %s4121_s27 = smov 256   ;;  %s4122_s28 = smov 16  }
  0x15   :  { %45 = dma.hbm_to_vmem [thread:$0]  %s4785_s1, 1024, %s40_s18, [#allocation8], %s4121_s27, %s4121_s27, %s4122_s28  }
  0x16   :  { %s4123_s12 = smov [#allocation10]   ;;  %s4124_s14 = smov [#allocation13]  }
  0x17   :  { %s65_s13 = sshll.u32 %s4123_s12, 4  ;;  %s90_s15 = sshll.u32 %s4124_s14, 4  ;;  %s66_s13 = int_to_ptr.vmem [resolvable:$true] %s65_s13  ;;  %s91_s15 = int_to_ptr.vmem [resolvable:$true] %s90_s15 }
  0x18   :  { %s3932_s19 = scalar_lea.hbm %s4788_s4, 512 }
  0x19   :  { %p3933_p8 = scmp.ne.s32.totalorder %s4788_s4, %s3932_s19  ;;  %p3936_p9 = scmp.lt.u32.totalorder %s3932_s19, %s4788_s4 }
  0x1b   :  { %p3938_p10 = pnand %p3936_p9, %p3933_p8 }
  0x1d   :  { %3941 = shalt.err (!%p3938_p10)
}
  0x1e   :  { %s3942_s1 = scalar_lea.vmem %s66_s13, 512  ;;  %p3947_p12 = scmp.lt.s32.totalorder %s66_s13, %s66_s13 }
  0x1f   :  { %p3943_p11 = scmp.ne.s32.totalorder %s66_s13, %s3942_s1  ;;  %p3948_p13 = scmp.lt.s32.totalorder %s3942_s1, %s3942_s1 }
  0x21   :  { %p3949_p0 = por %p3948_p13, %p3947_p12 }
  0x23   :  { %p3950_p1 = pnand %p3949_p0, %p3943_p11 }
  0x25   :  { %3953 = shalt.err (!%p3950_p1)
}
  0x26   :  { %s4125_s18 = smov 128   ;;  %s4126_s24 = smov 8  }
  0x27   :  { %71 = dma.hbm_to_vmem [thread:$0]  %s4788_s4, 512, %s66_s13, [#allocation11], %s4125_s18, %s4125_s18, %s4126_s24  }
  0x28   :  { %s3954_s12 = scalar_lea.hbm %s4790_s6, 32 }
  0x29   :  { %p3955_p2 = scmp.ne.s32.totalorder %s4790_s6, %s3954_s12  ;;  %p3958_p3 = scmp.lt.u32.totalorder %s3954_s12, %s4790_s6 }
  0x2b   :  { %p3960_p4 = pnand %p3958_p3, %p3955_p2 }
  0x2d   :  { %3963 = shalt.err (!%p3960_p4)
}
  0x2e   :  { %s3964_s20 = scalar_lea.vmem %s91_s15, 32  ;;  %p3969_p6 = scmp.lt.s32.totalorder %s91_s15, %s91_s15 }
  0x2f   :  { %p3965_p5 = scmp.ne.s32.totalorder %s91_s15, %s3964_s20  ;;  %p3970_p7 = scmp.lt.s32.totalorder %s3964_s20, %s3964_s20 }
  0x31   :  { %p3971_p8 = por %p3970_p7, %p3969_p6 }
  0x33   :  { %p3972_p9 = pnand %p3971_p8, %p3965_p5 }
  0x35   :  { %3975 = shalt.err (!%p3972_p9)
}
  0x36   :  { %93 = dma.hbm_to_vmem [thread:$0]  %s4790_s6, 32, %s91_s15, [#allocation14]  }
  0x37   :  { %s4127_s21 = smov [#allocation4]   ;;  %s4128_s23 = smov [#allocation9]  }
  0x38   :  { %s27_s22 = sshll.u32 %s4127_s21, 4  ;;  %s53_s1 = sshll.u32 %s4128_s23, 4  ;;  %s28_s22 = int_to_ptr.vmem [resolvable:$true] %s27_s22  ;;  %s54_s1 = int_to_ptr.vmem [resolvable:$true] %s53_s1 }
  0x39   :  { %s3976_s29 = scalar_lea.hbm %s4784_s0, 256 }
  0x3a   :  { %p3977_p10 = scmp.ne.s32.totalorder %s4784_s0, %s3976_s29  ;;  %p3980_p11 = scmp.lt.u32.totalorder %s3976_s29, %s4784_s0 }
  0x3c   :  { %p3982_p12 = pnand %p3980_p11, %p3977_p10 }
  0x3e   :  { %3985 = shalt.err (!%p3982_p12)
}
  0x3f   :  { %s3986_s6 = scalar_lea.vmem %s28_s22, 256  ;;  %p3991_p0 = scmp.lt.s32.totalorder %s28_s22, %s28_s22 }
  0x40   :  { %p3987_p13 = scmp.ne.s32.totalorder %s28_s22, %s3986_s6  ;;  %p3992_p1 = scmp.lt.s32.totalorder %s3986_s6, %s3986_s6 }
  0x42   :  { %p3993_p2 = por %p3992_p1, %p3991_p0 }
  0x44   :  { %p3994_p3 = pnand %p3993_p2, %p3987_p13 }
  0x46   :  { %3997 = shalt.err (!%p3994_p3)
}
  0x47   :  { %33 = dma.hbm_to_vmem [thread:$0]  %s4784_s0, 256, %s28_s22, [#allocation5], %s4125_s18, %s4125_s18, %s4126_s24  }
  0x48   :  { %s3998_s4 = scalar_lea.hbm %s4787_s3, 512 }
  0x49   :  { %p3999_p4 = scmp.ne.s32.totalorder %s4787_s3, %s3998_s4  ;;  %p4002_p5 = scmp.lt.u32.totalorder %s3998_s4, %s4787_s3 }
  0x4b   :  { %p4004_p6 = pnand %p4002_p5, %p3999_p4 }
  0x4d   :  { %4007 = shalt.err (!%p4004_p6)
}
  0x4e   :  { %s4008_s26 = scalar_lea.vmem %s54_s1, 512  ;;  %p4013_p8 = scmp.lt.s32.totalorder %s54_s1, %s54_s1 }
  0x4f   :  { %p4009_p7 = scmp.ne.s32.totalorder %s54_s1, %s4008_s26  ;;  %p4014_p9 = scmp.lt.s32.totalorder %s4008_s26, %s4008_s26 }
  0x51   :  { %p4015_p10 = por %p4014_p9, %p4013_p8 }
  0x53   :  { %p4016_p11 = pnand %p4015_p10, %p4009_p7 }
  0x55   :  { %4019 = shalt.err (!%p4016_p11)
}
  0x56   :  { %59 = dma.hbm_to_vmem [thread:$0]  %s4787_s3, 512, %s54_s1, [#allocation8], %s4125_s18, %s4125_s18, %s4126_s24  }
  0x57   :  { %s4129_s29 = smov [#allocation12]   ;;  %s4130_s12 = smov [#allocation15]  }
  0x58   :  { %s77_s30 = sshll.u32 %s4129_s29, 4  ;;  %s99_s14 = sshll.u32 %s4130_s12, 4  ;;  %s78_s30 = int_to_ptr.vmem [resolvable:$true] %s77_s30  ;;  %s100_s14 = int_to_ptr.vmem [resolvable:$true] %s99_s14 }
  0x59   :  { %s4020_s15 = scalar_lea.hbm %s4789_s5, 2048 }
  0x5a   :  { %p4021_p12 = scmp.ne.s32.totalorder %s4789_s5, %s4020_s15  ;;  %p4024_p13 = scmp.lt.u32.totalorder %s4020_s15, %s4789_s5 }
  0x5c   :  { %p4026_p0 = pnand %p4024_p13, %p4021_p12 }
  0x5e   :  { %4029 = shalt.err (!%p4026_p0)
}
  0x5f   :  { %s4030_s3 = scalar_lea.vmem %s78_s30, 2048  ;;  %p4035_p2 = scmp.lt.s32.totalorder %s78_s30, %s78_s30 }
  0x60   :  { %p4031_p1 = scmp.ne.s32.totalorder %s78_s30, %s4030_s3  ;;  %p4036_p3 = scmp.lt.s32.totalorder %s4030_s3, %s4030_s3 }
  0x62   :  { %p4037_p4 = por %p4036_p3, %p4035_p2 }
  0x64   :  { %p4038_p5 = pnand %p4037_p4, %p4031_p1 }
  0x66   :  { %4041 = shalt.err (!%p4038_p5)
}
  0x67   :  { %83 = dma.hbm_to_vmem [thread:$0]  %s4789_s5, 2048, %s78_s30, [#allocation11], %s4121_s27, %s4121_s27, %s4122_s28  }
  0x68   :  { %s4042_s25 = scalar_lea.hbm %s4791_s7, 512 }
  0x69   :  { %p4043_p6 = scmp.ne.s32.totalorder %s4791_s7, %s4042_s25  ;;  %p4046_p7 = scmp.lt.u32.totalorder %s4042_s25, %s4791_s7 }
  0x6b   :  { %p4048_p8 = pnand %p4046_p7, %p4043_p6 }
  0x6d   :  { %4051 = shalt.err (!%p4048_p8)
}
  0x6e   :  { %s4052_s12 = scalar_lea.vmem %s100_s14, 512  ;;  %p4057_p10 = scmp.lt.s32.totalorder %s100_s14, %s100_s14 }
  0x6f   :  { %p4053_p9 = scmp.ne.s32.totalorder %s100_s14, %s4052_s12  ;;  %p4058_p11 = scmp.lt.s32.totalorder %s4052_s12, %s4052_s12 }
  0x71   :  { %p4059_p12 = por %p4058_p11, %p4057_p10 }
  0x73   :  { %p4060_p13 = pnand %p4059_p12, %p4053_p9 }
  0x75   :  { %4063 = shalt.err (!%p4060_p13)
}
  0x76   :  { %105 = dma.hbm_to_vmem [thread:$0]  %s4791_s7, 512, %s100_s14, [#allocation14], %s4125_s18, %s4125_s18, %s4126_s24  }
  0x77   :  { %s4131_s28 = smov [#allocation16]   ;;  %s4064_s15 = scalar_lea.hbm %s4792_s8, 512 }
  0x78   :  { %s111_s30 = sshll.u32 %s4131_s28, 4  ;;  %p4065_p0 = scmp.ne.s32.totalorder %s4792_s8, %s4064_s15  ;;  %s112_s30 = int_to_ptr.vmem [resolvable:$true] %s111_s30 }
  0x79   :  { %p4068_p1 = scmp.lt.u32.totalorder %s4064_s15, %s4792_s8 }
  0x7b   :  { %p4070_p2 = pnand %p4068_p1, %p4065_p0 }
  0x7d   :  { %4073 = shalt.err (!%p4070_p2)
}
  0x7e   :  { %s4074_s3 = scalar_lea.vmem %s112_s30, 512  ;;  %p4079_p4 = scmp.lt.s32.totalorder %s112_s30, %s112_s30 }
  0x7f   :  { %p4075_p3 = scmp.ne.s32.totalorder %s112_s30, %s4074_s3  ;;  %p4080_p5 = scmp.lt.s32.totalorder %s4074_s3, %s4074_s3 }
  0x81   :  { %p4081_p6 = por %p4080_p5, %p4079_p4 }
  0x83   :  { %p4082_p7 = pnand %p4081_p6, %p4075_p3 }
  0x85   :  { %4085 = shalt.err (!%p4082_p7)
}
  0x86   :  { %117 = dma.hbm_to_vmem [thread:$0]  %s4792_s8, 512, %s112_s30, [#allocation17], %s4125_s18, %s4125_s18, %s4126_s24  }
  0x87   :  { %4108 = dma.done.wait [#allocation5], 256  }
  0x88   :  { %4109 = vsyncadd [#allocation5], 4294967040 }
  0x89   :  { %4110 = dma.done.wait [#allocation8], 1536  }
  0x8a   :  { %4111 = vsyncadd [#allocation8], 4294965760 }
  0x8b   :  { %4112 = dma.done.wait [#allocation11], 2560  }
  0x8c   :  { %4113 = vsyncadd [#allocation11], 4294964736 }
  0x8d   :  { %4114 = dma.done.wait [#allocation14], 544  }
  0x8e   :  { %4115 = vsyncadd [#allocation14], 4294966752 }
  0x8f   :  { %4116 = dma.done.wait [#allocation17], 512  }
  0x90   :  { %4117 = vsyncadd [#allocation17], 4294966784  ;;  %v4132_v0 = vmov 0.0|0.0   ;;  %v4133_v1 = vmov 0.0   ;;  %vm4134_vm0 = vmmov 0   ;;  %v149_v2 = vld [vmem:[#allocation7 + $0x8] sm:$0xff]  ;;  %v166_v21 = vlaneseq }
  0x91   :  { %3534 = vmatprep.subr.bf16.mxu1 %v4132_v0  ;;  %247 = vmatprep.mubr.f32.mxu0 %v4133_v1  ;;  %v151_v3 = vld [vmem:[#allocation7 + $0x18] sm:$0xff]  ;;  %v148_v4 = vld [vmem:[#allocation7] sm:$0xff]  ;;  %v150_v6 = vld [vmem:[#allocation7 + $0x10] sm:$0xff]  ;;  %vm176_vm1 = vcmask 261120   ;;  %s4135_s24 = smov 64   ;;  %vm362_vm2 = vcmask 254976  }
  0x92   :  { %3259 = vmatprep.mubr.msk.f32.mxu1 %vm4134_vm0, %v4133_v1  ;;  %v3526_v5 = vpack.c.bf16 %v151_v3, %v149_v2  ;;  %v157_v7 = vld [vmem:[#allocation9] sm:$0xff]  ;;  %v158_v8 = vld [vmem:[#allocation9 + $0x8] sm:$0xff]  ;;  %v3528_v9 = vpack.c.bf16 %v150_v6, %v148_v4  ;;  %v155_v12 = vld [vmem:[#allocation7 + $0x38] sm:$0xff]  ;;  %v4341_v22 = vshrl.u32 %v166_v21, 7  ;;  %vm695_vm3 = vcmask 261126  }
  0x93   :  { %v4319_v10 = vpack.c.bf16 %v158_v8, %v157_v7  ;;  %v153_v11 = vld [vmem:[#allocation7 + $0x28] sm:$0xff]  ;;  %v152_v13 = vld [vmem:[#allocation7 + $0x20] sm:$0xff]  ;;  %v154_v15 = vld [vmem:[#allocation7 + $0x30] sm:$0xff]  ;;  %vm471_vm4 = vcmask 257026   ;;  %vm583_vm5 = vcmask 259076   ;;  %vm2047_vm6 = vcmask 523264  }
  0x94   :  { %3527 = vmatprep.subr.bf16.mxu0 %v3526_v5  ;;  %v3530_v14 = vpack.c.bf16 %v155_v12, %v153_v11  ;;  %v159_v16 = vld [vmem:[#allocation9 + $0x10] sm:$0xff]  ;;  %v160_v17 = vld [vmem:[#allocation9 + $0x18] sm:$0xff]  ;;  %v3532_v18 = vpack.c.bf16 %v154_v15, %v152_v13  ;;  %v168_v23 = vsub.s32 0, %v4341_v22 }
  0x95   :  { %3529 = vmatpush1.bf16.msra.mxu0 %v3528_v9  ;;  %3536 = vmatpush3.bf16.msra.mxu1 %v4319_v10  ;;  %v4322_v19 = vpack.c.bf16 %v160_v17, %v159_v16  ;;  %v146_v20 = vld [vmem:[#allocation4] sm:$0xff]  ;;  %v147_v42 = vld [vmem:[#allocation4 + $0x8] sm:$0xff] }
  0x96   :  { %3531 = vmatprep.subr.bf16.mxu0 %v3530_v14  ;;  %3537 = vmatprep.subr.bf16.mxu1 %v4132_v0  ;;  %v4347_v24 = vld [vmem:[%s4786_s2] sm:$0x3]  ;;  %s4136_s2 = smov 32  }
  0x97   :  { %v4350_v25 = vrot.slane %v4347_v24, %v168_v23 }
  0x99   :  { %3533 = vmatpush1.bf16.msra.mxu0 %v3532_v18  ;;  %3539 = vmatpush3.bf16.msra.mxu1 %v4322_v19 }
  0x9a   :  { %3540 = vmatprep.subr.bf16.mxu0 %v4132_v0  ;;  %3546 = vmatprep.subr.bf16.mxu1 %v4132_v0 }
  0x9c   :  { %3075 = vmatmul.mubr.msk.f32.vlgmr.msra.gmra.mrb[0].mxu0 %vm176_vm1, %v146_v20  ;;  %3260 = vmatmul.mubr.f32.vlgmr.msra.gmra.mrb[0].mxu1 %v4133_v1 }
  0x9d   :  { %3542 = vmatpush3.bf16.msra.mxu0 %v4319_v10  ;;  %253 = vmatprep.mubr.f32.mxu0 %v4133_v1 }
  0x9e   :  { %3543 = vmatprep.subr.bf16.mxu0 %v4132_v0  ;;  %3548 = vmatpush3.bf16.msra.mxu1 %v4319_v10 }
  0x9f   :  { %3549 = vmatprep.subr.bf16.mxu1 %v4132_v0  ;;  %3281 = vmatprep.mubr.msk.f32.mxu1 %vm4134_vm0, %v4133_v1 }
  0xa0   :  { %3076 = vmatmul.mubr.msk.f32.gmra.mrb[2].mxu0 %vm176_vm1, %v147_v42 }
  0xa1   :  { %3545 = vmatpush3.bf16.msra.mxu0 %v4322_v19  ;;  %3270 = vmatprep.mubr.msk.f32.mxu0 %vm4134_vm0, %v4133_v1 }
  0xa2   :  { %3551 = vmatpush3.bf16.msra.mxu1 %v4322_v19  ;;  %3552 = vmatprep.subr.bf16.mxu0 %v4132_v0 }
  0xa3   :  { %3558 = vmatprep.subr.bf16.mxu1 %v4132_v0 }
 0x16f   :  { %v249_v26 = vpop.f32.mrb[0].mxu0  ;;  %v329_v27 = vpop.f32.mrb[0].mxu1 }
 0x170   :  { %v4353_v28 = vadd.f32 %v249_v26, %v4350_v25  ;;  %v4355_v29 = vpop.f32.mrb[1].mxu0  ;;  %v3261_v30 = vpop.f32.mrb[1].mxu1 }
 0x172   :  { %v333_v31 = vadd.f32 %v329_v27, %v4353_v28 }
 0x173   :  { %v4365_v46 = vpop.f32.mrb[2].mxu0 }
 0x174   :  { %3718 = vtanh.f32 %v333_v31  ;;  %v3077_v33 = vmul.f32 -1.442695, %v333_v31  ;;  %v4367_v47 = vpop.f32.mrb[3].mxu0 }
 0x176   :  { %3720 = vpow2.f32 %v3077_v33 }
 0x17e   :  { %v3719_v32 = vpop.eup %3718 }
 0x17f   :  { %343 = vrot.lane.b32.xlu0 %v3719_v32, %s4135_s24 }
 0x180   :  { %v3721_v34 = vpop.eup %3720 }
 0x181   :  { %v337_v35 = vadd.f32 1.0, %v3721_v34 }
 0x183   :  { %3722 = vrcp.f32 %v337_v35 }
 0x18d   :  { %v3723_v36 = vpop.eup %3722 }
 0x18e   :  { %v341_v39 = vmul.f32 0.0, %v3723_v36 }
 0x1f1   :  { %v344_v37 = vpop.permute.xlu0 %343 }
 0x1f2   :  { %v346_v38 = vmul.f32 %v3723_v36, %v344_v37 }
 0x1f4   :  { %348 = vrot.lane.b32.xlu0 %v346_v38, %s4136_s2 }
 0x266   :  { %v349_v40 = vpop.permute.xlu0 %348 }
 0x267   :  { %v351_v41 = vadd.f32 %v349_v40, %v341_v39 }
 0x269   :  { %3724 = vtanh.f32 %v351_v41  ;;  %v448_v60 = vrot.slane %v351_v41, 6 }
 0x273   :  { %v3725_v43 = vpop.eup %3724 }
 0x274   :  { %354 = vrot.lane.b32.xlu1 %v3725_v43, %s4135_s24 }
 0x2e6   :  { %v355_v44 = vpop.permute.xlu1 %354 }
 0x2e7   :  { %v357_v45 = vmul.f32 %v3723_v36, %v355_v44 }
 0x2e9   :  { %359 = vrot.lane.b32.xlu1 %v357_v45, %s4136_s2 }
 0x35b   :  { %v360_v48 = vpop.permute.xlu1 %359 }
 0x35c   :  { %363 = vst.msk [vmem:[#allocation2] sm:$0x3] %vm362_vm2, %v360_v48  ;;  %3271 = vmatmul.mubr.msk.f32.vlgmr.msra.gmra.mrb[4].mxu0 %vm176_vm1, %v360_v48 }
 0x35d   :  { %3554 = vmatpush3.bf16.msra.mxu0 %v4319_v10  ;;  %3292 = vmatprep.mubr.msk.f32.mxu0 %vm4134_vm0, %v4133_v1 }
 0x35e   :  { %3555 = vmatprep.subr.bf16.mxu0 %v4132_v0 }
 0x361   :  { %3557 = vmatpush3.bf16.msra.mxu0 %v4322_v19 }
 0x362   :  { %3564 = vmatprep.subr.bf16.mxu0 %v4132_v0 }
 0x42f   :  { %v432_v49 = vpop.f32.mrb[4].mxu0 }
 0x430   :  { %v437_v50 = vrot.slane %v432_v49, 6  ;;  %v3272_v51 = vpop.f32.mrb[5].mxu0 }
 0x432   :  { %v439_v52 = vadd.f32 %v437_v50, %v4353_v28 }
 0x434   :  { %3726 = vtanh.f32 %v439_v52  ;;  %v3079_v54 = vmul.f32 -1.442695, %v439_v52 }
 0x436   :  { %3728 = vpow2.f32 %v3079_v54 }
 0x43e   :  { %v3727_v53 = vpop.eup %3726 }
 0x43f   :  { %452 = vrot.lane.b32.xlu0 %v3727_v53, %s4135_s24 }
 0x440   :  { %v3729_v55 = vpop.eup %3728 }
 0x441   :  { %v443_v56 = vadd.f32 1.0, %v3729_v55  ;;  %v4424_v55 = vadd.f32 %v4365_v46, %v4350_v25 }
 0x443   :  { %3730 = vrcp.f32 %v443_v56 }
 0x44d   :  { %v3731_v57 = vpop.eup %3730 }
 0x44e   :  { %v450_v61 = vmul.f32 %v3731_v57, %v448_v60 }
 0x4b1   :  { %v453_v58 = vpop.permute.xlu0 %452 }
 0x4b2   :  { %v455_v59 = vmul.f32 %v3731_v57, %v453_v58 }
 0x4b4   :  { %457 = vrot.lane.b32.xlu1 %v455_v59, %s4136_s2 }
 0x526   :  { %v458_v62 = vpop.permute.xlu1 %457 }
 0x527   :  { %v460_v63 = vadd.f32 %v458_v62, %v450_v61 }
 0x529   :  { %3732 = vtanh.f32 %v460_v63  ;;  %v560_v20 = vrot.slane %v460_v63, 6 }
 0x533   :  { %v3733_v2 = vpop.eup %3732 }
 0x534   :  { %463 = vrot.lane.b32.xlu0 %v3733_v2, %s4135_s24 }
 0x5a6   :  { %v464_v3 = vpop.permute.xlu0 %463 }
 0x5a7   :  { %v4381_v4 = vmul.f32 %v3731_v57, %v464_v3 }
 0x5a9   :  { %v473_v5 = vrot.slane %v4381_v4, 2 }
 0x5ab   :  { %474 = vrot.lane.b32.xlu1 %v473_v5, %s4136_s2 }
 0x61d   :  { %v475_v6 = vpop.permute.xlu1 %474 }
 0x61e   :  { %3282 = vmatmul.mubr.msk.f32.vlgmr.msra.gmra.mrb[2].mxu1 %vm176_vm1, %v475_v6 }
 0x61f   :  { %3560 = vmatpush3.bf16.msra.mxu1 %v4319_v10  ;;  %3303 = vmatprep.mubr.msk.f32.mxu1 %vm4134_vm0, %v4133_v1 }
 0x620   :  { %3561 = vmatprep.subr.bf16.mxu1 %v4132_v0 }
 0x623   :  { %3563 = vmatpush3.bf16.msra.mxu1 %v4322_v19 }
 0x624   :  { %3570 = vmatprep.subr.bf16.mxu1 %v4132_v0 }
 0x6f1   :  { %v544_v7 = vpop.f32.mrb[2].mxu1 }
 0x6f2   :  { %v549_v8 = vrot.slane %v544_v7, 4  ;;  %v3283_v9 = vpop.f32.mrb[3].mxu1 }
 0x6f4   :  { %v551_v11 = vadd.f32 %v549_v8, %v4353_v28 }
 0x6f6   :  { %3734 = vtanh.f32 %v551_v11  ;;  %v3081_v13 = vmul.f32 -1.442695, %v551_v11 }
 0x6f8   :  { %3736 = vpow2.f32 %v3081_v13 }
 0x700   :  { %v3735_v12 = vpop.eup %3734 }
 0x701   :  { %564 = vrot.lane.b32.xlu0 %v3735_v12, %s4135_s24 }
 0x702   :  { %v3737_v14 = vpop.eup %3736 }
 0x703   :  { %v555_v15 = vadd.f32 1.0, %v3737_v14 }
 0x705   :  { %3738 = vrcp.f32 %v555_v15 }
 0x70f   :  { %v3739_v16 = vpop.eup %3738 }
 0x710   :  { %v562_v21 = vmul.f32 %v3739_v16, %v560_v20 }
 0x773   :  { %v565_v17 = vpop.permute.xlu0 %564 }
 0x774   :  { %v567_v18 = vmul.f32 %v3739_v16, %v565_v17 }
 0x776   :  { %569 = vrot.lane.b32.xlu1 %v567_v18, %s4136_s2 }
 0x7e8   :  { %v570_v23 = vpop.permute.xlu1 %569 }
 0x7e9   :  { %v572_v26 = vadd.f32 %v570_v23, %v562_v21 }
 0x7eb   :  { %3740 = vtanh.f32 %v572_v26  ;;  %v672_v45 = vrot.slane %v572_v26, 6 }
 0x7f5   :  { %v3741_v27 = vpop.eup %3740 }
 0x7f6   :  { %575 = vrot.lane.b32.xlu0 %v3741_v27, %s4135_s24 }
 0x868   :  { %v576_v30 = vpop.permute.xlu0 %575 }
 0x869   :  { %v4396_v31 = vmul.f32 %v3739_v16, %v576_v30 }
 0x86b   :  { %v585_v32 = vrot.slane %v4396_v31, 4 }
 0x86d   :  { %586 = vrot.lane.b32.xlu1 %v585_v32, %s4136_s2 }
 0x8df   :  { %v587_v33 = vpop.permute.xlu1 %586 }
 0x8e0   :  { %3293 = vmatmul.mubr.msk.f32.vlgmr.msra.gmra.mrb[6].mxu0 %vm176_vm1, %v587_v33 }
 0x8e1   :  { %3566 = vmatpush3.bf16.msra.mxu0 %v4319_v10  ;;  %3314 = vmatprep.mubr.msk.f32.mxu0 %vm4134_vm0, %v4133_v1 }
 0x8e2   :  { %3567 = vmatprep.subr.bf16.mxu0 %v4132_v0 }
 0x8e5   :  { %3569 = vmatpush3.bf16.msra.mxu0 %v4322_v19 }
 0x8e6   :  { %3576 = vmatprep.subr.bf16.mxu0 %v4132_v0 }
 0x9b3   :  { %v656_v34 = vpop.f32.mrb[6].mxu0 }
 0x9b4   :  { %v661_v35 = vrot.slane %v656_v34, 2  ;;  %v3294_v36 = vpop.f32.mrb[7].mxu0 }
 0x9b5   :  { %v161_v36 = vld [vmem:[#allocation10] sm:$0xff] }
 0x9b6   :  { %v663_v37 = vadd.f32 %v661_v35, %v4353_v28 }
 0x9b8   :  { %3742 = vtanh.f32 %v663_v37  ;;  %v3083_v39 = vmul.f32 -1.442695, %v663_v37  ;;  %v162_v37 = vld [vmem:[#allocation10 + $0x8] sm:$0xff] }
 0x9ba   :  { %3744 = vpow2.f32 %v3083_v39  ;;  %v163_v39 = vld [vmem:[#allocation10 + $0x10] sm:$0xff] }
 0x9c2   :  { %v3743_v38 = vpop.eup %3742 }
 0x9c3   :  { %676 = vrot.lane.b32.xlu0 %v3743_v38, %s4135_s24  ;;  %v4450_v38 = vpack.c.bf16 %v162_v37, %v161_v36 }
 0x9c4   :  { %v3745_v40 = vpop.eup %3744 }
 0x9c5   :  { %v667_v41 = vadd.f32 1.0, %v3745_v40  ;;  %v164_v40 = vld [vmem:[#allocation10 + $0x18] sm:$0xff] }
 0x9c7   :  { %3746 = vrcp.f32 %v667_v41 }
 0x9d1   :  { %v3747_v42 = vpop.eup %3746 }
 0x9d2   :  { %v674_v48 = vmul.f32 %v3747_v42, %v672_v45 }
 0xa35   :  { %v677_v43 = vpop.permute.xlu0 %676 }
 0xa36   :  { %v679_v44 = vmul.f32 %v3747_v42, %v677_v43 }
 0xa38   :  { %681 = vrot.lane.b32.xlu1 %v679_v44, %s4136_s2 }
 0xaaa   :  { %v682_v49 = vpop.permute.xlu1 %681 }
 0xaab   :  { %v684_v50 = vadd.f32 %v682_v49, %v674_v48  ;;  %v172_v48 = vsub.s32 1, %v4341_v22 }
 0xaad   :  { %3748 = vtanh.f32 %v684_v50  ;;  %v781_v25 = vrot.slane %v684_v50, 6  ;;  %v4473_v50 = vrot.slane %v4347_v24, %v172_v48 }
 0xab7   :  { %v3749_v28 = vpop.eup %3748 }
 0xab8   :  { %687 = vrot.lane.b32.xlu0 %v3749_v28, %s4135_s24 }
 0xb2a   :  { %v688_v51 = vpop.permute.xlu0 %687 }
 0xb2b   :  { %v4411_v52 = vmul.f32 %v3747_v42, %v688_v51  ;;  %v4454_v42 = vpack.c.bf16 %v164_v40, %v163_v39  ;;  %v4477_v51 = vadd.f32 %v4367_v47, %v4473_v50 }
 0xb2d   :  { %v697_v53 = vrot.slane %v4411_v52, 6 }
 0xb2f   :  { %698 = vrot.lane.b32.xlu1 %v697_v53, %s4136_s2 }
 0xba1   :  { %v699_v54 = vpop.permute.xlu1 %698 }
 0xba2   :  { %3304 = vmatmul.mubr.msk.f32.vlgmr.msra.gmra.mrb[4].mxu1 %vm176_vm1, %v699_v54 }
 0xba3   :  { %3572 = vmatpush3.bf16.msra.mxu1 %v4319_v10  ;;  %3325 = vmatprep.mubr.msk.f32.mxu1 %vm4134_vm0, %v4133_v1 }
 0xba4   :  { %3573 = vmatprep.subr.bf16.mxu1 %v4132_v0 }
 0xba7   :  { %3575 = vmatpush3.bf16.msra.mxu1 %v4322_v19 }
 0xba8   :  { %3582 = vmatprep.subr.bf16.mxu1 %v4132_v0 }
 0xc75   :  { %v768_v56 = vpop.f32.mrb[4].mxu1 }
 0xc76   :  { %v772_v57 = vadd.f32 %v768_v56, %v4424_v55  ;;  %v3305_v58 = vpop.f32.mrb[5].mxu1 }
 0xc78   :  { %3750 = vtanh.f32 %v772_v57  ;;  %v3085_v60 = vmul.f32 -1.442695, %v772_v57 }
 0xc7a   :  { %3752 = vpow2.f32 %v3085_v60 }
 0xc82   :  { %v3751_v59 = vpop.eup %3750 }
 0xc83   :  { %785 = vrot.lane.b32.xlu0 %v3751_v59, %s4135_s24 }
 0xc84   :  { %v3753_v61 = vpop.eup %3752 }
 0xc85   :  { %v776_v62 = vadd.f32 1.0, %v3753_v61 }
 0xc87   :  { %3754 = vrcp.f32 %v776_v62 }
 0xc91   :  { %v3755_v63 = vpop.eup %3754 }
 0xc92   :  { %v783_v46 = vmul.f32 %v3755_v63, %v781_v25 }
 0xcf5   :  { %v786_v2 = vpop.permute.xlu0 %785 }
 0xcf6   :  { %v788_v3 = vmul.f32 %v3755_v63, %v786_v2 }
 0xcf8   :  { %790 = vrot.lane.b32.xlu1 %v788_v3, %s4136_s2 }
 0xd6a   :  { %v791_v5 = vpop.permute.xlu1 %790 }
 0xd6b   :  { %v793_v6 = vadd.f32 %v791_v5, %v783_v46 }
 0xd6d   :  { %3756 = vtanh.f32 %v793_v6 }
 0xd77   :  { %v3757_v7 = vpop.eup %3756 }
 0xd78   :  { %796 = vrot.lane.b32.xlu0 %v3757_v7, %s4135_s24 }
 0xdea   :  { %v797_v8 = vpop.permute.xlu0 %796 }
 0xdeb   :  { %v799_v9 = vmul.f32 %v3755_v63, %v797_v8 }
 0xded   :  { %801 = vrot.lane.b32.xlu1 %v799_v9, %s4136_s2 }
 0xe5f   :  { %v802_v11 = vpop.permute.xlu1 %801 }
 0xe60   :  { %804 = vst.msk [vmem:[#allocation2 + $0x8] sm:$0x3] %vm362_vm2, %v802_v11  ;;  %3315 = vmatmul.mubr.msk.f32.vlgmr.msra.gmra.mrb[8].mxu0 %vm176_vm1, %v802_v11 }
 0xe61   :  { %3578 = vmatpush3.bf16.msra.mxu0 %v4319_v10  ;;  %3336 = vmatprep.mubr.msk.f32.mxu0 %vm4134_vm0, %v4133_v1 }
 0xe62   :  { %3579 = vmatprep.subr.bf16.mxu0 %v4132_v0 }
 0xe65   :  { %3581 = vmatpush3.bf16.msra.mxu0 %v4322_v19  ;;  %v889_v19 = vrot.slane %v793_v6, 6 }
 0xe66   :  { %3588 = vmatprep.subr.bf16.mxu0 %v4132_v0 }
 0xf33   :  { %v873_v12 = vpop.f32.mrb[8].mxu0 }
 0xf34   :  { %v878_v13 = vrot.slane %v873_v12, 6  ;;  %v3316_v14 = vpop.f32.mrb[9].mxu0 }
 0xf36   :  { %v880_v15 = vadd.f32 %v878_v13, %v4424_v55 }
 0xf38   :  { %3758 = vtanh.f32 %v880_v15  ;;  %v3087_v17 = vmul.f32 -1.442695, %v880_v15 }
 0xf3a   :  { %3760 = vpow2.f32 %v3087_v17 }
 0xf42   :  { %v3759_v16 = vpop.eup %3758 }
 0xf43   :  { %893 = vrot.lane.b32.xlu0 %v3759_v16, %s4135_s24 }
 0xf44   :  { %v3761_v10 = vpop.eup %3760 }
 0xf45   :  { %v884_v18 = vadd.f32 1.0, %v3761_v10 }
 0xf47   :  { %3762 = vrcp.f32 %v884_v18 }
 0xf51   :  { %v3763_v20 = vpop.eup %3762 }
 0xf52   :  { %v891_v26 = vmul.f32 %v3763_v20, %v889_v19 }
 0xfb5   :  { %v894_v21 = vpop.permute.xlu0 %893 }
 0xfb6   :  { %v896_v23 = vmul.f32 %v3763_v20, %v894_v21 }
 0xfb8   :  { %898 = vrot.lane.b32.xlu1 %v896_v23, %s4136_s2 }
0x102a   :  { %v899_v27 = vpop.permute.xlu1 %898 }
0x102b   :  { %v4442_v30 = vadd.f32 %v899_v27, %v891_v26 }
0x102d   :  { %3764 = vtanh.f32 %v4442_v30  ;;  %v1000_v6 = vrot.slane %v4442_v30, 6 }
0x1037   :  { %v3765_v32 = vpop.eup %3764 }
0x1038   :  { %904 = vrot.lane.b32.xlu0 %v3765_v32, %s4135_s24 }
0x10aa   :  { %v905_v33 = vpop.permute.xlu0 %904 }
0x10ab   :  { %v4446_v34 = vmul.f32 %v3763_v20, %v905_v33 }
0x10ad   :  { %v913_v35 = vrot.slane %v4446_v34, 2 }
0x10af   :  { %914 = vrot.lane.b32.xlu1 %v913_v35, %s4136_s2 }
0x1121   :  { %v915_v41 = vpop.permute.xlu1 %914 }
0x1122   :  { %3326 = vmatmul.mubr.msk.f32.vlgmr.msra.gmra.mrb[6].mxu1 %vm176_vm1, %v915_v41 }
0x1123   :  { %3584 = vmatpush3.bf16.msra.mxu1 %v4450_v38  ;;  %3347 = vmatprep.mubr.msk.f32.mxu1 %vm4134_vm0, %v4133_v1 }
0x1124   :  { %3585 = vmatprep.subr.bf16.mxu1 %v4132_v0 }
0x1127   :  { %3587 = vmatpush3.bf16.msra.mxu1 %v4454_v42 }
0x1128   :  { %3594 = vmatprep.subr.bf16.mxu1 %v4132_v0 }
0x112a   :  { %3348 = vmatmul.mubr.f32.vlgmr.msra.gmra.mrb[8].mxu1 %v4133_v1 }
0x112b   :  { %3596 = vmatpush3.bf16.msra.mxu1 %v4450_v38  ;;  %3369 = vmatprep.mubr.msk.f32.mxu1 %vm4134_vm0, %v4133_v1 }
0x112c   :  { %3597 = vmatprep.subr.bf16.mxu1 %v4132_v0 }
0x112f   :  { %3599 = vmatpush3.bf16.msra.mxu1 %v4454_v42 }
0x1130   :  { %3606 = vmatprep.subr.bf16.mxu1 %v4132_v0 }
0x11f5   :  { %v984_v43 = vpop.f32.mrb[6].mxu1 }
0x11f6   :  { %v989_v44 = vrot.slane %v984_v43, 4  ;;  %v3327_v45 = vpop.f32.mrb[7].mxu1 }
0x11f8   :  { %v991_v49 = vadd.f32 %v989_v44, %v4424_v55 }
0x11fa   :  { %3766 = vtanh.f32 %v991_v49  ;;  %v3089_v59 = vmul.f32 -1.442695, %v991_v49 }
0x11fd   :  { %v1201_v28 = vpop.f32.mrb[8].mxu1 }
0x11fe   :  { %v1206_v53 = vrot.slane %v1201_v28, 2  ;;  %v3349_v54 = vpop.f32.mrb[9].mxu1 }
0x1200   :  { %v1208_v56 = vadd.f32 %v1206_v53, %v4477_v51 }
0x1202   :  { %3768 = vtanh.f32 %v1208_v56  ;;  %v3092_v24 = vmul.f32 -1.442695, %v1208_v56 }
0x1203   :  { %3770 = vpow2.f32 %v3089_v59 }
0x1204   :  { %v3767_v57 = vpop.eup %3766  ;;  %3772 = vpow2.f32 %v3092_v24 }
0x1205   :  { %1004 = vrot.lane.b32.xlu0 %v3767_v57, %s4135_s24 }
0x120c   :  { %v3769_v58 = vpop.eup %3768 }
0x120d   :  { %1218 = vrot.lane.b32.xlu1 %v3769_v58, %s4135_s24  ;;  %v3771_v60 = vpop.eup %3770 }
0x120e   :  { %v995_v61 = vadd.f32 1.0, %v3771_v60  ;;  %v3773_v47 = vpop.eup %3772 }
0x120f   :  { %v1212_v62 = vadd.f32 1.0, %v3773_v47 }
0x1210   :  { %3774 = vrcp.f32 %v995_v61 }
0x1211   :  { %3776 = vrcp.f32 %v1212_v62 }
0x121a   :  { %v3775_v63 = vpop.eup %3774 }
0x121b   :  { %v3777_v25 = vpop.eup %3776  ;;  %v1002_v7 = vmul.f32 %v3775_v63, %v1000_v6 }
0x121c   :  { %v1216_v11 = vmul.f32 0.0, %v3777_v25 }
0x1277   :  { %v1005_v2 = vpop.permute.xlu0 %1004 }
0x1278   :  { %v1007_v3 = vmul.f32 %v3775_v63, %v1005_v2 }
0x127a   :  { %1009 = vrot.lane.b32.xlu0 %v1007_v3, %s4136_s2 }
0x127f   :  { %v1219_v46 = vpop.permute.xlu1 %1218 }
0x1280   :  { %v1221_v5 = vmul.f32 %v3777_v25, %v1219_v46 }
0x1282   :  { %1223 = vrot.lane.b32.xlu1 %v1221_v5, %s4136_s2 }
0x12ec   :  { %v1010_v8 = vpop.permute.xlu0 %1009 }
0x12ed   :  { %v4485_v9 = vadd.f32 %v1010_v8, %v1002_v7 }
0x12ef   :  { %3778 = vtanh.f32 %v4485_v9 }
0x12f4   :  { %v1224_v12 = vpop.permute.xlu1 %1223 }
0x12f5   :  { %v1226_v13 = vadd.f32 %v1224_v12, %v1216_v11 }
0x12f7   :  { %3780 = vtanh.f32 %v1226_v13  ;;  %v1325_v45 = vrot.slane %v1226_v13, 2 }
0x12f9   :  { %v3779_v14 = vpop.eup %3778 }
0x12fa   :  { %1015 = vrot.lane.b32.xlu0 %v3779_v14, %s4135_s24 }
0x1301   :  { %v3781_v15 = vpop.eup %3780 }
0x1302   :  { %1229 = vrot.lane.b32.xlu1 %v3781_v15, %s4135_s24 }
0x136c   :  { %v1016_v16 = vpop.permute.xlu0 %1015 }
0x136d   :  { %v4490_v17 = vmul.f32 %v3775_v63, %v1016_v16 }
0x136f   :  { %v1024_v10 = vrot.slane %v4490_v17, 4 }
0x1371   :  { %1025 = vrot.lane.b32.xlu0 %v1024_v10, %s4136_s2 }
0x1374   :  { %v1230_v18 = vpop.permute.xlu1 %1229 }
0x1375   :  { %v4494_v20 = vmul.f32 %v3777_v25, %v1230_v18 }
0x1377   :  { %v1238_v21 = vrot.slane %v4494_v20, 6 }
0x1379   :  { %1239 = vrot.lane.b32.xlu1 %v1238_v21, %s4136_s2 }
0x13e3   :  { %v1026_v23 = vpop.permute.xlu0 %1025 }
0x13e4   :  { %3337 = vmatmul.mubr.msk.f32.vlgmr.msra.gmra.mrb[10].mxu0 %vm176_vm1, %v1026_v23 }
0x13e5   :  { %3590 = vmatpush3.bf16.msra.mxu0 %v4450_v38  ;;  %3358 = vmatprep.mubr.msk.f32.mxu0 %vm4134_vm0, %v4133_v1 }
0x13e6   :  { %3591 = vmatprep.subr.bf16.mxu0 %v4132_v0 }
0x13e9   :  { %3593 = vmatpush3.bf16.msra.mxu0 %v4454_v42 }
0x13ea   :  { %3600 = vmatprep.subr.bf16.mxu0 %v4132_v0 }
0x13eb   :  { %v1240_v19 = vpop.permute.xlu1 %1239 }
0x13ec   :  { %3359 = vmatmul.mubr.msk.f32.vlgmr.msra.gmra.mrb[12].mxu0 %vm176_vm1, %v1240_v19 }
0x13ed   :  { %3602 = vmatpush3.bf16.msra.mxu0 %v4450_v38  ;;  %3380 = vmatprep.mubr.msk.f32.mxu0 %vm4134_vm0, %v4133_v1 }
0x13ee   :  { %3603 = vmatprep.subr.bf16.mxu0 %v4132_v0 }
0x13f1   :  { %3605 = vmatpush3.bf16.msra.mxu0 %v4454_v42 }
0x13f2   :  { %3612 = vmatprep.subr.bf16.mxu0 %v4132_v0 }
0x14b7   :  { %v4512_v26 = vpop.f32.mrb[10].mxu0 }
0x14b8   :  { %v3338_v27 = vpop.f32.mrb[11].mxu0 }
0x14bf   :  { %v1309_v30 = vpop.f32.mrb[12].mxu0 }
0x14c0   :  { %v1314_v32 = vrot.slane %v1309_v30, 4  ;;  %v3360_v33 = vpop.f32.mrb[13].mxu0 }
0x14c2   :  { %v1316_v35 = vadd.f32 %v1314_v32, %v4477_v51 }
0x14c4   :  { %3782 = vtanh.f32 %v1316_v35  ;;  %v3094_v37 = vmul.f32 -1.442695, %v1316_v35 }
0x14c6   :  { %3784 = vpow2.f32 %v3094_v37 }
0x14ce   :  { %v3783_v36 = vpop.eup %3782 }
0x14cf   :  { %1329 = vrot.lane.b32.xlu0 %v3783_v36, %s4135_s24 }
0x14d0   :  { %v3785_v39 = vpop.eup %3784 }
0x14d1   :  { %v1320_v40 = vadd.f32 1.0, %v3785_v39 }
0x14d3   :  { %3786 = vrcp.f32 %v1320_v40 }
0x14dd   :  { %v3787_v41 = vpop.eup %3786 }
0x14de   :  { %v1327_v49 = vmul.f32 %v3787_v41, %v1325_v45 }
0x1541   :  { %v1330_v43 = vpop.permute.xlu0 %1329 }
0x1542   :  { %v1332_v44 = vmul.f32 %v3787_v41, %v1330_v43 }
0x1544   :  { %1334 = vrot.lane.b32.xlu1 %v1332_v44, %s4136_s2 }
0x15b6   :  { %v1335_v28 = vpop.permute.xlu1 %1334 }
0x15b7   :  { %v1337_v53 = vadd.f32 %v1335_v28, %v1327_v49  ;;  %v4558_v49 = vadd.f32 %v4355_v29, %v4473_v50 }
0x15b9   :  { %3788 = vtanh.f32 %v1337_v53  ;;  %v1436_v6 = vrot.slane %v1337_v53, 2 }
0x15c3   :  { %v3789_v54 = vpop.eup %3788 }
0x15c4   :  { %1340 = vrot.lane.b32.xlu0 %v3789_v54, %s4135_s24 }
0x1636   :  { %v1341_v56 = vpop.permute.xlu0 %1340 }
0x1637   :  { %v4518_v57 = vmul.f32 %v3787_v41, %v1341_v56 }
0x1639   :  { %v1349_v58 = vrot.slane %v4518_v57, 4 }
0x163b   :  { %1350 = vrot.lane.b32.xlu1 %v1349_v58, %s4136_s2 }
0x16ad   :  { %v1351_v59 = vpop.permute.xlu1 %1350 }
0x16ae   :  { %3370 = vmatmul.mubr.msk.f32.vlgmr.msra.gmra.mrb[10].mxu1 %vm176_vm1, %v1351_v59 }
0x16af   :  { %3608 = vmatpush3.bf16.msra.mxu1 %v4450_v38  ;;  %3391 = vmatprep.mubr.msk.f32.mxu1 %vm4134_vm0, %v4133_v1 }
0x16b0   :  { %3609 = vmatprep.subr.bf16.mxu1 %v4132_v0 }
0x16b3   :  { %3611 = vmatpush3.bf16.msra.mxu1 %v4454_v42 }
0x16b4   :  { %3618 = vmatprep.subr.bf16.mxu1 %v4132_v0 }
0x1781   :  { %v1420_v24 = vpop.f32.mrb[10].mxu1 }
0x1782   :  { %v1425_v60 = vrot.slane %v1420_v24, 6  ;;  %v3371_v61 = vpop.f32.mrb[11].mxu1 }
0x1784   :  { %v1427_v47 = vadd.f32 %v1425_v60, %v4477_v51 }
0x1786   :  { %3790 = vtanh.f32 %v1427_v47  ;;  %v3096_v63 = vmul.f32 -1.442695, %v1427_v47 }
0x1788   :  { %3792 = vpow2.f32 %v3096_v63 }
0x1790   :  { %v3791_v62 = vpop.eup %3790 }
0x1791   :  { %1440 = vrot.lane.b32.xlu0 %v3791_v62, %s4135_s24 }
0x1792   :  { %v3793_v2 = vpop.eup %3792 }
0x1793   :  { %v1431_v3 = vadd.f32 1.0, %v3793_v2 }
0x1795   :  { %3794 = vrcp.f32 %v1431_v3 }
0x179f   :  { %v3795_v25 = vpop.eup %3794 }
0x17a0   :  { %v1438_v7 = vmul.f32 %v3795_v25, %v1436_v6 }
0x1803   :  { %v1441_v46 = vpop.permute.xlu0 %1440 }
0x1804   :  { %v1443_v5 = vmul.f32 %v3795_v25, %v1441_v46 }
0x1806   :  { %1445 = vrot.lane.b32.xlu1 %v1443_v5, %s4136_s2 }
0x1878   :  { %v1446_v8 = vpop.permute.xlu1 %1445 }
0x1879   :  { %v1448_v11 = vadd.f32 %v1446_v8, %v1438_v7 }
0x187b   :  { %3796 = vtanh.f32 %v1448_v11  ;;  %v1544_v36 = vrot.slane %v1448_v11, 2 }
0x1885   :  { %v3797_v12 = vpop.eup %3796 }
0x1886   :  { %1451 = vrot.lane.b32.xlu0 %v3797_v12, %s4135_s24 }
0x18f8   :  { %v1452_v13 = vpop.permute.xlu0 %1451 }
0x18f9   :  { %v4533_v14 = vmul.f32 %v3795_v25, %v1452_v13 }
0x18fb   :  { %v1460_v15 = vrot.slane %v4533_v14, 2 }
0x18fd   :  { %1461 = vrot.lane.b32.xlu1 %v1460_v15, %s4136_s2 }
0x196f   :  { %v1462_v16 = vpop.permute.xlu1 %1461 }
0x1970   :  { %3381 = vmatmul.mubr.msk.f32.vlgmr.msra.gmra.mrb[14].mxu0 %vm176_vm1, %v1462_v16 }
0x1971   :  { %3614 = vmatpush3.bf16.msra.mxu0 %v4450_v38  ;;  %3402 = vmatprep.mubr.msk.f32.mxu0 %vm4134_vm0, %v4133_v1 }
0x1972   :  { %3615 = vmatprep.subr.bf16.mxu0 %v4132_v0 }
0x1975   :  { %3617 = vmatpush3.bf16.msra.mxu0 %v4454_v42 }
0x1976   :  { %3624 = vmatprep.subr.bf16.mxu0 %v4132_v0 }
0x1a43   :  { %v1531_v10 = vpop.f32.mrb[14].mxu0 }
0x1a44   :  { %v1535_v18 = vadd.f32 %v1531_v10, %v4477_v51  ;;  %v3382_v21 = vpop.f32.mrb[15].mxu0 }
0x1a46   :  { %3798 = vtanh.f32 %v1535_v18  ;;  %v3098_v19 = vmul.f32 -1.442695, %v1535_v18 }
0x1a48   :  { %3800 = vpow2.f32 %v3098_v19 }
0x1a50   :  { %v3799_v23 = vpop.eup %3798 }
0x1a51   :  { %1548 = vrot.lane.b32.xlu0 %v3799_v23, %s4135_s24 }
0x1a52   :  { %v3801_v27 = vpop.eup %3800 }
0x1a53   :  { %v1539_v30 = vadd.f32 1.0, %v3801_v27 }
0x1a55   :  { %3802 = vrcp.f32 %v1539_v30 }
0x1a5f   :  { %v3803_v32 = vpop.eup %3802 }
0x1a60   :  { %v1546_v37 = vmul.f32 %v3803_v32, %v1544_v36 }
0x1ac3   :  { %v1549_v33 = vpop.permute.xlu0 %1548 }
0x1ac4   :  { %v1551_v35 = vmul.f32 %v3803_v32, %v1549_v33 }
0x1ac6   :  { %1553 = vrot.lane.b32.xlu1 %v1551_v35, %s4136_s2 }
0x1b38   :  { %v1554_v39 = vpop.permute.xlu1 %1553 }
0x1b39   :  { %v1556_v40 = vadd.f32 %v1554_v39, %v1546_v37 }
0x1b3b   :  { %3804 = vtanh.f32 %v1556_v40  ;;  %v1652_v29 = vrot.slane %v1556_v40, 2 }
0x1b45   :  { %v3805_v51 = vpop.eup %3804 }
0x1b46   :  { %1559 = vrot.lane.b32.xlu0 %v3805_v51, %s4135_s24 }
0x1bb8   :  { %v1560_v41 = vpop.permute.xlu0 %1559 }
0x1bb9   :  { %v1562_v43 = vmul.f32 %v3803_v32, %v1560_v41 }
0x1bbb   :  { %1564 = vrot.lane.b32.xlu1 %v1562_v43, %s4136_s2 }
0x1c2d   :  { %v1565_v44 = vpop.permute.xlu1 %1564 }
0x1c2e   :  { %1567 = vst.msk [vmem:[#allocation3 + $0x8] sm:$0x3] %vm362_vm2, %v1565_v44  ;;  %3392 = vmatmul.mubr.msk.f32.vlgmr.msra.gmra.mrb[12].mxu1 %vm176_vm1, %v1565_v44 }
0x1c2f   :  { %3620 = vmatpush3.bf16.msra.mxu1 %v4450_v38  ;;  %3413 = vmatprep.mubr.msk.f32.mxu1 %vm4134_vm0, %v4133_v1 }
0x1c30   :  { %3621 = vmatprep.subr.bf16.mxu1 %v4132_v0 }
0x1c33   :  { %3623 = vmatpush3.bf16.msra.mxu1 %v4454_v42 }
0x1d01   :  { %v1636_v45 = vpop.f32.mrb[12].mxu1 }
0x1d02   :  { %v1641_v28 = vrot.slane %v1636_v45, 2  ;;  %v3393_v53 = vpop.f32.mrb[13].mxu1 }
0x1d04   :  { %v1643_v54 = vadd.f32 %v1641_v28, %v4558_v49 }
0x1d06   :  { %3806 = vtanh.f32 %v1643_v54  ;;  %v3100_v58 = vmul.f32 -1.442695, %v1643_v54 }
0x1d08   :  { %3808 = vpow2.f32 %v3100_v58 }
0x1d10   :  { %v3807_v56 = vpop.eup %3806 }
0x1d11   :  { %1656 = vrot.lane.b32.xlu0 %v3807_v56, %s4135_s24 }
0x1d12   :  { %v3809_v59 = vpop.eup %3808 }
0x1d13   :  { %v1647_v24 = vadd.f32 1.0, %v3809_v59 }
0x1d15   :  { %3810 = vrcp.f32 %v1647_v24 }
0x1d1f   :  { %v3811_v60 = vpop.eup %3810 }
0x1d20   :  { %v1654_v50 = vmul.f32 %v3811_v60, %v1652_v29 }
0x1d83   :  { %v1657_v61 = vpop.permute.xlu0 %1656 }
0x1d84   :  { %v1659_v47 = vmul.f32 %v3811_v60, %v1657_v61 }
0x1d86   :  { %1661 = vrot.lane.b32.xlu1 %v1659_v47, %s4136_s2 }
0x1df8   :  { %v1662_v62 = vpop.permute.xlu1 %1661 }
0x1df9   :  { %v1664_v63 = vadd.f32 %v1662_v62, %v1654_v50  ;;  %v1100_v50 = vrot.slane %v4512_v26, 2 }
0x1dfb   :  { %3812 = vtanh.f32 %v1664_v63 }
0x1e05   :  { %v3813_v2 = vpop.eup %3812 }
0x1e06   :  { %1667 = vrot.lane.b32.xlu0 %v3813_v2, %s4135_s24 }
0x1e78   :  { %v1668_v3 = vpop.permute.xlu0 %1667 }
0x1e79   :  { %v4564_v25 = vmul.f32 %v3811_v60, %v1668_v3  ;;  %v1102_v3 = vadd.f32 %v1100_v50, %v4424_v55  ;;  %v2035_v50 = vld [vmem:[#allocation12 + $0x78] sm:$0xff] }
0x1e7b   :  { %v1676_v46 = vrot.slane %v4564_v25, 6 }
0x1e7d   :  { %1677 = vrot.lane.b32.xlu1 %v1676_v46, %s4136_s2 }
0x1eef   :  { %v1678_v5 = vpop.permute.xlu1 %1677 }
0x1ef0   :  { %3403 = vmatmul.mubr.msk.f32.vlgmr.msra.gmra.mrb[16].mxu0 %vm176_vm1, %v1678_v5 }
0x1ef1   :  { %3626 = vmatpush3.bf16.msra.mxu0 %v4450_v38  ;;  %3424 = vmatprep.mubr.msk.f32.mxu0 %vm4134_vm0, %v4133_v1 }
0x1ef2   :  { %3627 = vmatprep.subr.bf16.mxu0 %v4132_v0 }
0x1ef5   :  { %3629 = vmatpush3.bf16.msra.mxu0 %v4454_v42  ;;  %v1763_v42 = vrot.slane %v1664_v63, 2 }
0x1ef6   :  { %3646 = vmatprep.subr.bf16.mxu0 %v4132_v0 }
0x1fc3   :  { %v1747_v6 = vpop.f32.mrb[16].mxu0 }
0x1fc4   :  { %v1752_v7 = vrot.slane %v1747_v6, 4  ;;  %v3404_v8 = vpop.f32.mrb[17].mxu0 }
0x1fc6   :  { %v1754_v11 = vadd.f32 %v1752_v7, %v4558_v49  ;;  %v3091_v7 = vmul.f32 -1.442695, %v1102_v3 }
0x1fc8   :  { %3814 = vtanh.f32 %v1754_v11  ;;  %v3102_v13 = vmul.f32 -1.442695, %v1754_v11 }
0x1fca   :  { %3816 = vpow2.f32 %v3102_v13 }
0x1fd2   :  { %v3815_v12 = vpop.eup %3814 }
0x1fd3   :  { %1767 = vrot.lane.b32.xlu0 %v3815_v12, %s4135_s24 }
0x1fd4   :  { %v3817_v38 = vpop.eup %3816 }
0x1fd5   :  { %v1758_v15 = vadd.f32 1.0, %v3817_v38 }
0x1fd7   :  { %3818 = vrcp.f32 %v1758_v15 }
0x1fe1   :  { %v3819_v16 = vpop.eup %3818 }
0x1fe2   :  { %v1765_v21 = vmul.f32 %v3819_v16, %v1763_v42 }
0x2045   :  { %v1768_v10 = vpop.permute.xlu0 %1767 }
0x2046   :  { %v1770_v18 = vmul.f32 %v3819_v16, %v1768_v10 }
0x2048   :  { %1772 = vrot.lane.b32.xlu1 %v1770_v18, %s4136_s2 }
0x20ba   :  { %v1773_v23 = vpop.permute.xlu1 %1772 }
0x20bb   :  { %v1775_v19 = vadd.f32 %v1773_v23, %v1765_v21  ;;  %v1111_v21 = vrot.slane %v4485_v9, 6 }
0x20bd   :  { %3820 = vtanh.f32 %v1775_v19  ;;  %v1874_v54 = vrot.slane %v1775_v19, 2 }
0x20c7   :  { %v3821_v27 = vpop.eup %3820 }
0x20c8   :  { %1778 = vrot.lane.b32.xlu0 %v3821_v27, %s4135_s24 }
0x213a   :  { %v1779_v30 = vpop.permute.xlu0 %1778 }
0x213b   :  { %v4579_v32 = vmul.f32 %v3819_v16, %v1779_v30 }
0x213d   :  { %v1787_v33 = vrot.slane %v4579_v32, 4 }
0x213f   :  { %1788 = vrot.lane.b32.xlu1 %v1787_v33, %s4136_s2 }
0x21b1   :  { %v1789_v35 = vpop.permute.xlu1 %1788 }
0x21b2   :  { %3414 = vmatmul.mubr.msk.f32.vlgmr.msra.gmra.mrb[14].mxu1 %vm176_vm1, %v1789_v35 }
0x21b3   :  { %2118 = vmatprep.mubr.f32.mxu1 %v4133_v1 }
0x2285   :  { %v1858_v36 = vpop.f32.mrb[14].mxu1 }
0x2286   :  { %v1863_v37 = vrot.slane %v1858_v36, 6  ;;  %v3415_v39 = vpop.f32.mrb[15].mxu1 }
0x2288   :  { %v1865_v40 = vadd.f32 %v1863_v37, %v4558_v49 }
0x228a   :  { %3822 = vtanh.f32 %v1865_v40  ;;  %v3104_v41 = vmul.f32 -1.442695, %v1865_v40  ;;  %v2020_v40 = vld [vmem:[#allocation12] sm:$0xff] }
0x228c   :  { %3824 = vpow2.f32 %v3104_v41  ;;  %v2027_v41 = vld [vmem:[#allocation12 + $0x38] sm:$0xff] }
0x2294   :  { %v3823_v51 = vpop.eup %3822 }
0x2295   :  { %1878 = vrot.lane.b32.xlu0 %v3823_v51, %s4135_s24  ;;  %v2025_v51 = vld [vmem:[#allocation12 + $0x28] sm:$0xff] }
0x2296   :  { %v3825_v43 = vpop.eup %3824 }
0x2297   :  { %v1869_v44 = vadd.f32 1.0, %v3825_v43 }
0x2299   :  { %3826 = vrcp.f32 %v1869_v44 }
0x22a3   :  { %v3827_v45 = vpop.eup %3826 }
0x22a4   :  { %v1876_v56 = vmul.f32 %v3827_v45, %v1874_v54  ;;  %v2029_v54 = vld [vmem:[#allocation12 + $0x48] sm:$0xff] }
0x2307   :  { %v1879_v28 = vpop.permute.xlu0 %1878 }
0x2308   :  { %v1881_v53 = vmul.f32 %v3827_v45, %v1879_v28  ;;  %v2024_v28 = vld [vmem:[#allocation12 + $0x20] sm:$0xff] }
0x230a   :  { %1883 = vrot.lane.b32.xlu1 %v1881_v53, %s4136_s2  ;;  %v2026_v53 = vld [vmem:[#allocation12 + $0x30] sm:$0xff] }
0x237c   :  { %v1884_v58 = vpop.permute.xlu1 %1883 }
0x237d   :  { %v1886_v59 = vadd.f32 %v1884_v58, %v1876_v56  ;;  %v2031_v56 = vld [vmem:[#allocation12 + $0x58] sm:$0xff]  ;;  %v3636_v58 = vpack.c.bf16 %v2026_v53, %v2024_v28 }
0x237f   :  { %3828 = vtanh.f32 %v1886_v59  ;;  %v1982_v10 = vrot.slane %v1886_v59, 2  ;;  %v3638_v59 = vpack.c.bf16 %v2031_v56, %v2029_v54 }
0x2389   :  { %v3829_v24 = vpop.eup %3828 }
0x238a   :  { %1889 = vrot.lane.b32.xlu0 %v3829_v24, %s4135_s24  ;;  %v2030_v24 = vld [vmem:[#allocation12 + $0x50] sm:$0xff] }
0x23fc   :  { %v1890_v60 = vpop.permute.xlu0 %1889 }
0x23fd   :  { %v1892_v61 = vmul.f32 %v3827_v45, %v1890_v60  ;;  %v3634_v45 = vpack.c.bf16 %v2027_v41, %v2025_v51  ;;  %v2037_v60 = vld [vmem:[#allocation16] sm:$0xff] }
0x23ff   :  { %v1898_v47 = vrot.slane %v1892_v61, 2 }
0x2401   :  { %1899 = vrot.lane.b32.xlu1 %v1898_v47, %s4136_s2 }
0x2473   :  { %v1900_v29 = vpop.permute.xlu1 %1899 }
0x2474   :  { %3425 = vmatmul.mubr.msk.f32.vlgmr.msra.gmra.mrb[18].mxu0 %vm176_vm1, %v1900_v29  ;;  %v2033_v29 = vld [vmem:[#allocation12 + $0x68] sm:$0xff] }
0x2475   :  { %3435 = vmatprep.mubr.msk.f32.mxu0 %vm4134_vm0, %v4133_v1 }
0x2547   :  { %v1969_v62 = vpop.f32.mrb[18].mxu0 }
0x2548   :  { %v1973_v63 = vadd.f32 %v1969_v62, %v4558_v49  ;;  %v3426_v2 = vpop.f32.mrb[19].mxu0 }
0x2549   :  { %v2032_v2 = vld [vmem:[#allocation12 + $0x60] sm:$0xff] }
0x254a   :  { %3830 = vtanh.f32 %v1973_v63  ;;  %v3106_v6 = vmul.f32 -1.442695, %v1973_v63 }
0x254b   :  { %3832 = vtanh.f32 %v1102_v3  ;;  %v2034_v3 = vld [vmem:[#allocation12 + $0x70] sm:$0xff] }
0x254c   :  { %3834 = vpow2.f32 %v3106_v6  ;;  %v3644_v6 = vpack.c.bf16 %v2034_v3, %v2032_v2 }
0x254d   :  { %3836 = vpow2.f32 %v3091_v7 }
0x2554   :  { %v3831_v46 = vpop.eup %3830 }
0x2555   :  { %1986 = vrot.lane.b32.xlu0 %v3831_v46, %s4135_s24  ;;  %v3833_v5 = vpop.eup %3832 }
0x2556   :  { %v3835_v8 = vpop.eup %3834 }
0x2557   :  { %v1977_v26 = vadd.f32 1.0, %v3835_v8  ;;  %v3837_v11 = vpop.eup %3836  ;;  %v2040_v8 = vld [vmem:[#allocation16 + $0x18] sm:$0xff] }
0x2558   :  { %v1106_v12 = vadd.f32 1.0, %v3837_v11 }
0x2559   :  { %1115 = vrot.lane.b32.xlu0 %v3833_v5, %s4135_s24  ;;  %3838 = vrcp.f32 %v1977_v26 }
0x255a   :  { %3840 = vrcp.f32 %v1106_v12 }
0x2563   :  { %v3839_v49 = vpop.eup %3838 }
0x2564   :  { %v4599_v38 = vpop.eup %3840  ;;  %v1984_v18 = vmul.f32 %v3839_v49, %v1982_v10 }
0x2565   :  { %v1113_v19 = vmul.f32 %v4599_v38, %v1111_v21 }
0x25c7   :  { %v1987_v55 = vpop.permute.xlu0 %1986 }
0x25c8   :  { %v1989_v13 = vmul.f32 %v3839_v49, %v1987_v55 }
0x25ca   :  { %1991 = vrot.lane.b32.xlu1 %v1989_v13, %s4136_s2 }
0x25cb   :  { %v1116_v15 = vpop.permute.xlu0 %1115 }
0x25cc   :  { %v1118_v16 = vmul.f32 %v4599_v38, %v1116_v15 }
0x25ce   :  { %1120 = vrot.lane.b32.xlu1 %v1118_v16, %s4136_s2 }
0x25d2   :  { %1672 = vrot.lane.b32.xlu1 %v4564_v25, %s4136_s2 }
0x25d6   :  { %1894 = vrot.lane.b32.xlu1 %v1892_v61, %s4136_s2  ;;  %v2038_v61 = vld [vmem:[#allocation16 + $0x8] sm:$0xff] }
0x25d7   :  { %v4632_v62 = vpack.c.bf16 %v2038_v61, %v2037_v60 }
0x25d9   :  { %3648 = vmatpush3.bf16.msra.mxu0 %v4632_v62 }
0x25da   :  { %3649 = vmatprep.subr.bf16.mxu0 %v4132_v0 }
0x263c   :  { %v1992_v42 = vpop.permute.xlu1 %1991 }
0x263d   :  { %v1994_v23 = vadd.f32 %v1992_v42, %v1984_v18 }
0x263f   :  { %3842 = vtanh.f32 %v1994_v23 }
0x2640   :  { %v1121_v27 = vpop.permute.xlu1 %1120 }
0x2641   :  { %v1123_v30 = vadd.f32 %v1121_v27, %v1113_v19 }
0x2643   :  { %3844 = vtanh.f32 %v1123_v30  ;;  %v2036_v30 = vld [vmem:[#allocation13] sm:$0x3] }
0x2644   :  { %v1673_v33 = vpop.permute.xlu1 %1672 }
0x2645   :  { %1675 = vst.msk [vmem:[#allocation3] sm:$0xc0] %vm695_vm3, %v1673_v33  ;;  %v2045_v33 = vrot.slane %v2036_v30, %v172_v48 }
0x2648   :  { %v1895_v25 = vpop.permute.xlu1 %1894 }
0x2649   :  { %v3843_v35 = vpop.eup %3842  ;;  %1897 = vst.msk [vmem:[#allocation3] sm:$0xc] %vm471_vm4, %v1895_v25 }
0x264a   :  { %1997 = vrot.lane.b32.xlu0 %v3843_v35, %s4135_s24 }
0x264d   :  { %v3845_v36 = vpop.eup %3844 }
0x264e   :  { %1126 = vrot.lane.b32.xlu1 %v3845_v36, %s4135_s24  ;;  %1783 = vrot.lane.b32.xlu0 %v4579_v32, %s4136_s2 }
0x2652   :  { %1345 = vrot.lane.b32.xlu1 %v4518_v57, %s4136_s2  ;;  %1234 = vrot.lane.b32.xlu0 %v4494_v20, %s4136_s2  ;;  %v2021_v57 = vld [vmem:[#allocation12 + $0x8] sm:$0xff]  ;;  %v2023_v20 = vld [vmem:[#allocation12 + $0x18] sm:$0xff] }
0x2656   :  { %468 = vrot.lane.b32.xlu1 %v4381_v4, %s4136_s2  ;;  %v3630_v4 = vpack.c.bf16 %v2023_v20, %v2021_v57 }
0x2658   :  { %3631 = vmatprep.subr.bf16.mxu1 %v3630_v4 }
0x265a   :  { %692 = vrot.lane.b32.xlu1 %v4411_v52, %s4136_s2  ;;  %v2022_v52 = vld [vmem:[#allocation12 + $0x10] sm:$0xff] }
0x265b   :  { %v3632_v44 = vpack.c.bf16 %v2022_v52, %v2020_v40 }
0x265d   :  { %3633 = vmatpush1.bf16.msra.mxu1 %v3632_v44 }
0x265e   :  { %1020 = vrot.lane.b32.xlu1 %v4490_v17, %s4136_s2  ;;  %3635 = vmatprep.subr.bf16.mxu1 %v3634_v45 }
0x2661   :  { %3637 = vmatpush1.bf16.msra.mxu1 %v3636_v58 }
0x2662   :  { %3639 = vmatprep.subr.bf16.mxu1 %v3638_v59 }
0x26bc   :  { %v1998_v9 = vpop.permute.xlu0 %1997 }
0x26bd   :  { %v2000_v37 = vmul.f32 %v3839_v49, %v1998_v9 }
0x26bf   :  { %2002 = vrot.lane.b32.xlu0 %v2000_v37, %s4136_s2 }
0x26c0   :  { %v1127_v32 = vpop.permute.xlu1 %1126  ;;  %v1784_v39 = vpop.permute.xlu0 %1783 }
0x26c1   :  { %1786 = vst.msk [vmem:[#allocation3] sm:$0x30] %vm583_vm5, %v1784_v39  ;;  %v1129_v5 = vmul.f32 %v4599_v38, %v1127_v32 }
0x26c3   :  { %1456 = vrot.lane.b32.xlu0 %v4533_v14, %s4136_s2  ;;  %v2028_v14 = vld [vmem:[#allocation12 + $0x40] sm:$0xff] }
0x26c4   :  { %v1346_v17 = vpop.permute.xlu1 %1345  ;;  %v1235_v43 = vpop.permute.xlu0 %1234  ;;  %v3640_v63 = vpack.c.bf16 %v2030_v24, %v2028_v14 }
0x26c5   :  { %1348 = vst.msk [vmem:[#allocation3 + $0x8] sm:$0x30] %vm583_vm5, %v1346_v17 }
0x26c6   :  { %1237 = vst.msk [vmem:[#allocation3 + $0x8] sm:$0xc0] %vm695_vm3, %v1235_v43  ;;  %3641 = vmatpush1.bf16.msra.mxu1 %v3640_v63 }
0x26c7   :  { %580 = vrot.lane.b32.xlu0 %v4396_v31, %s4136_s2  ;;  %v3642_v31 = vpack.c.bf16 %v2035_v50, %v2033_v29 }
0x26c8   :  { %v469_v47 = vpop.permute.xlu1 %468 }
0x26c9   :  { %472 = vst.msk [vmem:[#allocation2] sm:$0xc] %vm471_vm4, %v469_v47  ;;  %3643 = vmatprep.subr.bf16.mxu1 %v3642_v31 }
0x26ca   :  { %3645 = vmatpush1.bf16.msra.mxu1 %v3644_v6 }
0x26cb   :  { %909 = vrot.lane.b32.xlu0 %v4446_v34, %s4136_s2  ;;  %3658 = vmatprep.subr.bf16.mxu1 %v4132_v0  ;;  %v2039_v34 = vld [vmem:[#allocation16 + $0x10] sm:$0xff] }
0x26cc   :  { %v693_v46 = vpop.permute.xlu1 %692  ;;  %v4644_v26 = vpack.c.bf16 %v2040_v8, %v2039_v34 }
0x26cd   :  { %696 = vst.msk [vmem:[#allocation2] sm:$0xc0] %vm695_vm3, %v693_v46 }
0x26ce   :  { %3651 = vmatpush3.bf16.msra.mxu0 %v4644_v26 }
0x26cf   :  { %1131 = vrot.lane.b32.xlu0 %v1129_v5, %s4136_s2  ;;  %3652 = vmatprep.subr.bf16.mxu0 %v4132_v0 }
0x26d0   :  { %v1021_v7 = vpop.permute.xlu1 %1020 }
0x26d1   :  { %1023 = vst.msk [vmem:[#allocation2 + $0x8] sm:$0x30] %vm583_vm5, %v1021_v7  ;;  %3436 = vmatmul.mubr.f32.vlgmr.msra.gmra.mrb[20].mxu0 %v4133_v1 }
0x26d2   :  { %3654 = vmatpush3.bf16.msra.mxu0 %v4632_v62  ;;  %3446 = vmatprep.mubr.msk.f32.mxu0 %vm4134_vm0, %v4133_v1 }
0x26d3   :  { %3655 = vmatprep.subr.bf16.mxu0 %v4132_v0 }
0x26d6   :  { %3657 = vmatpush3.bf16.msra.mxu0 %v4644_v26 }
0x26d7   :  { %3664 = vmatprep.subr.bf16.mxu0 %v4132_v0 }
0x2731   :  { %v2003_v11 = vpop.permute.xlu0 %2002 }
0x2732   :  { %2005 = vst.msk [vmem:[#allocation3] sm:$0x3] %vm362_vm2, %v2003_v11 }
0x2735   :  { %v1457_v12 = vpop.permute.xlu0 %1456 }
0x2736   :  { %1459 = vst.msk [vmem:[#allocation3 + $0x8] sm:$0xc] %vm471_vm4, %v1457_v12 }
0x2739   :  { %v581_v49 = vpop.permute.xlu0 %580  ;;  %v2008_v55 = vld [vmem:[#allocation3] sm:$0xff] }
0x273a   :  { %584 = vst.msk [vmem:[#allocation2] sm:$0x30] %vm583_vm5, %v581_v49  ;;  %2012 = vrot.lane.b32.xlu1 %v2008_v55, %s4136_s2 }
0x273d   :  { %v910_v13 = vpop.permute.xlu0 %909  ;;  %v2009_v38 = vld [vmem:[#allocation3 + $0x8] sm:$0xff] }
0x273e   :  { %912 = vst.msk [vmem:[#allocation2 + $0x8] sm:$0xc] %vm471_vm4, %v910_v13  ;;  %2014 = vrot.lane.b32.xlu0 %v2009_v38, %s4136_s2 }
0x2741   :  { %v1132_v15 = vpop.permute.xlu0 %1131  ;;  %v2006_v10 = vld [vmem:[#allocation2] sm:$0xff] }
0x2742   :  { %1134 = vst.msk [vmem:[#allocation2 + $0x8] sm:$0xc0] %vm695_vm3, %v1132_v15 }
0x2749   :  { %v2007_v42 = vld [vmem:[#allocation2 + $0x8] sm:$0xff] }
0x27a4   :  { %v2195_v19 = vpop.f32.mrb[20].mxu0 }
0x27a5   :  { %v3437_v27 = vpop.f32.mrb[21].mxu0  ;;  %v2200_v37 = vrot.slane %v2195_v19, 2 }
0x27ac   :  { %v2013_v16 = vpop.permute.xlu1 %2012 }
0x27ad   :  { %v2018_v18 = vsel %vm176_vm1, %v2006_v10, %v2013_v16 }
0x27ae   :  { %3107 = vmatmul.mubr.msk.f32.vlgmr.msra.gmra.mrb[16].mxu1 %vm2047_vm6, %v2018_v18 }
0x27af   :  { %2123 = vmatprep.mubr.f32.mxu1 %v4133_v1  ;;  %3660 = vmatpush3.bf16.msra.mxu1 %v4632_v62 }
0x27b0   :  { %v2015_v21 = vpop.permute.xlu0 %2014  ;;  %3661 = vmatprep.subr.bf16.mxu1 %v4132_v0 }
0x27b1   :  { %v2019_v23 = vsel %vm176_vm1, %v2007_v42, %v2015_v21 }
0x27b2   :  { %3108 = vmatmul.mubr.msk.f32.gmra.mrb[18].mxu1 %vm2047_vm6, %v2019_v23 }
0x27b3   :  { %3663 = vmatpush3.bf16.msra.mxu1 %v4644_v26  ;;  %3457 = vmatprep.mubr.msk.f32.mxu1 %vm4134_vm0, %v4133_v1 }
0x27b4   :  { %3670 = vmatprep.subr.bf16.mxu1 %v4132_v0 }
0x2881   :  { %v2120_v25 = vpop.f32.mrb[16].mxu1 }
0x2882   :  { %v2121_v35 = vpop.f32.mrb[17].mxu1 }
0x2883   :  { %v4673_v36 = vadd.f32 %v2121_v35, %v2045_v33 }
0x2885   :  { %v2125_v9 = vpop.f32.mrb[18].mxu1 }
0x2886   :  { %v2126_v32 = vpop.f32.mrb[19].mxu1 }
0x2887   :  { %v4675_v39 = vadd.f32 %v2126_v32, %v2045_v33 }
0x2889   :  { %v2202_v57 = vadd.f32 %v2200_v37, %v4675_v39 }
0x288b   :  { %3846 = vtanh.f32 %v2202_v57  ;;  %v3109_v40 = vmul.f32 -1.442695, %v2202_v57 }
0x288d   :  { %3848 = vpow2.f32 %v3109_v40 }
0x2895   :  { %v3847_v20 = vpop.eup %3846 }
0x2896   :  { %2212 = vrot.lane.b32.xlu1 %v3847_v20, %s4135_s24 }
0x2897   :  { %v3849_v4 = vpop.eup %3848 }
0x2898   :  { %v2206_v22 = vadd.f32 1.0, %v3849_v4 }
0x289a   :  { %3850 = vrcp.f32 %v2206_v22 }
0x28a4   :  { %v3851_v48 = vpop.eup %3850 }
0x28a5   :  { %v2210_v41 = vmul.f32 0.0, %v3851_v48 }
0x2908   :  { %v2213_v52 = vpop.permute.xlu1 %2212 }
0x2909   :  { %v2215_v51 = vmul.f32 %v3851_v48, %v2213_v52 }
0x290b   :  { %2217 = vrot.lane.b32.xlu0 %v2215_v51, %s4136_s2 }
0x297d   :  { %v2218_v17 = vpop.permute.xlu0 %2217 }
0x297e   :  { %v2220_v43 = vadd.f32 %v2218_v17, %v2210_v41 }
0x2980   :  { %3852 = vtanh.f32 %v2220_v43  ;;  %v2315_v31 = vrot.slane %v2220_v43, 2 }
0x298a   :  { %v3853_v44 = vpop.eup %3852 }
0x298b   :  { %2223 = vrot.lane.b32.xlu1 %v3853_v44, %s4135_s24 }
0x29fd   :  { %v2224_v45 = vpop.permute.xlu1 %2223 }
0x29fe   :  { %v2226_v28 = vmul.f32 %v3851_v48, %v2224_v45 }
0x2a00   :  { %v2228_v53 = vrot.slane %v2226_v28, 6 }
0x2a02   :  { %2229 = vrot.lane.b32.xlu0 %v2228_v53, %s4136_s2 }
0x2a74   :  { %v2230_v54 = vpop.permute.xlu0 %2229 }
0x2a75   :  { %3447 = vmatmul.mubr.msk.f32.vlgmr.msra.gmra.mrb[22].mxu0 %vm176_vm1, %v2230_v54 }
0x2a76   :  { %3666 = vmatpush3.bf16.msra.mxu0 %v4632_v62  ;;  %3468 = vmatprep.mubr.msk.f32.mxu0 %vm4134_vm0, %v4133_v1 }
0x2a77   :  { %3667 = vmatprep.subr.bf16.mxu0 %v4132_v0 }
0x2a7a   :  { %3669 = vmatpush3.bf16.msra.mxu0 %v4644_v26 }
0x2a7b   :  { %3676 = vmatprep.subr.bf16.mxu0 %v4132_v0 }
0x2b48   :  { %v2299_v56 = vpop.f32.mrb[22].mxu0 }
0x2b49   :  { %v2304_v58 = vrot.slane %v2299_v56, 4  ;;  %v3448_v14 = vpop.f32.mrb[23].mxu0 }
0x2b4b   :  { %v2306_v59 = vadd.f32 %v2304_v58, %v4675_v39 }
0x2b4d   :  { %3854 = vtanh.f32 %v2306_v59  ;;  %v3111_v60 = vmul.f32 -1.442695, %v2306_v59 }
0x2b4f   :  { %3856 = vpow2.f32 %v3111_v60 }
0x2b57   :  { %v3855_v24 = vpop.eup %3854 }
0x2b58   :  { %2319 = vrot.lane.b32.xlu1 %v3855_v24, %s4135_s24 }
0x2b59   :  { %v3857_v61 = vpop.eup %3856 }
0x2b5a   :  { %v2310_v47 = vadd.f32 1.0, %v3857_v61 }
0x2b5c   :  { %3858 = vrcp.f32 %v2310_v47 }
0x2b66   :  { %v3859_v29 = vpop.eup %3858 }
0x2b67   :  { %v2317_v2 = vmul.f32 %v3859_v29, %v2315_v31 }
0x2bca   :  { %v2320_v50 = vpop.permute.xlu1 %2319 }
0x2bcb   :  { %v2322_v63 = vmul.f32 %v3859_v29, %v2320_v50 }
0x2bcd   :  { %2324 = vrot.lane.b32.xlu0 %v2322_v63, %s4136_s2 }
0x2c3f   :  { %v2325_v3 = vpop.permute.xlu0 %2324 }
0x2c40   :  { %v2327_v46 = vadd.f32 %v2325_v3, %v2317_v2 }
0x2c42   :  { %3860 = vtanh.f32 %v2327_v46  ;;  %v2422_v21 = vrot.slane %v2327_v46, 2 }
0x2c4c   :  { %v3861_v5 = vpop.eup %3860 }
0x2c4d   :  { %2330 = vrot.lane.b32.xlu1 %v3861_v5, %s4135_s24 }
0x2cbf   :  { %v2331_v6 = vpop.permute.xlu1 %2330 }
0x2cc0   :  { %v2333_v7 = vmul.f32 %v3859_v29, %v2331_v6 }
0x2cc2   :  { %v2335_v34 = vrot.slane %v2333_v7, 4 }
0x2cc4   :  { %2336 = vrot.lane.b32.xlu0 %v2335_v34, %s4136_s2 }
0x2d36   :  { %v2337_v8 = vpop.permute.xlu0 %2336 }
0x2d37   :  { %3458 = vmatmul.mubr.msk.f32.vlgmr.msra.gmra.mrb[20].mxu1 %vm176_vm1, %v2337_v8 }
0x2d38   :  { %3672 = vmatpush3.bf16.msra.mxu1 %v4632_v62  ;;  %3479 = vmatprep.mubr.msk.f32.mxu1 %vm4134_vm0, %v4133_v1 }
0x2d39   :  { %3673 = vmatprep.subr.bf16.mxu1 %v4132_v0 }
0x2d3c   :  { %3675 = vmatpush3.bf16.msra.mxu1 %v4644_v26 }
0x2d3d   :  { %3682 = vmatprep.subr.bf16.mxu1 %v4132_v0 }
0x2e0a   :  { %v2406_v11 = vpop.f32.mrb[20].mxu1 }
0x2e0b   :  { %v2411_v12 = vrot.slane %v2406_v11, 6  ;;  %v3459_v49 = vpop.f32.mrb[21].mxu1 }
0x2e0d   :  { %v2413_v55 = vadd.f32 %v2411_v12, %v4675_v39 }
0x2e0f   :  { %3862 = vtanh.f32 %v2413_v55  ;;  %v3113_v38 = vmul.f32 -1.442695, %v2413_v55 }
0x2e11   :  { %3864 = vpow2.f32 %v3113_v38 }
0x2e19   :  { %v3863_v13 = vpop.eup %3862 }
0x2e1a   :  { %2426 = vrot.lane.b32.xlu1 %v3863_v13, %s4135_s24 }
0x2e1b   :  { %v3865_v15 = vpop.eup %3864 }
0x2e1c   :  { %v2417_v16 = vadd.f32 1.0, %v3865_v15 }
0x2e1e   :  { %3866 = vrcp.f32 %v2417_v16 }
0x2e28   :  { %v3867_v10 = vpop.eup %3866 }
0x2e29   :  { %v2424_v23 = vmul.f32 %v3867_v10, %v2422_v21 }
0x2e8c   :  { %v2427_v18 = vpop.permute.xlu1 %2426 }
0x2e8d   :  { %v2429_v42 = vmul.f32 %v3867_v10, %v2427_v18 }
0x2e8f   :  { %2431 = vrot.lane.b32.xlu0 %v2429_v42, %s4136_s2 }
0x2f01   :  { %v2432_v19 = vpop.permute.xlu0 %2431 }
0x2f02   :  { %v2434_v27 = vadd.f32 %v2432_v19, %v2424_v23 }
0x2f04   :  { %3868 = vtanh.f32 %v2434_v27  ;;  %v2526_v41 = vrot.slane %v2434_v27, 2 }
0x2f0e   :  { %v3869_v30 = vpop.eup %3868 }
0x2f0f   :  { %2437 = vrot.lane.b32.xlu1 %v3869_v30, %s4135_s24 }
0x2f81   :  { %v2438_v33 = vpop.permute.xlu1 %2437 }
0x2f82   :  { %v2440_v25 = vmul.f32 %v3867_v10, %v2438_v33 }
0x2f84   :  { %v2442_v35 = vrot.slane %v2440_v25, 2 }
0x2f86   :  { %2443 = vrot.lane.b32.xlu0 %v2442_v35, %s4136_s2 }
0x2ff8   :  { %v2444_v9 = vpop.permute.xlu0 %2443 }
0x2ff9   :  { %3469 = vmatmul.mubr.msk.f32.vlgmr.msra.gmra.mrb[24].mxu0 %vm176_vm1, %v2444_v9 }
0x2ffa   :  { %3678 = vmatpush3.bf16.msra.mxu0 %v4632_v62  ;;  %3490 = vmatprep.mubr.msk.f32.mxu0 %vm4134_vm0, %v4133_v1 }
0x2ffb   :  { %3679 = vmatprep.subr.bf16.mxu0 %v4132_v0 }
0x2ffe   :  { %3681 = vmatpush3.bf16.msra.mxu0 %v4644_v26 }
0x2fff   :  { %3688 = vmatprep.subr.bf16.mxu0 %v4132_v0 }
0x30cc   :  { %v2513_v37 = vpop.f32.mrb[24].mxu0 }
0x30cd   :  { %v2517_v32 = vadd.f32 %v2513_v37, %v4675_v39  ;;  %v3470_v57 = vpop.f32.mrb[25].mxu0 }
0x30cf   :  { %3870 = vtanh.f32 %v2517_v32  ;;  %v3115_v40 = vmul.f32 -1.442695, %v2517_v32 }
0x30d1   :  { %3872 = vpow2.f32 %v3115_v40 }
0x30d9   :  { %v3871_v20 = vpop.eup %3870 }
0x30da   :  { %2530 = vrot.lane.b32.xlu1 %v3871_v20, %s4135_s24 }
0x30db   :  { %v3873_v4 = vpop.eup %3872 }
0x30dc   :  { %v2521_v22 = vadd.f32 1.0, %v3873_v4 }
0x30de   :  { %3874 = vrcp.f32 %v2521_v22 }
0x30e8   :  { %v3875_v48 = vpop.eup %3874 }
0x30e9   :  { %v2528_v17 = vmul.f32 %v3875_v48, %v2526_v41 }
0x314c   :  { %v2531_v52 = vpop.permute.xlu1 %2530 }
0x314d   :  { %v2533_v51 = vmul.f32 %v3875_v48, %v2531_v52 }
0x314f   :  { %2535 = vrot.lane.b32.xlu0 %v2533_v51, %s4136_s2 }
0x31c1   :  { %v2536_v43 = vpop.permute.xlu0 %2535 }
0x31c2   :  { %v2538_v44 = vadd.f32 %v2536_v43, %v2528_v17 }
0x31c4   :  { %3876 = vtanh.f32 %v2538_v44  ;;  %v2632_v63 = vrot.slane %v2538_v44, 2 }
0x31ce   :  { %v3877_v39 = vpop.eup %3876 }
0x31cf   :  { %2541 = vrot.lane.b32.xlu1 %v3877_v39, %s4135_s24 }
0x3241   :  { %v2542_v45 = vpop.permute.xlu1 %2541 }
0x3242   :  { %v2544_v28 = vmul.f32 %v3875_v48, %v2542_v45 }
0x3244   :  { %2546 = vrot.lane.b32.xlu0 %v2544_v28, %s4136_s2 }
0x32b6   :  { %v2547_v53 = vpop.permute.xlu0 %2546 }
0x32b7   :  { %3480 = vmatmul.mubr.msk.f32.vlgmr.msra.gmra.mrb[22].mxu1 %vm176_vm1, %v2547_v53 }
0x32b8   :  { %3684 = vmatpush3.bf16.msra.mxu1 %v4632_v62  ;;  %3501 = vmatprep.mubr.msk.f32.mxu1 %vm4134_vm0, %v4133_v1 }
0x32b9   :  { %3685 = vmatprep.subr.bf16.mxu1 %v4132_v0 }
0x32bc   :  { %3687 = vmatpush3.bf16.msra.mxu1 %v4644_v26 }
0x32bd   :  { %3694 = vmatprep.subr.bf16.mxu1 %v4132_v0 }
0x338a   :  { %v2616_v54 = vpop.f32.mrb[22].mxu1 }
0x338b   :  { %v2621_v56 = vrot.slane %v2616_v54, 2  ;;  %v3481_v58 = vpop.f32.mrb[23].mxu1 }
0x338d   :  { %v2623_v14 = vadd.f32 %v2621_v56, %v4673_v36 }
0x338f   :  { %3878 = vtanh.f32 %v2623_v14  ;;  %v3117_v24 = vmul.f32 -1.442695, %v2623_v14 }
0x3391   :  { %3880 = vpow2.f32 %v3117_v24 }
0x3399   :  { %v3879_v59 = vpop.eup %3878 }
0x339a   :  { %2636 = vrot.lane.b32.xlu1 %v3879_v59, %s4135_s24 }
0x339b   :  { %v3881_v60 = vpop.eup %3880 }
0x339c   :  { %v2627_v61 = vadd.f32 1.0, %v3881_v60 }
0x339e   :  { %3882 = vrcp.f32 %v2627_v61 }
0x33a8   :  { %v3883_v47 = vpop.eup %3882 }
0x33a9   :  { %v2634_v31 = vmul.f32 %v3883_v47, %v2632_v63 }
0x340c   :  { %v2637_v29 = vpop.permute.xlu1 %2636 }
0x340d   :  { %v2639_v50 = vmul.f32 %v3883_v47, %v2637_v29 }
0x340f   :  { %2641 = vrot.lane.b32.xlu0 %v2639_v50, %s4136_s2 }
0x3481   :  { %v2642_v2 = vpop.permute.xlu0 %2641 }
0x3482   :  { %v2644_v3 = vadd.f32 %v2642_v2, %v2634_v31  ;;  %v2970_v31 = vld [vmem:[%s4793_s9 + $0x8] sm:$0xff]  ;;  %v2971_v2 = vld [vmem:[%s4793_s9 + $0x10] sm:$0xff] }
0x3484   :  { %3884 = vtanh.f32 %v2644_v3 }
0x348e   :  { %v3885_v46 = vpop.eup %3884 }
0x348f   :  { %2647 = vrot.lane.b32.xlu1 %v3885_v46, %s4135_s24  ;;  %v2972_v46 = vld [vmem:[%s4793_s9 + $0x18] sm:$0xff] }
0x3501   :  { %v2648_v5 = vpop.permute.xlu1 %2647 }
0x3502   :  { %v2650_v6 = vmul.f32 %v3883_v47, %v2648_v5  ;;  %v3698_v5 = vpack.c.bf16 %v2972_v46, %v2971_v2 }
0x3504   :  { %v2652_v7 = vrot.slane %v2650_v6, 6 }
0x3506   :  { %2653 = vrot.lane.b32.xlu0 %v2652_v7, %s4136_s2 }
0x3578   :  { %v2654_v34 = vpop.permute.xlu0 %2653 }
0x3579   :  { %3491 = vmatmul.mubr.msk.f32.vlgmr.msra.gmra.mrb[26].mxu0 %vm176_vm1, %v2654_v34 }
0x357a   :  { %3690 = vmatpush3.bf16.msra.mxu0 %v4632_v62  ;;  %3512 = vmatprep.mubr.msk.f32.mxu0 %vm4134_vm0, %v4133_v1 }
0x357b   :  { %3691 = vmatprep.subr.bf16.mxu0 %v4132_v0 }
0x357e   :  { %3693 = vmatpush3.bf16.msra.mxu0 %v4644_v26  ;;  %v2739_v26 = vrot.slane %v2644_v3, 2 }
0x364c   :  { %v2723_v8 = vpop.f32.mrb[26].mxu0 }
0x364d   :  { %v2728_v11 = vrot.slane %v2723_v8, 4  ;;  %v3492_v12 = vpop.f32.mrb[27].mxu0 }
0x364f   :  { %v2730_v49 = vadd.f32 %v2728_v11, %v4673_v36  ;;  %v3124_v11 = vld [vmem:[%s4794_s10] ss:$0 sm:$0xff] }
0x3651   :  { %3886 = vtanh.f32 %v2730_v49  ;;  %v3119_v13 = vmul.f32 -1.442695, %v2730_v49 }
0x3653   :  { %3888 = vpow2.f32 %v3119_v13 }
0x365b   :  { %v3887_v55 = vpop.eup %3886 }
0x365c   :  { %2743 = vrot.lane.b32.xlu1 %v3887_v55, %s4135_s24 }
0x365d   :  { %v3889_v38 = vpop.eup %3888 }
0x365e   :  { %v2734_v62 = vadd.f32 1.0, %v3889_v38 }
0x3660   :  { %3890 = vrcp.f32 %v2734_v62 }
0x366a   :  { %v3891_v15 = vpop.eup %3890 }
0x366b   :  { %v2741_v18 = vmul.f32 %v3891_v15, %v2739_v26 }
0x36ce   :  { %v2744_v16 = vpop.permute.xlu1 %2743 }
0x36cf   :  { %v2746_v10 = vmul.f32 %v3891_v15, %v2744_v16 }
0x36d1   :  { %2748 = vrot.lane.b32.xlu0 %v2746_v10, %s4136_s2 }
0x3743   :  { %v2749_v42 = vpop.permute.xlu0 %2748 }
0x3744   :  { %v2751_v21 = vadd.f32 %v2749_v42, %v2741_v18 }
0x3746   :  { %3892 = vtanh.f32 %v2751_v21 }
0x3750   :  { %v3893_v23 = vpop.eup %3892 }
0x3751   :  { %2754 = vrot.lane.b32.xlu1 %v3893_v23, %s4135_s24 }
0x37c3   :  { %v2755_v19 = vpop.permute.xlu1 %2754 }
0x37c4   :  { %v2757_v27 = vmul.f32 %v3891_v15, %v2755_v19 }
0x37c6   :  { %v2759_v30 = vrot.slane %v2757_v27, 4 }
0x37c8   :  { %2760 = vrot.lane.b32.xlu0 %v2759_v30, %s4136_s2 }
0x383a   :  { %v2761_v33 = vpop.permute.xlu0 %2760 }
0x383b   :  { %3502 = vmatmul.mubr.msk.f32.vlgmr.msra.gmra.mrb[24].mxu1 %vm176_vm1, %v2761_v33 }
0x383c   :  { %3523 = vmatprep.mubr.msk.f32.mxu1 %vm4134_vm0, %v4133_v1  ;;  %v2846_v1 = vrot.slane %v2751_v21, 2 }
0x390e   :  { %v2830_v25 = vpop.f32.mrb[24].mxu1 }
0x390f   :  { %v2835_v35 = vrot.slane %v2830_v25, 6  ;;  %v3503_v9 = vpop.f32.mrb[25].mxu1 }
0x3911   :  { %v2837_v37 = vadd.f32 %v2835_v35, %v4673_v36 }
0x3913   :  { %3894 = vtanh.f32 %v2837_v37  ;;  %v3121_v57 = vmul.f32 -1.442695, %v2837_v37 }
0x3915   :  { %3896 = vpow2.f32 %v3121_v57 }
0x391d   :  { %v3895_v32 = vpop.eup %3894 }
0x391e   :  { %2850 = vrot.lane.b32.xlu1 %v3895_v32, %s4135_s24 }
0x391f   :  { %v3897_v20 = vpop.eup %3896 }
0x3920   :  { %v2841_v40 = vadd.f32 1.0, %v3897_v20 }
0x3922   :  { %3898 = vrcp.f32 %v2841_v40 }
0x392c   :  { %v3899_v4 = vpop.eup %3898 }
0x392d   :  { %v2848_v52 = vmul.f32 %v3899_v4, %v2846_v1 }
0x3990   :  { %v2851_v22 = vpop.permute.xlu1 %2850 }
0x3991   :  { %v2853_v48 = vmul.f32 %v3899_v4, %v2851_v22 }
0x3993   :  { %2855 = vrot.lane.b32.xlu0 %v2853_v48, %s4136_s2 }
0x3a05   :  { %v2856_v51 = vpop.permute.xlu0 %2855 }
0x3a06   :  { %v2858_v41 = vadd.f32 %v2856_v51, %v2848_v52 }
0x3a08   :  { %3900 = vtanh.f32 %v2858_v41  ;;  %v2950_v47 = vrot.slane %v2858_v41, 2 }
0x3a12   :  { %v3901_v17 = vpop.eup %3900 }
0x3a13   :  { %2861 = vrot.lane.b32.xlu1 %v3901_v17, %s4135_s24 }
0x3a85   :  { %v2862_v43 = vpop.permute.xlu1 %2861 }
0x3a86   :  { %v2864_v44 = vmul.f32 %v3899_v4, %v2862_v43 }
0x3a88   :  { %v2866_v39 = vrot.slane %v2864_v44, 2 }
0x3a8a   :  { %2867 = vrot.lane.b32.xlu0 %v2866_v39, %s4136_s2 }
0x3afc   :  { %v2868_v45 = vpop.permute.xlu0 %2867 }
0x3afd   :  { %3513 = vmatmul.mubr.msk.f32.vlgmr.msra.gmra.mrb[28].mxu0 %vm176_vm1, %v2868_v45 }
0x3bd0   :  { %v2937_v28 = vpop.f32.mrb[28].mxu0 }
0x3bd1   :  { %v2941_v53 = vadd.f32 %v2937_v28, %v4673_v36  ;;  %v3514_v54 = vpop.f32.mrb[29].mxu0  ;;  %v2969_v36 = vld [vmem:[%s4793_s9] sm:$0xff]  ;;  %s4137_s9 = smov [#allocation18]  }
0x3bd2   :  { %v3695_v3 = vpack.c.bf16 %v2970_v31, %v2969_v36  ;;  %s3062_s5 = sshll.u32 %s4137_s9, 4  ;;  %s3063_s5 = int_to_ptr.vmem [resolvable:$true] %s3062_s5 }
0x3bd3   :  { %3902 = vtanh.f32 %v2941_v53  ;;  %v3123_v58 = vmul.f32 -1.442695, %v2941_v53  ;;  %s4086_s27 = scalar_lea.vmem %s3063_s5, 32  ;;  %p4091_p9 = scmp.lt.s32.totalorder %s3063_s5, %s3063_s5 }
0x3bd4   :  { %3696 = vmatpush3.bf16.msra.mxu1 %v3695_v3  ;;  %p4087_p8 = scmp.ne.s32.totalorder %s3063_s5, %s4086_s27  ;;  %p4092_p10 = scmp.lt.s32.totalorder %s4086_s27, %s4086_s27 }
0x3bd5   :  { %3904 = vpow2.f32 %v3123_v58  ;;  %3697 = vmatprep.subr.bf16.mxu1 %v4132_v0 }
0x3bd6   :  { %p4093_p11 = por %p4092_p10, %p4091_p9 }
0x3bd8   :  { %3699 = vmatpush3.bf16.msra.mxu1 %v3698_v5  ;;  %p4094_p12 = pnand %p4093_p11, %p4087_p8 }
0x3bdd   :  { %v3903_v56 = vpop.eup %3902 }
0x3bde   :  { %2954 = vrot.lane.b32.xlu1 %v3903_v56, %s4135_s24 }
0x3bdf   :  { %v3905_v14 = vpop.eup %3904 }
0x3be0   :  { %v2945_v59 = vadd.f32 1.0, %v3905_v14 }
0x3be2   :  { %3906 = vrcp.f32 %v2945_v59 }
0x3bec   :  { %v3907_v24 = vpop.eup %3906 }
0x3bed   :  { %v2952_v29 = vmul.f32 %v3907_v24, %v2950_v47 }
0x3c50   :  { %v2955_v60 = vpop.permute.xlu1 %2954 }
0x3c51   :  { %v2957_v61 = vmul.f32 %v3907_v24, %v2955_v60 }
0x3c53   :  { %2959 = vrot.lane.b32.xlu0 %v2957_v61, %s4136_s2 }
0x3cc5   :  { %v2960_v50 = vpop.permute.xlu0 %2959 }
0x3cc6   :  { %v2962_v63 = vadd.f32 %v2960_v50, %v2952_v29 }
0x3cc8   :  { %3908 = vtanh.f32 %v2962_v63 }
0x3cd2   :  { %v3909_v6 = vpop.eup %3908 }
0x3cd3   :  { %2965 = vrot.lane.b32.xlu1 %v3909_v6, %s4135_s24 }
0x3d45   :  { %v2966_v7 = vpop.permute.xlu1 %2965 }
0x3d46   :  { %v2968_v34 = vmul.f32 %v3907_v24, %v2966_v7 }
0x3d48   :  { %2981 = vrot.lane.b32.xlu0 %v2968_v34, %s4136_s2 }
0x3dba   :  { %v2982_v8 = vpop.permute.xlu0 %2981 }
0x3dbb   :  { %3524 = vmatmul.mubr.msk.f32.vlgmr.msra.gmra.mrb[26].mxu1 %vm176_vm1, %v2982_v8 }
0x3e8e   :  { %v3051_v12 = vpop.f32.mrb[26].mxu1 }
0x3e8f   :  { %v3052_v49 = vadd.f32 %v3124_v11, %v3051_v12  ;;  %v3525_v0 = vpop.f32.mrb[27].mxu1 }
0x3e91   :  { %3055 = vst [vmem:[#allocation18] sm:$0x3] %v3052_v49 }
0x3e92   :  { %4097 = shalt.err (!%p4094_p12)
}
0x3e93   :  { %s4098_s16 = scalar_lea.hbm %s4795_s11, 32 }
0x3e94   :  { %p4099_p13 = scmp.ne.s32.totalorder %s4795_s11, %s4098_s16  ;;  %p4102_p0 = scmp.lt.u32.totalorder %s4098_s16, %s4795_s11 }
0x3e96   :  { %p4104_p1 = pnand %p4102_p0, %p4099_p13 }
0x3e98   :  { %4107 = shalt.err (!%p4104_p1)
}
0x3e99   :  { %3065 = dma.vmem_to_hbm [thread:$0]  %s3063_s5, 32, %s4795_s11, [#allocation6]  }
0x3e9a   :  { %4118 = dma.done.wait [#allocation6], 32  }
0x3e9b   :  { %4119 = vsyncadd [#allocation6], 4294967264 }
0x3e9c   :  { %3069 = vsyncpa [#allocation5], 1 }
0x3e9d   :  { %3070 = vsyncpa [#allocation8], 1 }
0x3e9e   :  { %3071 = vsyncpa [#allocation11], 1 }
0x3e9f   :  { %3072 = vsyncpa [#allocation14], 1 }
0x3ea0   :  { %3073 = vsyncpa [#allocation17], 1 }
0x3ea1   :  { %3074 = vsyncpa [#allocation6], 1 }

</bundles_post_ra>
